<compile_context>
chip_gen: v6e
topology: v6e:2x2x1
jax: 0.10.0
libtpu: 0.0.40
codegen_flags: <defaults>
</compile_context>

<pallas_src>
import functools

import numpy as np
import jax
import jax.numpy as jnp
from jax.experimental import pallas as pl
from jax.experimental.pallas import tpu as pltpu


def _next_pow2(x: int) -> int:
    return 1 if x <= 1 else 1 << (x - 1).bit_length()


# ----------------------------- Pallas kernel ------------------------------- #

def _roi_align_kernel(nbox_ref, wxT_ref, wy_ref, p_ref, out_ref, *,
                      C, H, W, PH, PW, NB, fused_relayout):
    """One grid step = NB boxes.

    nbox_ref : SMEM [1]            actual number of boxes (gates padded steps)
    wxT_ref  : VMEM [W, NB*PW]     horizontal bilinear weights (pre-transposed)
    wy_ref   : VMEM [NB*PH, H]     vertical bilinear weights
    p_ref    : VMEM [C*H, W]       feature map, channel-major rows (resident)
    out_ref  : VMEM [NB, PH, C*PW] lane-dense output block
    """
    step = pl.program_id(0)

    # Skip fully-padded grid steps (power-of-two bucketing keeps compile reuse,
    # pl.when keeps padded steps nearly free).
    @pl.when(step * NB < nbox_ref[0])
    def _compute():
        p2 = p_ref[...]              # [C*H, W]
        wxT = wxT_ref[...]           # [W, NB*PW]
        wy = wy_ref[...]             # [NB*PH, H]

        # x-pass: ONE fused MXU matmul over all channels and all NB boxes.
        t = jnp.dot(p2, wxT, preferred_element_type=jnp.float32)   # [C*H, NB*PW]
        t = t.astype(wy.dtype)       # f32 by default; bf16 when compute_dtype=bf16
        cpw = C * PW

        if fused_relayout:
            # ONE full-lane-width relayout per step:
            #   rows (c, h), lanes (j, pw)  ->  rows h, lanes (j, c, pw)
            # so every box's y-matmul rhs is a contiguous C*PW lane slice
            # (128-aligned whenever C*PW % 128 == 0).
            t2 = jnp.transpose(t.reshape(C, H, NB, PW), (1, 2, 0, 3))
            t2 = t2.reshape(H, NB * cpw)
            for j in range(NB):      # NB is small & static; body = matmul + store
                o = jnp.dot(wy[j * PH:(j + 1) * PH, :],
                            t2[:, j * cpw:(j + 1) * cpw],
                            preferred_element_type=jnp.float32)     # [PH, C*PW]
                out_ref[j, :, :] = o.astype(out_ref.dtype)
        else:
            # Proven per-box fallback (previous kernel's relayout), kept only for
            # toolchains where the fused rank-4 transpose above does not lower.
            t3 = t.reshape(C, H, NB * PW)
            for j in range(NB):
                t_j = jnp.transpose(t3[:, :, j * PW:(j + 1) * PW],
                                    (1, 0, 2)).reshape(H, cpw)      # [H, C*PW]
                o = jnp.dot(wy[j * PH:(j + 1) * PH, :], t_j,
                            preferred_element_type=jnp.float32)
                out_ref[j, :, :] = o.astype(out_ref.dtype)


# ------------------------- wrapper / call caching -------------------------- #

def _bilinear_weights(coords, size):
    """coords [n, K] (source-pixel positions) -> [n, K, size] bilinear weights
    with torchvision edge handling: zero outside [-1, size], clamp to [0, size-1]."""
    ok = jnp.logical_and(coords >= -1.0, coords <= float(size)).astype(jnp.float32)
    c = jnp.clip(coords, 0.0, float(size) - 1.0)
    idx = jnp.arange(size, dtype=jnp.float32)
    w = jnp.maximum(0.0, 1.0 - jnp.abs(c[..., None] - idx[None, None, :]))
    return w * ok[..., None]


def _vmem_estimate_bytes(C, H, W, PH, PW, NB, p_itemsize, w_itemsize):
    fmap = 2 * C * H * W * p_itemsize              # (double-buffered) resident map
    wx_b = 2 * W * NB * PW * p_itemsize            # weight slabs (double-buffered)
    wy_b = 2 * NB * PH * H * w_itemsize
    out_b = 2 * NB * PH * C * PW * 4               # double-buffered output block
    interm = 2 * C * H * NB * PW * 4               # x-pass result + relayout copy
    return fmap + wx_b + wy_b + out_b + interm


_CALL_CACHE = {}       # (shape signature, fused, vmem_limit) -> jitted pallas_call
_RELAYOUT_OK = {}      # shape signature -> bool (fused relayout lowered ok)


def _get_call(C, H, W, PH, PW, NB, n_steps, p_dtype, w_dtype, fused, vmem_limit_bytes):
    key = (C, H, W, PH, PW, NB, n_steps, str(p_dtype), str(w_dtype), bool(fused),
           int(vmem_limit_bytes))
    fn = _CALL_CACHE.get(key)
    if fn is not None:
        return fn

    kernel = functools.partial(_roi_align_kernel, C=C, H=H, W=W, PH=PH, PW=PW,
                               NB=NB, fused_relayout=fused)
    grid_spec = pltpu.PrefetchScalarGridSpec(
        num_scalar_prefetch=1,                    # actual box count -> SMEM
        grid=(n_steps,),
        in_specs=[
            # per-step weight slabs, pipelined in VMEM
            pl.BlockSpec((None, W, NB * PW), lambda s, n: (s, 0, 0)),
            pl.BlockSpec((None, NB * PH, H), lambda s, n: (s, 0, 0)),
            # full feature map resident in VMEM across steps (constant index map
            # => fetched once).  TODO(synk): for very large C*H*W on v7x (64 MiB
            # VMEM) add a second grid axis tiling C instead of keeping the whole
            # map resident; pipeline_mode=pl.Buffered(1) would also drop its
            # second (unused) buffer.
            pl.BlockSpec((C * H, W), lambda s, n: (0, 0)),
        ],
        out_specs=pl.BlockSpec((NB, PH, C * PW), lambda s, n: (s, 0, 0)),
    )
    fn = jax.jit(pl.pallas_call(
        kernel,
        out_shape=jax.ShapeDtypeStruct((NB * n_steps, PH, C * PW), jnp.float32),
        grid_spec=grid_spec,
        compiler_params=pltpu.CompilerParams(
            # boxes are independent -> megacore sharding of the step axis.
            # TODO(synk): on v7x consider pltpu.CORE_PARALLEL if plain "parallel"
            # does not split the axis across the 2 TensorCores.
            dimension_semantics=("parallel",),
            # explicit budget: raises v5e's 16 MiB default, stays inside v7x 64 MiB
            vmem_limit_bytes=int(vmem_limit_bytes),
        ),
    ))
    _CALL_CACHE[key] = fn
    return fn


def roi_align_pallas(P, bbox_n, pool_size, boxes_per_step=8, compute_dtype=None,
                     nchw_output=True, vmem_budget_bytes=48 << 20, relayout="auto"):
    """RoI-align (aligned=True, spatial_scale=1, one sample per bin) on TPU.

    P       : [C, H, W] feature map (any float dtype; kept native in VMEM)
    bbox_n  : [n, 4] NORMALIZED [x1, y1, x2, y2] boxes (denormalized by W/H here;
              note this differs from torchvision's absolute-coordinate API).
    returns : [n, C, PH, PW] float32, or [n, PH, C*PW] if nchw_output=False
              (skips the post-kernel HBM transpose round-trip).
    compute_dtype : e.g. jnp.bfloat16 for ~2-3x MXU throughput at ~1e-2 accuracy.
    """
    C, H, W = (int(s) for s in P.shape)
    n = int(bbox_n.shape[0])
    PH, PW = int(pool_size[0]), int(pool_size[1])
    assert n > 0

    p_dtype = jnp.dtype(P.dtype) if compute_dtype is None else jnp.dtype(compute_dtype)
    w_dtype = jnp.dtype(jnp.float32) if compute_dtype is None else jnp.dtype(compute_dtype)

    # Per-generation VMEM budgeting: shrink NB until the working set fits.
    NB = max(1, int(boxes_per_step))
    while NB > 1 and _vmem_estimate_bytes(C, H, W, PH, PW, NB, p_dtype.itemsize,
                                          w_dtype.itemsize) > vmem_budget_bytes:
        NB //= 2
    est = _vmem_estimate_bytes(C, H, W, PH, PW, NB, p_dtype.itemsize, w_dtype.itemsize)
    vmem_limit = int(min(112 << 20, max(32 << 20, est + (8 << 20))))

    # Bucket the step count (compile reuse); padded steps are skipped in-kernel.
    n_steps = int(_next_pow2(pl.cdiv(n, NB)))
    n_pad = NB * n_steps

    # -------- wrapper-side weight-slab precompute (no in-kernel prologue) -----
    bbox = jnp.zeros((n_pad, 4), jnp.float32).at[:n].set(bbox_n.astype(jnp.float32))
    x1 = bbox[:, 0] * W
    y1 = bbox[:, 1] * H
    x2 = bbox[:, 2] * W
    y2 = bbox[:, 3] * H
    # aligned=True half-pixel offset; one sample at each bin center.
    xs = (x1 - 0.5)[:, None] + (jnp.arange(PW, dtype=jnp.float32)[None, :] + 0.5) \
        * ((x2 - x1) / PW)[:, None]
    ys = (y1 - 0.5)[:, None] + (jnp.arange(PH, dtype=jnp.float32)[None, :] + 0.5) \
        * ((y2 - y1) / PH)[:, None]
    wx = _bilinear_weights(xs, W)                        # [n_pad, PW, W]
    wyv = _bilinear_weights(ys, H)                       # [n_pad, PH, H]
    wxT_all = (wx.reshape(n_steps, NB, PW, W).transpose(0, 3, 1, 2)
                 .reshape(n_steps, W, NB * PW).astype(p_dtype))
    wy_all = wyv.reshape(n_steps, NB * PH, H).astype(w_dtype)
    p2 = P.reshape(C * H, W).astype(p_dtype)
    nbox = jnp.array([n], dtype=jnp.int32)

    sig = (C, H, W, PH, PW, NB, n_steps, str(p_dtype), str(w_dtype))

    def _run(fused):
        fn = _get_call(C, H, W, PH, PW, NB, n_steps, p_dtype, w_dtype, fused, vmem_limit)
        return fn(nbox, wxT_all, wy_all, p2)

    if relayout == "fused":
        out = _run(True)
    elif relayout == "per_box":
        out = _run(False)
    else:
        # auto: prefer the single full-width relayout; fall back to the proven
        # per-box relayout if the fused rank-4 transpose fails to lower here.
        ok = _RELAYOUT_OK.get(sig)
        if ok is None:
            try:
                out = _run(True)
                jax.block_until_ready(out)
                _RELAYOUT_OK[sig] = True
            except Exception:
                _RELAYOUT_OK[sig] = False
                out = _run(False)
        else:
            out = _run(ok)

    out = out[:n]
    if nchw_output:
        # NCHW restore for torchvision API parity.  This is a full HBM round-trip
        # of the output; consumers that can take the lane-dense [n, PH, C*PW]
        # layout should pass nchw_output=False instead.
        out = out.reshape(n, PH, C, PW).transpose(0, 2, 1, 3)
    return out


# ------------------------------- module port -------------------------------- #

def _choose_crop_idx(bbox_areas, max_token_num, min_token_num):
    for i in range(bbox_areas.shape[0]):
        if bbox_areas[i] < max_token_num and bbox_areas[i] >= min_token_num:
            return i
    return -1


class CropLayerPallas:
    def __init__(self, cfg, max_token_num=784, pool_size=(24, 24)):
        self.max_token_num = max_token_num
        self.min_token_num = int(max_token_num / 4)
        self.pool_size = pool_size
        self.cfg = cfg

    @property
    def use_variable_tokennum(self):
        return self.cfg['use_variable_tokennum']

    def roi_align(self, P, bbox_n):
        aligned = roi_align_pallas(P, bbox_n, self.pool_size)
        return aligned, bbox_n

    def forward(self, bboxes_list, pyramid_list):
        bn = len(bboxes_list)
        all_croped = []
        all_used_bbox_n = []
        for i in range(bn):
            feature_maps = pyramid_list[i]
            fm_area = np.array([x.shape[-2] * x.shape[-1] for x in feature_maps],
                               dtype=np.float64)
            bboxes = bboxes_list[i]
            croped = []
            used_bbox_n = []
            if bboxes.shape[0] > 0:
                bboxes_np = np.asarray(bboxes)
                FMmatch = {}
                for bi, bbox in enumerate(bboxes_np):
                    top = bbox[1]
                    left = bbox[0]
                    h = bbox[3] - top
                    w = bbox[2] - left
                    bbox_areas = h * w * fm_area
                    choice_idx = _choose_crop_idx(
                        bbox_areas, self.max_token_num, self.min_token_num)
                    FMmatch.setdefault(choice_idx, []).append(bi)
                idx_order = []
                group_out = []
                group_bbox = []
                bboxes_dev = jnp.asarray(bboxes)
                for Pi, bis in FMmatch.items():
                    P = feature_maps[Pi]
                    idx_order.extend(bis)
                    bbox_n = bboxes_dev[jnp.asarray(bis, dtype=jnp.int32)]  # one gather
                    if self.use_variable_tokennum:
                        # TODO(synk): variable-size `crop` path yields ragged, per-box
                        # shapes — no static-shape Pallas equivalent; only roi_align
                        # path is kernelized.
                        raise NotImplementedError(
                            "use_variable_tokennum=True (ragged crop) not supported")
                    _croped, _used_bbox_n = self.roi_align(P, bbox_n)
                    group_out.append(_croped)
                    group_bbox.append(_used_bbox_n)
                # one concatenate + one gather instead of per-box device slicing
                stacked = jnp.concatenate(group_out, axis=0)          # [n, C, PH, PW]
                stacked_bbox = jnp.concatenate(group_bbox, axis=0)    # [n, 4]
                resort = jnp.asarray(np.argsort(idx_order), dtype=jnp.int32)
                stacked = jnp.take(stacked, resort, axis=0)
                stacked_bbox = jnp.take(stacked_bbox, resort, axis=0)
                croped = [stacked[j] for j in range(stacked.shape[0])]        # list API parity
                used_bbox_n = [stacked_bbox[j] for j in range(stacked_bbox.shape[0])]
            all_croped.append(croped)
            all_used_bbox_n.append(used_bbox_n)
        return all_croped, all_used_bbox_n


# ------------------------------ numpy reference ----------------------------- #

def _roi_align_numpy(P, bbox_n, pool_size):
    P = np.asarray(P, dtype=np.float32)
    C, H, W = P.shape
    PH, PW = pool_size
    outs = []
    for b in range(bbox_n.shape[0]):
        x1, y1, x2, y2 = np.asarray(bbox_n[b], dtype=np.float64)
        x1 *= W; x2 *= W; y1 *= H; y2 *= H
        bin_w = (x2 - x1) / PW
        bin_h = (y2 - y1) / PH
        xs = (x1 - 0.5) + (np.arange(PW) + 0.5) * bin_w
        ys = (y1 - 0.5) + (np.arange(PH) + 0.5) * bin_h

        def weights(s, N):
            ok = ((s >= -1.0) & (s <= N)).astype(np.float32)
            sc = np.clip(s, 0.0, N - 1.0)
            idx = np.arange(N)[None, :]
            return (np.maximum(0.0, 1.0 - np.abs(sc[:, None] - idx)).astype(np.float32)
                    * ok[:, None])

        wx = weights(xs, W)   # [PW, W]
        wy = weights(ys, H)   # [PH, H]
        outs.append(np.einsum('ph,chw,qw->cpq', wy, P, wx).astype(np.float32))
    return np.stack(outs)


# ---------------------------------- main ------------------------------------ #

if __name__ == "__main__":
    key = jax.random.PRNGKey(0)
    C = 4
    bn = 2
    pool_size = (8, 8)   # small pool for the demo (module default is (24, 24))
    cfg = {'use_variable_tokennum': False}
    layer = CropLayerPallas(cfg, max_token_num=784, pool_size=pool_size)

    # two-level feature pyramid per image (CHW)
    level_shapes = [(C, 32, 32), (C, 16, 16)]
    pyramid_list = []
    for i in range(bn):
        levels = []
        for (c, h, w) in level_shapes:
            key, sub = jax.random.split(key)
            levels.append(jax.random.normal(sub, (c, h, w), dtype=jnp.float32))
        pyramid_list.append(levels)

    # normalized [x1, y1, x2, y2] boxes; sizes chosen so different pyramid levels
    # (including the -1 fallback) get exercised.
    bboxes_list = [
        jnp.array([[0.10, 0.10, 0.80, 0.90],
                   [0.00, 0.00, 1.00, 1.00],
                   [0.20, 0.30, 0.40, 0.50]], dtype=jnp.float32),
        jnp.array([[0.05, 0.05, 0.95, 0.60],
                   [0.30, 0.10, 0.90, 0.95]], dtype=jnp.float32),
    ]

    all_croped, all_used_bbox_n = layer.forward(bboxes_list, pyramid_list)
    jax.block_until_ready([c for cl in all_croped for c in cl])

    # verify against a pure-numpy reference of the same forward semantics
    for i in range(bn):
        fm_area = np.array([p.shape[-2] * p.shape[-1] for p in pyramid_list[i]],
                           dtype=np.float64)
        bnp = np.asarray(bboxes_list[i])
        assert len(all_croped[i]) == bnp.shape[0]
        for bi in range(bnp.shape[0]):
            h = bnp[bi, 3] - bnp[bi, 1]
            w = bnp[bi, 2] - bnp[bi, 0]
            idx = _choose_crop_idx(h * w * fm_area,
                                   layer.max_token_num, layer.min_token_num)
            ref = _roi_align_numpy(pyramid_list[i][idx], bnp[bi:bi + 1], pool_size)[0]
            got = np.asarray(all_croped[i][bi])
            np.testing.assert_allclose(got, ref, rtol=1e-4, atol=1e-4)
            np.testing.assert_allclose(np.asarray(all_used_bbox_n[i][bi]), bnp[bi],
                                       rtol=0, atol=0)

    print("KERNEL_OK")
</pallas_src>

<mosaic_0001>
module attributes {stable_mosaic.version = 11 : i64} {
  func.func @_roi_align_kernel(%arg0: i32, %arg1: memref<1xi32, #tpu.memory_space<smem>>, %arg2: memref<1x32x64xf32, #tpu.memory_space<vmem>>, %arg3: memref<1x64x32xf32, #tpu.memory_space<vmem>>, %arg4: memref<128x32xf32, #tpu.memory_space<vmem>>, %arg5: memref<8x8x32xf32, #tpu.memory_space<vmem>>) attributes {dimension_semantics = [#tpu.dimension_semantics<parallel>], iteration_bounds = array<i64: 1>, scalar_prefetch = 1 : i64, scratch_operands = 0 : i64, tpu.core_type = #tpu.core_type<tc>, window_params = [{transform_indices = @transform_0, window_bounds = array<i64: 1, 32, 64>}, {transform_indices = @transform_1, window_bounds = array<i64: 1, 64, 32>}, {pipeline_mode = #tpu.pipeline_mode<synchronous>, transform_indices = @transform_2, window_bounds = array<i64: 128, 32>}, {transform_indices = @transform_3, window_bounds = array<i64: 8, 8, 32>}]} {
    %c8_i32 = arith.constant 8 : i32
    %0 = arith.muli %arg0, %c8_i32 : i32
    %c0 = arith.constant 0 : index
    %1 = memref.load %arg1[%c0] : memref<1xi32, #tpu.memory_space<smem>>
    %2 = arith.cmpi slt, %0, %1 : i32
    %3 = arith.extui %2 : i1 to i32
    %c0_i32 = arith.constant 0 : i32
    %4 = arith.cmpi ne, %3, %c0_i32 : i32
    scf.if %4 {
      %c0_0 = arith.constant 0 : index
      %c0_1 = arith.constant 0 : index
      %5 = vector.load %arg4[%c0_0, %c0_1] : memref<128x32xf32, #tpu.memory_space<vmem>>, vector<128x32xf32>
      %c0_2 = arith.constant 0 : index
      %c0_3 = arith.constant 0 : index
      %c0_4 = arith.constant 0 : index
      %6 = vector.load %arg2[%c0_2, %c0_3, %c0_4] : memref<1x32x64xf32, #tpu.memory_space<vmem>>, vector<1x32x64xf32>
      %7 = vector.shape_cast %6 : vector<1x32x64xf32> to vector<32x64xf32>
      %c0_5 = arith.constant 0 : index
      %c0_6 = arith.constant 0 : index
      %c0_7 = arith.constant 0 : index
      %8 = vector.load %arg3[%c0_5, %c0_6, %c0_7] : memref<1x64x32xf32, #tpu.memory_space<vmem>>, vector<1x64x32xf32>
      %9 = vector.shape_cast %8 : vector<1x64x32xf32> to vector<64x32xf32>
      %cst = arith.constant dense<0.000000e+00> : vector<128x64xf32>
      %10 = tpu.matmul %5, %7, %cst {dimension_numbers = #tpu.dot_dimension_numbers<[1], [0], [0], [1], [0, 0, 1, 1], [], []>} : vector<128x32xf32>, vector<32x64xf32>, vector<128x64xf32> -> vector<128x64xf32>
      %11 = vector.shape_cast %10 : vector<128x64xf32> to vector<4x32x8x8xf32>
      %12 = tpu.transpose %11, [1, 2, 0, 3] : vector<4x32x8x8xf32> -> vector<32x8x4x8xf32>
      %13 = vector.shape_cast %12 : vector<32x8x4x8xf32> to vector<32x256xf32>
      %14 = vector.extract_strided_slice %9 {offsets = [0, 0], sizes = [8, 32], strides = [1, 1]} : vector<64x32xf32> to vector<8x32xf32>
      %15 = vector.extract_strided_slice %13 {offsets = [0, 0], sizes = [32, 32], strides = [1, 1]} : vector<32x256xf32> to vector<32x32xf32>
      %cst_8 = arith.constant dense<0.000000e+00> : vector<8x32xf32>
      %16 = tpu.matmul %14, %15, %cst_8 {dimension_numbers = #tpu.dot_dimension_numbers<[1], [0], [0], [1], [0, 0, 1, 1], [], []>} : vector<8x32xf32>, vector<32x32xf32>, vector<8x32xf32> -> vector<8x32xf32>
      %c0_9 = arith.constant 0 : index
      %c0_10 = arith.constant 0 : index
      %c0_11 = arith.constant 0 : index
      %17 = vector.load %arg5[%c0_9, %c0_10, %c0_11] : memref<8x8x32xf32, #tpu.memory_space<vmem>>, vector<1x8x32xf32>
      %18 = vector.shape_cast %17 : vector<1x8x32xf32> to vector<8x32xf32>
      %19 = vector.shape_cast %16 : vector<8x32xf32> to vector<1x8x32xf32>
      tpu.vector_store %arg5[%c0_9, %c0_10, %c0_11], %19 {strides = array<i32>} : memref<8x8x32xf32, #tpu.memory_space<vmem>>, vector<1x8x32xf32>,
      %20 = vector.extract_strided_slice %9 {offsets = [8, 0], sizes = [8, 32], strides = [1, 1]} : vector<64x32xf32> to vector<8x32xf32>
      %21 = vector.extract_strided_slice %13 {offsets = [0, 32], sizes = [32, 32], strides = [1, 1]} : vector<32x256xf32> to vector<32x32xf32>
      %cst_12 = arith.constant dense<0.000000e+00> : vector<8x32xf32>
      %22 = tpu.matmul %20, %21, %cst_12 {dimension_numbers = #tpu.dot_dimension_numbers<[1], [0], [0], [1], [0, 0, 1, 1], [], []>} : vector<8x32xf32>, vector<32x32xf32>, vector<8x32xf32> -> vector<8x32xf32>
      %c1 = arith.constant 1 : index
      %c0_13 = arith.constant 0 : index
      %c0_14 = arith.constant 0 : index
      %23 = vector.load %arg5[%c1, %c0_13, %c0_14] : memref<8x8x32xf32, #tpu.memory_space<vmem>>, vector<1x8x32xf32>
      %24 = vector.shape_cast %23 : vector<1x8x32xf32> to vector<8x32xf32>
      %25 = vector.shape_cast %22 : vector<8x32xf32> to vector<1x8x32xf32>
      tpu.vector_store %arg5[%c1, %c0_13, %c0_14], %25 {strides = array<i32>} : memref<8x8x32xf32, #tpu.memory_space<vmem>>, vector<1x8x32xf32>,
      %26 = vector.extract_strided_slice %9 {offsets = [16, 0], sizes = [8, 32], strides = [1, 1]} : vector<64x32xf32> to vector<8x32xf32>
      %27 = vector.extract_strided_slice %13 {offsets = [0, 64], sizes = [32, 32], strides = [1, 1]} : vector<32x256xf32> to vector<32x32xf32>
      %cst_15 = arith.constant dense<0.000000e+00> : vector<8x32xf32>
      %28 = tpu.matmul %26, %27, %cst_15 {dimension_numbers = #tpu.dot_dimension_numbers<[1], [0], [0], [1], [0, 0, 1, 1], [], []>} : vector<8x32xf32>, vector<32x32xf32>, vector<8x32xf32> -> vector<8x32xf32>
      %c2 = arith.constant 2 : index
      %c0_16 = arith.constant 0 : index
      %c0_17 = arith.constant 0 : index
      %29 = vector.load %arg5[%c2, %c0_16, %c0_17] : memref<8x8x32xf32, #tpu.memory_space<vmem>>, vector<1x8x32xf32>
      %30 = vector.shape_cast %29 : vector<1x8x32xf32> to vector<8x32xf32>
      %31 = vector.shape_cast %28 : vector<8x32xf32> to vector<1x8x32xf32>
      tpu.vector_store %arg5[%c2, %c0_16, %c0_17], %31 {strides = array<i32>} : memref<8x8x32xf32, #tpu.memory_space<vmem>>, vector<1x8x32xf32>,
      %32 = vector.extract_strided_slice %9 {offsets = [24, 0], sizes = [8, 32], strides = [1, 1]} : vector<64x32xf32> to vector<8x32xf32>
      %33 = vector.extract_strided_slice %13 {offsets = [0, 96], sizes = [32, 32], strides = [1, 1]} : vector<32x256xf32> to vector<32x32xf32>
      %cst_18 = arith.constant dense<0.000000e+00> : vector<8x32xf32>
      %34 = tpu.matmul %32, %33, %cst_18 {dimension_numbers = #tpu.dot_dimension_numbers<[1], [0], [0], [1], [0, 0, 1, 1], [], []>} : vector<8x32xf32>, vector<32x32xf32>, vector<8x32xf32> -> vector<8x32xf32>
      %c3 = arith.constant 3 : index
      %c0_19 = arith.constant 0 : index
      %c0_20 = arith.constant 0 : index
      %35 = vector.load %arg5[%c3, %c0_19, %c0_20] : memref<8x8x32xf32, #tpu.memory_space<vmem>>, vector<1x8x32xf32>
      %36 = vector.shape_cast %35 : vector<1x8x32xf32> to vector<8x32xf32>
      %37 = vector.shape_cast %34 : vector<8x32xf32> to vector<1x8x32xf32>
      tpu.vector_store %arg5[%c3, %c0_19, %c0_20], %37 {strides = array<i32>} : memref<8x8x32xf32, #tpu.memory_space<vmem>>, vector<1x8x32xf32>,
      %38 = vector.extract_strided_slice %9 {offsets = [32, 0], sizes = [8, 32], strides = [1, 1]} : vector<64x32xf32> to vector<8x32xf32>
      %39 = vector.extract_strided_slice %13 {offsets = [0, 128], sizes = [32, 32], strides = [1, 1]} : vector<32x256xf32> to vector<32x32xf32>
      %cst_21 = arith.constant dense<0.000000e+00> : vector<8x32xf32>
      %40 = tpu.matmul %38, %39, %cst_21 {dimension_numbers = #tpu.dot_dimension_numbers<[1], [0], [0], [1], [0, 0, 1, 1], [], []>} : vector<8x32xf32>, vector<32x32xf32>, vector<8x32xf32> -> vector<8x32xf32>
      %c4 = arith.constant 4 : index
      %c0_22 = arith.constant 0 : index
      %c0_23 = arith.constant 0 : index
      %41 = vector.load %arg5[%c4, %c0_22, %c0_23] : memref<8x8x32xf32, #tpu.memory_space<vmem>>, vector<1x8x32xf32>
      %42 = vector.shape_cast %41 : vector<1x8x32xf32> to vector<8x32xf32>
      %43 = vector.shape_cast %40 : vector<8x32xf32> to vector<1x8x32xf32>
      tpu.vector_store %arg5[%c4, %c0_22, %c0_23], %43 {strides = array<i32>} : memref<8x8x32xf32, #tpu.memory_space<vmem>>, vector<1x8x32xf32>,
      %44 = vector.extract_strided_slice %9 {offsets = [40, 0], sizes = [8, 32], strides = [1, 1]} : vector<64x32xf32> to vector<8x32xf32>
      %45 = vector.extract_strided_slice %13 {offsets = [0, 160], sizes = [32, 32], strides = [1, 1]} : vector<32x256xf32> to vector<32x32xf32>
      %cst_24 = arith.constant dense<0.000000e+00> : vector<8x32xf32>
      %46 = tpu.matmul %44, %45, %cst_24 {dimension_numbers = #tpu.dot_dimension_numbers<[1], [0], [0], [1], [0, 0, 1, 1], [], []>} : vector<8x32xf32>, vector<32x32xf32>, vector<8x32xf32> -> vector<8x32xf32>
      %c5 = arith.constant 5 : index
      %c0_25 = arith.constant 0 : index
      %c0_26 = arith.constant 0 : index
      %47 = vector.load %arg5[%c5, %c0_25, %c0_26] : memref<8x8x32xf32, #tpu.memory_space<vmem>>, vector<1x8x32xf32>
      %48 = vector.shape_cast %47 : vector<1x8x32xf32> to vector<8x32xf32>
      %49 = vector.shape_cast %46 : vector<8x32xf32> to vector<1x8x32xf32>
      tpu.vector_store %arg5[%c5, %c0_25, %c0_26], %49 {strides = array<i32>} : memref<8x8x32xf32, #tpu.memory_space<vmem>>, vector<1x8x32xf32>,
      %50 = vector.extract_strided_slice %9 {offsets = [48, 0], sizes = [8, 32], strides = [1, 1]} : vector<64x32xf32> to vector<8x32xf32>
      %51 = vector.extract_strided_slice %13 {offsets = [0, 192], sizes = [32, 32], strides = [1, 1]} : vector<32x256xf32> to vector<32x32xf32>
      %cst_27 = arith.constant dense<0.000000e+00> : vector<8x32xf32>
      %52 = tpu.matmul %50, %51, %cst_27 {dimension_numbers = #tpu.dot_dimension_numbers<[1], [0], [0], [1], [0, 0, 1, 1], [], []>} : vector<8x32xf32>, vector<32x32xf32>, vector<8x32xf32> -> vector<8x32xf32>
      %c6 = arith.constant 6 : index
      %c0_28 = arith.constant 0 : index
      %c0_29 = arith.constant 0 : index
      %53 = vector.load %arg5[%c6, %c0_28, %c0_29] : memref<8x8x32xf32, #tpu.memory_space<vmem>>, vector<1x8x32xf32>
      %54 = vector.shape_cast %53 : vector<1x8x32xf32> to vector<8x32xf32>
      %55 = vector.shape_cast %52 : vector<8x32xf32> to vector<1x8x32xf32>
      tpu.vector_store %arg5[%c6, %c0_28, %c0_29], %55 {strides = array<i32>} : memref<8x8x32xf32, #tpu.memory_space<vmem>>, vector<1x8x32xf32>,
      %56 = vector.extract_strided_slice %9 {offsets = [56, 0], sizes = [8, 32], strides = [1, 1]} : vector<64x32xf32> to vector<8x32xf32>
      %57 = vector.extract_strided_slice %13 {offsets = [0, 224], sizes = [32, 32], strides = [1, 1]} : vector<32x256xf32> to vector<32x32xf32>
      %cst_30 = arith.constant dense<0.000000e+00> : vector<8x32xf32>
      %58 = tpu.matmul %56, %57, %cst_30 {dimension_numbers = #tpu.dot_dimension_numbers<[1], [0], [0], [1], [0, 0, 1, 1], [], []>} : vector<8x32xf32>, vector<32x32xf32>, vector<8x32xf32> -> vector<8x32xf32>
      %c7 = arith.constant 7 : index
      %c0_31 = arith.constant 0 : index
      %c0_32 = arith.constant 0 : index
      %59 = vector.load %arg5[%c7, %c0_31, %c0_32] : memref<8x8x32xf32, #tpu.memory_space<vmem>>, vector<1x8x32xf32>
      %60 = vector.shape_cast %59 : vector<1x8x32xf32> to vector<8x32xf32>
      %61 = vector.shape_cast %58 : vector<8x32xf32> to vector<1x8x32xf32>
      tpu.vector_store %arg5[%c7, %c0_31, %c0_32], %61 {strides = array<i32>} : memref<8x8x32xf32, #tpu.memory_space<vmem>>, vector<1x8x32xf32>,
    } else {
    }
    return
  }
  func.func @transform_0(%arg0: i32, %arg1: memref<1xi32, #tpu.memory_space<smem>>) -> (i32, i32, i32) {
    %c0_i32 = arith.constant 0 : i32
    %c0_i32_0 = arith.constant 0 : i32
    %c0_i32_1 = arith.constant 0 : i32
    return %arg0, %c0_i32, %c0_i32_0 : i32, i32, i32
  }
  func.func @transform_1(%arg0: i32, %arg1: memref<1xi32, #tpu.memory_space<smem>>) -> (i32, i32, i32) {
    %c0_i32 = arith.constant 0 : i32
    %c0_i32_0 = arith.constant 0 : i32
    %c0_i32_1 = arith.constant 0 : i32
    return %arg0, %c0_i32, %c0_i32_0 : i32, i32, i32
  }
  func.func @transform_2(%arg0: i32, %arg1: memref<1xi32, #tpu.memory_space<smem>>) -> (i32, i32) {
    %c0_i32 = arith.constant 0 : i32
    %c0_i32_0 = arith.constant 0 : i32
    %c0_i32_1 = arith.constant 0 : i32
    return %c0_i32, %c0_i32_0 : i32, i32
  }
  func.func @transform_3(%arg0: i32, %arg1: memref<1xi32, #tpu.memory_space<smem>>) -> (i32, i32, i32) {
    %c0_i32 = arith.constant 0 : i32
    %c0_i32_0 = arith.constant 0 : i32
    %c0_i32_1 = arith.constant 0 : i32
    return %arg0, %c0_i32, %c0_i32_0 : i32, i32, i32
  }
}

module attributes {stable_mosaic.version = 11 : i64} {
  func.func @_roi_align_kernel(%arg0: i32, %arg1: memref<1xi32, #tpu.memory_space<smem>>, %arg2: memref<1x32x64xf32, #tpu.memory_space<vmem>>, %arg3: memref<1x64x32xf32, #tpu.memory_space<vmem>>, %arg4: memref<128x32xf32, #tpu.memory_space<vmem>>, %arg5: memref<8x8x32xf32, #tpu.memory_space<vmem>>) attributes {dimension_semantics = [#tpu.dimension_semantics<parallel>], iteration_bounds = array<i64: 1>, scalar_prefetch = 1 : i64, scratch_operands = 0 : i64, tpu.core_type = #tpu.core_type<tc>, window_params = [{transform_indices = @transform_0, window_bounds = array<i64: 1, 32, 64>}, {transform_indices = @transform_1, window_bounds = array<i64: 1, 64, 32>}, {pipeline_mode = #tpu.pipeline_mode<synchronous>, transform_indices = @transform_2, window_bounds = array<i64: 128, 32>}, {transform_indices = @transform_3, window_bounds = array<i64: 8, 8, 32>}]} {
    %c8_i32 = arith.constant 8 : i32
    %0 = arith.muli %arg0, %c8_i32 : i32
    %c0 = arith.constant 0 : index
    %1 = memref.load %arg1[%c0] : memref<1xi32, #tpu.memory_space<smem>>
    %2 = arith.cmpi slt, %0, %1 : i32
    %3 = arith.extui %2 : i1 to i32
    %c0_i32 = arith.constant 0 : i32
    %4 = arith.cmpi ne, %3, %c0_i32 : i32
    scf.if %4 {
      %c0_0 = arith.constant 0 : index
      %c0_1 = arith.constant 0 : index
      %5 = vector.load %arg4[%c0_0, %c0_1] : memref<128x32xf32, #tpu.memory_space<vmem>>, vector<128x32xf32>
      %c0_2 = arith.constant 0 : index
      %c0_3 = arith.constant 0 : index
      %c0_4 = arith.constant 0 : index
      %6 = vector.load %arg2[%c0_2, %c0_3, %c0_4] : memref<1x32x64xf32, #tpu.memory_space<vmem>>, vector<1x32x64xf32>
      %7 = vector.shape_cast %6 : vector<1x32x64xf32> to vector<32x64xf32>
      %c0_5 = arith.constant 0 : index
      %c0_6 = arith.constant 0 : index
      %c0_7 = arith.constant 0 : index
      %8 = vector.load %arg3[%c0_5, %c0_6, %c0_7] : memref<1x64x32xf32, #tpu.memory_space<vmem>>, vector<1x64x32xf32>
      %9 = vector.shape_cast %8 : vector<1x64x32xf32> to vector<64x32xf32>
      %cst = arith.constant dense<0.000000e+00> : vector<128x64xf32>
      %10 = tpu.matmul %5, %7, %cst {dimension_numbers = #tpu.dot_dimension_numbers<[1], [0], [0], [1], [0, 0, 1, 1], [], []>} : vector<128x32xf32>, vector<32x64xf32>, vector<128x64xf32> -> vector<128x64xf32>
      %11 = vector.shape_cast %10 : vector<128x64xf32> to vector<4x32x64xf32>
      %12 = vector.extract_strided_slice %11 {offsets = [0, 0, 0], sizes = [4, 32, 8], strides = [1, 1, 1]} : vector<4x32x64xf32> to vector<4x32x8xf32>
      %13 = tpu.transpose %12, [1, 0, 2] : vector<4x32x8xf32> -> vector<32x4x8xf32>
      %14 = vector.shape_cast %13 : vector<32x4x8xf32> to vector<32x32xf32>
      %15 = vector.extract_strided_slice %9 {offsets = [0, 0], sizes = [8, 32], strides = [1, 1]} : vector<64x32xf32> to vector<8x32xf32>
      %cst_8 = arith.constant dense<0.000000e+00> : vector<8x32xf32>
      %16 = tpu.matmul %15, %14, %cst_8 {dimension_numbers = #tpu.dot_dimension_numbers<[1], [0], [0], [1], [0, 0, 1, 1], [], []>} : vector<8x32xf32>, vector<32x32xf32>, vector<8x32xf32> -> vector<8x32xf32>
      %c0_9 = arith.constant 0 : index
      %c0_10 = arith.constant 0 : index
      %c0_11 = arith.constant 0 : index
      %17 = vector.load %arg5[%c0_9, %c0_10, %c0_11] : memref<8x8x32xf32, #tpu.memory_space<vmem>>, vector<1x8x32xf32>
      %18 = vector.shape_cast %17 : vector<1x8x32xf32> to vector<8x32xf32>
      %19 = vector.shape_cast %16 : vector<8x32xf32> to vector<1x8x32xf32>
      tpu.vector_store %arg5[%c0_9, %c0_10, %c0_11], %19 {strides = array<i32>} : memref<8x8x32xf32, #tpu.memory_space<vmem>>, vector<1x8x32xf32>,
      %20 = vector.extract_strided_slice %11 {offsets = [0, 0, 8], sizes = [4, 32, 8], strides = [1, 1, 1]} : vector<4x32x64xf32> to vector<4x32x8xf32>
      %21 = tpu.transpose %20, [1, 0, 2] : vector<4x32x8xf32> -> vector<32x4x8xf32>
      %22 = vector.shape_cast %21 : vector<32x4x8xf32> to vector<32x32xf32>
      %23 = vector.extract_strided_slice %9 {offsets = [8, 0], sizes = [8, 32], strides = [1, 1]} : vector<64x32xf32> to vector<8x32xf32>
      %cst_12 = arith.constant dense<0.000000e+00> : vector<8x32xf32>
      %24 = tpu.matmul %23, %22, %cst_12 {dimension_numbers = #tpu.dot_dimension_numbers<[1], [0], [0], [1], [0, 0, 1, 1], [], []>} : vector<8x32xf32>, vector<32x32xf32>, vector<8x32xf32> -> vector<8x32xf32>
      %c1 = arith.constant 1 : index
      %c0_13 = arith.constant 0 : index
      %c0_14 = arith.constant 0 : index
      %25 = vector.load %arg5[%c1, %c0_13, %c0_14] : memref<8x8x32xf32, #tpu.memory_space<vmem>>, vector<1x8x32xf32>
      %26 = vector.shape_cast %25 : vector<1x8x32xf32> to vector<8x32xf32>
      %27 = vector.shape_cast %24 : vector<8x32xf32> to vector<1x8x32xf32>
      tpu.vector_store %arg5[%c1, %c0_13, %c0_14], %27 {strides = array<i32>} : memref<8x8x32xf32, #tpu.memory_space<vmem>>, vector<1x8x32xf32>,
      %28 = vector.extract_strided_slice %11 {offsets = [0, 0, 16], sizes = [4, 32, 8], strides = [1, 1, 1]} : vector<4x32x64xf32> to vector<4x32x8xf32>
      %29 = tpu.transpose %28, [1, 0, 2] : vector<4x32x8xf32> -> vector<32x4x8xf32>
      %30 = vector.shape_cast %29 : vector<32x4x8xf32> to vector<32x32xf32>
      %31 = vector.extract_strided_slice %9 {offsets = [16, 0], sizes = [8, 32], strides = [1, 1]} : vector<64x32xf32> to vector<8x32xf32>
      %cst_15 = arith.constant dense<0.000000e+00> : vector<8x32xf32>
      %32 = tpu.matmul %31, %30, %cst_15 {dimension_numbers = #tpu.dot_dimension_numbers<[1], [0], [0], [1], [0, 0, 1, 1], [], []>} : vector<8x32xf32>, vector<32x32xf32>, vector<8x32xf32> -> vector<8x32xf32>
      %c2 = arith.constant 2 : index
      %c0_16 = arith.constant 0 : index
      %c0_17 = arith.constant 0 : index
      %33 = vector.load %arg5[%c2, %c0_16, %c0_17] : memref<8x8x32xf32, #tpu.memory_space<vmem>>, vector<1x8x32xf32>
      %34 = vector.shape_cast %33 : vector<1x8x32xf32> to vector<8x32xf32>
      %35 = vector.shape_cast %32 : vector<8x32xf32> to vector<1x8x32xf32>
      tpu.vector_store %arg5[%c2, %c0_16, %c0_17], %35 {strides = array<i32>} : memref<8x8x32xf32, #tpu.memory_space<vmem>>, vector<1x8x32xf32>,
      %36 = vector.extract_strided_slice %11 {offsets = [0, 0, 24], sizes = [4, 32, 8], strides = [1, 1, 1]} : vector<4x32x64xf32> to vector<4x32x8xf32>
      %37 = tpu.transpose %36, [1, 0, 2] : vector<4x32x8xf32> -> vector<32x4x8xf32>
      %38 = vector.shape_cast %37 : vector<32x4x8xf32> to vector<32x32xf32>
      %39 = vector.extract_strided_slice %9 {offsets = [24, 0], sizes = [8, 32], strides = [1, 1]} : vector<64x32xf32> to vector<8x32xf32>
      %cst_18 = arith.constant dense<0.000000e+00> : vector<8x32xf32>
      %40 = tpu.matmul %39, %38, %cst_18 {dimension_numbers = #tpu.dot_dimension_numbers<[1], [0], [0], [1], [0, 0, 1, 1], [], []>} : vector<8x32xf32>, vector<32x32xf32>, vector<8x32xf32> -> vector<8x32xf32>
      %c3 = arith.constant 3 : index
      %c0_19 = arith.constant 0 : index
      %c0_20 = arith.constant 0 : index
      %41 = vector.load %arg5[%c3, %c0_19, %c0_20] : memref<8x8x32xf32, #tpu.memory_space<vmem>>, vector<1x8x32xf32>
      %42 = vector.shape_cast %41 : vector<1x8x32xf32> to vector<8x32xf32>
      %43 = vector.shape_cast %40 : vector<8x32xf32> to vector<1x8x32xf32>
      tpu.vector_store %arg5[%c3, %c0_19, %c0_20], %43 {strides = array<i32>} : memref<8x8x32xf32, #tpu.memory_space<vmem>>, vector<1x8x32xf32>,
      %44 = vector.extract_strided_slice %11 {offsets = [0, 0, 32], sizes = [4, 32, 8], strides = [1, 1, 1]} : vector<4x32x64xf32> to vector<4x32x8xf32>
      %45 = tpu.transpose %44, [1, 0, 2] : vector<4x32x8xf32> -> vector<32x4x8xf32>
      %46 = vector.shape_cast %45 : vector<32x4x8xf32> to vector<32x32xf32>
      %47 = vector.extract_strided_slice %9 {offsets = [32, 0], sizes = [8, 32], strides = [1, 1]} : vector<64x32xf32> to vector<8x32xf32>
      %cst_21 = arith.constant dense<0.000000e+00> : vector<8x32xf32>
      %48 = tpu.matmul %47, %46, %cst_21 {dimension_numbers = #tpu.dot_dimension_numbers<[1], [0], [0], [1], [0, 0, 1, 1], [], []>} : vector<8x32xf32>, vector<32x32xf32>, vector<8x32xf32> -> vector<8x32xf32>
      %c4 = arith.constant 4 : index
      %c0_22 = arith.constant 0 : index
      %c0_23 = arith.constant 0 : index
      %49 = vector.load %arg5[%c4, %c0_22, %c0_23] : memref<8x8x32xf32, #tpu.memory_space<vmem>>, vector<1x8x32xf32>
      %50 = vector.shape_cast %49 : vector<1x8x32xf32> to vector<8x32xf32>
      %51 = vector.shape_cast %48 : vector<8x32xf32> to vector<1x8x32xf32>
      tpu.vector_store %arg5[%c4, %c0_22, %c0_23], %51 {strides = array<i32>} : memref<8x8x32xf32, #tpu.memory_space<vmem>>, vector<1x8x32xf32>,
      %52 = vector.extract_strided_slice %11 {offsets = [0, 0, 40], sizes = [4, 32, 8], strides = [1, 1, 1]} : vector<4x32x64xf32> to vector<4x32x8xf32>
      %53 = tpu.transpose %52, [1, 0, 2] : vector<4x32x8xf32> -> vector<32x4x8xf32>
      %54 = vector.shape_cast %53 : vector<32x4x8xf32> to vector<32x32xf32>
      %55 = vector.extract_strided_slice %9 {offsets = [40, 0], sizes = [8, 32], strides = [1, 1]} : vector<64x32xf32> to vector<8x32xf32>
      %cst_24 = arith.constant dense<0.000000e+00> : vector<8x32xf32>
      %56 = tpu.matmul %55, %54, %cst_24 {dimension_numbers = #tpu.dot_dimension_numbers<[1], [0], [0], [1], [0, 0, 1, 1], [], []>} : vector<8x32xf32>, vector<32x32xf32>, vector<8x32xf32> -> vector<8x32xf32>
      %c5 = arith.constant 5 : index
      %c0_25 = arith.constant 0 : index
      %c0_26 = arith.constant 0 : index
      %57 = vector.load %arg5[%c5, %c0_25, %c0_26] : memref<8x8x32xf32, #tpu.memory_space<vmem>>, vector<1x8x32xf32>
      %58 = vector.shape_cast %57 : vector<1x8x32xf32> to vector<8x32xf32>
      %59 = vector.shape_cast %56 : vector<8x32xf32> to vector<1x8x32xf32>
      tpu.vector_store %arg5[%c5, %c0_25, %c0_26], %59 {strides = array<i32>} : memref<8x8x32xf32, #tpu.memory_space<vmem>>, vector<1x8x32xf32>,
      %60 = vector.extract_strided_slice %11 {offsets = [0, 0, 48], sizes = [4, 32, 8], strides = [1, 1, 1]} : vector<4x32x64xf32> to vector<4x32x8xf32>
      %61 = tpu.transpose %60, [1, 0, 2] : vector<4x32x8xf32> -> vector<32x4x8xf32>
      %62 = vector.shape_cast %61 : vector<32x4x8xf32> to vector<32x32xf32>
      %63 = vector.extract_strided_slice %9 {offsets = [48, 0], sizes = [8, 32], strides = [1, 1]} : vector<64x32xf32> to vector<8x32xf32>
      %cst_27 = arith.constant dense<0.000000e+00> : vector<8x32xf32>
      %64 = tpu.matmul %63, %62, %cst_27 {dimension_numbers = #tpu.dot_dimension_numbers<[1], [0], [0], [1], [0, 0, 1, 1], [], []>} : vector<8x32xf32>, vector<32x32xf32>, vector<8x32xf32> -> vector<8x32xf32>
      %c6 = arith.constant 6 : index
      %c0_28 = arith.constant 0 : index
      %c0_29 = arith.constant 0 : index
      %65 = vector.load %arg5[%c6, %c0_28, %c0_29] : memref<8x8x32xf32, #tpu.memory_space<vmem>>, vector<1x8x32xf32>
      %66 = vector.shape_cast %65 : vector<1x8x32xf32> to vector<8x32xf32>
      %67 = vector.shape_cast %64 : vector<8x32xf32> to vector<1x8x32xf32>
      tpu.vector_store %arg5[%c6, %c0_28, %c0_29], %67 {strides = array<i32>} : memref<8x8x32xf32, #tpu.memory_space<vmem>>, vector<1x8x32xf32>,
      %68 = vector.extract_strided_slice %11 {offsets = [0, 0, 56], sizes = [4, 32, 8], strides = [1, 1, 1]} : vector<4x32x64xf32> to vector<4x32x8xf32>
      %69 = tpu.transpose %68, [1, 0, 2] : vector<4x32x8xf32> -> vector<32x4x8xf32>
      %70 = vector.shape_cast %69 : vector<32x4x8xf32> to vector<32x32xf32>
      %71 = vector.extract_strided_slice %9 {offsets = [56, 0], sizes = [8, 32], strides = [1, 1]} : vector<64x32xf32> to vector<8x32xf32>
      %cst_30 = arith.constant dense<0.000000e+00> : vector<8x32xf32>
      %72 = tpu.matmul %71, %70, %cst_30 {dimension_numbers = #tpu.dot_dimension_numbers<[1], [0], [0], [1], [0, 0, 1, 1], [], []>} : vector<8x32xf32>, vector<32x32xf32>, vector<8x32xf32> -> vector<8x32xf32>
      %c7 = arith.constant 7 : index
      %c0_31 = arith.constant 0 : index
      %c0_32 = arith.constant 0 : index
      %73 = vector.load %arg5[%c7, %c0_31, %c0_32] : memref<8x8x32xf32, #tpu.memory_space<vmem>>, vector<1x8x32xf32>
      %74 = vector.shape_cast %73 : vector<1x8x32xf32> to vector<8x32xf32>
      %75 = vector.shape_cast %72 : vector<8x32xf32> to vector<1x8x32xf32>
      tpu.vector_store %arg5[%c7, %c0_31, %c0_32], %75 {strides = array<i32>} : memref<8x8x32xf32, #tpu.memory_space<vmem>>, vector<1x8x32xf32>,
    } else {
    }
    return
  }
  func.func @transform_0(%arg0: i32, %arg1: memref<1xi32, #tpu.memory_space<smem>>) -> (i32, i32, i32) {
    %c0_i32 = arith.constant 0 : i32
    %c0_i32_0 = arith.constant 0 : i32
    %c0_i32_1 = arith.constant 0 : i32
    return %arg0, %c0_i32, %c0_i32_0 : i32, i32, i32
  }
  func.func @transform_1(%arg0: i32, %arg1: memref<1xi32, #tpu.memory_space<smem>>) -> (i32, i32, i32) {
    %c0_i32 = arith.constant 0 : i32
    %c0_i32_0 = arith.constant 0 : i32
    %c0_i32_1 = arith.constant 0 : i32
    return %arg0, %c0_i32, %c0_i32_0 : i32, i32, i32
  }
  func.func @transform_2(%arg0: i32, %arg1: memref<1xi32, #tpu.memory_space<smem>>) -> (i32, i32) {
    %c0_i32 = arith.constant 0 : i32
    %c0_i32_0 = arith.constant 0 : i32
    %c0_i32_1 = arith.constant 0 : i32
    return %c0_i32, %c0_i32_0 : i32, i32
  }
  func.func @transform_3(%arg0: i32, %arg1: memref<1xi32, #tpu.memory_space<smem>>) -> (i32, i32, i32) {
    %c0_i32 = arith.constant 0 : i32
    %c0_i32_0 = arith.constant 0 : i32
    %c0_i32_1 = arith.constant 0 : i32
    return %arg0, %c0_i32, %c0_i32_0 : i32, i32, i32
  }
}

</mosaic_0001>

<bundles_post_ra>
// kernel: tpu_custom_call.1
= control target key start
LH: loop header
LB: loop body
LE: loop exit
PB: predicated region body
PF: predicated region fallthrough
CT: control target
= control target key end

     0   :  { %10 = vsyncpa [#allocation5], 0  ;;  %s9573_s0 = inlined_call_operand.<no memory space> [shape: s32[1], index: 0, kind: input, shape index: {}]   ;;  %s9574_s1 = inlined_call_operand.vmem [shape: f32[1,32,64], index: 1, kind: input, shape index: {}]   ;;  %s9575_s2 = inlined_call_operand.vmem [shape: f32[1,64,32], index: 2, kind: input, shape index: {}]   ;;  %s9576_s3 = inlined_call_operand.vmem [shape: f32[128,32], index: 3, kind: input, shape index: {}]   ;;  %s9577_s4 = inlined_call_operand.hbm [shape: f32[8,8,32], index: 4, kind: output, shape index: {}]  }
   0x1   :  { %p6048_p0 = scmp.le.s32.totalorder %s9573_s0, 0 }
   0x3   :  { %22 = sbr.rel (%p6048_p0) target bundleno = 1094 (0x446), region = 17 }
   0x8   :  { %v42_v0 = vld [vmem:[%s9574_s1 + $0x18] sm:$0xff]  ;;  %v41_v1 = vld [vmem:[%s9574_s1 + $0x10] sm:$0xff]  ;;  %vm51_vm0 = vcmask 261120   ;;  %v23_v2 = vld [vmem:[%s9576_s3] sm:$0xff]  ;;  %s6356_s28 = smov 112   ;;  %s6357_s29 = smov 120   ;;  %v250_v30 = vlaneseq }
   0x9   :  { %6197 = vmatprep.subr.mxu0 %v42_v0  ;;  %v40_v3 = vld [vmem:[%s9574_s1 + $0x8] sm:$0xff]  ;;  %6205 = vmatprep.mubr.msk.f32.mxu0 %vm51_vm0, %v23_v2  ;;  %v39_v4 = vld [vmem:[%s9574_s1] sm:$0xff]  ;;  %v25_v6 = vld [vmem:[%s9576_s3 + $0x10] sm:$0xff]  ;;  %s6358_s30 = smov 104   ;;  %s6360_s5 = smov 88   ;;  %vm837_vm1 = vcmask 64512  }
   0xa   :  { %6198 = vmatpush3.msra.mxu0 %v42_v0  ;;  %v24_v5 = vld [vmem:[%s9576_s3 + $0x8] sm:$0xff]  ;;  %v26_v7 = vld [vmem:[%s9576_s3 + $0x18] sm:$0xff]  ;;  %v27_v8 = vld [vmem:[%s9576_s3 + $0x20] sm:$0xff]  ;;  %v6361_v28 = vmov 1983009808   ;;  %s6362_s1 = smov 80  }
   0xb   :  { %6199 = vmatprep.subr.mxu0 %v41_v1  ;;  %v28_v9 = vld [vmem:[%s9576_s3 + $0x28] sm:$0xff]  ;;  %v29_v10 = vld [vmem:[%s9576_s3 + $0x30] sm:$0xff]  ;;  %v30_v11 = vld [vmem:[%s9576_s3 + $0x38] sm:$0xff]  ;;  %v248_v29 = vunpack.c.l.s4 %v6361_v28  ;;  %v251_v34 = vshrl.u32 %v250_v30, 7  ;;  %v6363_v35 = vmov 1934713408  }
   0xc   :  { %6200 = vmatpush3.msra.mxu0 %v41_v1  ;;  %v31_v12 = vld [vmem:[%s9576_s3 + $0x40] sm:$0xff]  ;;  %v32_v13 = vld [vmem:[%s9576_s3 + $0x48] sm:$0xff]  ;;  %v33_v14 = vld [vmem:[%s9576_s3 + $0x50] sm:$0xff]  ;;  %v280_v36 = vunpack.c.l.s4 %v6363_v35  ;;  %s6364_s6 = smov 72   ;;  %s6365_s7 = smov 8   ;;  %vm842_vm2 = vcmask 130048  }
   0xd   :  { %6201 = vmatprep.subr.mxu0 %v40_v3  ;;  %v34_v15 = vld [vmem:[%s9576_s3 + $0x58] sm:$0xff]  ;;  %v35_v16 = vld [vmem:[%s9576_s3 + $0x60] sm:$0xff]  ;;  %v36_v17 = vld [vmem:[%s9576_s3 + $0x68] sm:$0xff]  ;;  %v249_v33 = vunpack.c.0.s8 %v248_v29  ;;  %s6366_s8 = smov 16   ;;  %s6367_s9 = smov 24   ;;  %vm847_vm3 = vcmask 195584  }
   0xe   :  { %6202 = vmatpush3.msra.mxu0 %v40_v3  ;;  %v37_v18 = vld [vmem:[%s9576_s3 + $0x70] sm:$0xff]  ;;  %v38_v19 = vld [vmem:[%s9576_s3 + $0x78] sm:$0xff]  ;;  %s6359_s3 = smov 96   ;;  %v281_v40 = vunpack.c.0.s8 %v280_v36  ;;  %vm6369_vm4 = vmmov 0  }
   0xf   :  { %6203 = vmatprep.subr.mxu0 %v39_v4  ;;  %v6516_v39 = vsub.s32 %v249_v33, %v251_v34 }
  0x10   :  { %6204 = vmatpush3.msra.mxu0 %v39_v4  ;;  %v6536_v49 = vsub.s32 %v281_v40, %v251_v34 }
  0x11   :  { %6206 = vmatmul.mubr.msk.f32.vlgmr.msra.gmra.mxu0 %vm51_vm0, %v24_v5 }
  0x12   :  { %6208 = vmatprep.mubr.msk.f32.mxu0 %vm51_vm0, %v25_v6 }
  0x15   :  { %6209 = vmatmul.mubr.msk.f32.gmra.mxu0 %vm51_vm0, %v26_v7 }
  0x16   :  { %6211 = vmatprep.mubr.msk.f32.mxu0 %vm51_vm0, %v27_v8 }
  0x19   :  { %6212 = vmatmul.mubr.msk.f32.gmra.mxu0 %vm51_vm0, %v28_v9 }
  0x1a   :  { %6214 = vmatprep.mubr.msk.f32.mxu0 %vm51_vm0, %v29_v10 }
  0x1d   :  { %6215 = vmatmul.mubr.msk.f32.gmra.mxu0 %vm51_vm0, %v30_v11 }
  0x1e   :  { %6217 = vmatprep.mubr.msk.f32.mxu0 %vm51_vm0, %v31_v12 }
  0x21   :  { %6218 = vmatmul.mubr.msk.f32.gmra.mxu0 %vm51_vm0, %v32_v13 }
  0x22   :  { %6220 = vmatprep.mubr.msk.f32.mxu0 %vm51_vm0, %v33_v14 }
  0x25   :  { %6221 = vmatmul.mubr.msk.f32.gmra.mxu0 %vm51_vm0, %v34_v15 }
  0x26   :  { %6223 = vmatprep.mubr.msk.f32.mxu0 %vm51_vm0, %v35_v16 }
  0x29   :  { %6224 = vmatmul.mubr.msk.f32.gmra.mxu0 %vm51_vm0, %v36_v17 }
  0x2a   :  { %6226 = vmatprep.mubr.msk.f32.mxu0 %vm51_vm0, %v37_v18 }
  0x2d   :  { %6227 = vmatmul.mubr.msk.f32.gmra.mxu0 %vm51_vm0, %v38_v19 }
  0xd1   :  { %v6207_v20 = vpop.f32.mrf.mxu0 }
  0xd2   :  { %1671 = vrot.lane.b32.xlu0 %v6207_v20, %s6356_s28  ;;  %944 = vrot.lane.b32.xlu1 %v6207_v20, %s6357_s29 }
  0xd3   :  { %v6479_v21 = vpop.f32.mrf.mxu0 }
  0xd5   :  { %v6481_v22 = vpop.f32.mrf.mxu0 }
  0xd6   :  { %2398 = vrot.lane.b32.xlu0 %v6207_v20, %s6358_s30  ;;  %948 = vrot.lane.b32.xlu1 %v6481_v22, %s6357_s29 }
  0xd7   :  { %v6486_v23 = vpop.f32.mrf.mxu0 }
  0xd9   :  { %v6488_v24 = vpop.f32.mrf.mxu0 }
  0xda   :  { %3125 = vrot.lane.b32.xlu0 %v6207_v20, %s6359_s3  ;;  %952 = vrot.lane.b32.xlu1 %v6488_v24, %s6357_s29 }
  0xdb   :  { %v6493_v25 = vpop.f32.mrf.mxu0 }
  0xdd   :  { %v6495_v26 = vpop.f32.mrf.mxu0 }
  0xde   :  { %3852 = vrot.lane.b32.xlu0 %v6207_v20, %s6360_s5  ;;  %1679 = vrot.lane.b32.xlu1 %v6488_v24, %s6356_s28 }
  0xdf   :  { %v6500_v27 = vpop.f32.mrf.mxu0 }
  0xe1   :  { %v6502_v31 = vpop.f32.mrf.mxu0 }
  0xe2   :  { %4579 = vrot.lane.b32.xlu0 %v6207_v20, %s6362_s1  ;;  %2406 = vrot.lane.b32.xlu1 %v6488_v24, %s6358_s30  ;;  %v313_v41 = vcombine.low %v6207_v20, %v6502_v31  ;;  %v314_v42 = vcombine.high %v6207_v20, %v6502_v31 }
  0xe3   :  { %v6507_v32 = vpop.f32.mrf.mxu0 }
  0xe4   :  { %v245_v44 = vcombine.low %v6479_v21, %v6507_v32  ;;  %v246_v45 = vcombine.high %v6479_v21, %v6507_v32  ;;  %v321_v50 = vrot.slane %v313_v41, %v6516_v39  ;;  %v328_v51 = vrot.slane %v314_v42, %v6516_v39 }
  0xe5   :  { %v6509_v37 = vpop.f32.mrf.mxu0 }
  0xe6   :  { %5306 = vrot.lane.b32.xlu0 %v6207_v20, %s6364_s6  ;;  %3133 = vrot.lane.b32.xlu1 %v6488_v24, %s6359_s3  ;;  %v253_v56 = vrot.slane %v245_v44, %v6516_v39  ;;  %v260_v57 = vrot.slane %v246_v45, %v6516_v39  ;;  %v449_v0 = vcombine.low %v6481_v22, %v6509_v37 }
  0xe7   :  { %v6514_v38 = vpop.f32.mrf.mxu0  ;;  %v450_v4 = vcombine.high %v6481_v22, %v6509_v37 }
  0xe8   :  { %v457_v29 = vrot.slane %v449_v0, %v6516_v39 }
  0xe9   :  { %v6520_v43 = vpop.f32.mrf.mxu0 }
  0xea   :  { %942 = vrot.lane.b32.xlu0 %v6479_v21, %s6357_s29  ;;  %3860 = vrot.lane.b32.xlu1 %v6488_v24, %s6360_s5  ;;  %v329_v46 = vcombine.low %v6488_v24, %v6520_v43  ;;  %v330_v47 = vcombine.high %v6488_v24, %v6520_v43 }
  0xeb   :  { %v6534_v48 = vpop.f32.mrf.mxu0 }
  0xec   :  { %v337_v52 = vrot.slane %v329_v46, %v6516_v39  ;;  %v344_v53 = vrot.slane %v330_v47, %v6516_v39  ;;  %v261_v54 = vcombine.low %v6493_v25, %v6534_v48  ;;  %v262_v55 = vcombine.high %v6493_v25, %v6534_v48 }
  0xed   :  { %v6568_v16 = vpop.f32.mrf.mxu0 }
  0xee   :  { %1669 = vrot.lane.b32.xlu0 %v6479_v21, %s6356_s28  ;;  %4587 = vrot.lane.b32.xlu1 %v6488_v24, %s6362_s1  ;;  %v345_v58 = vcombine.low %v321_v50, %v337_v52  ;;  %v346_v59 = vcombine.high %v321_v50, %v337_v52  ;;  %v361_v60 = vcombine.low %v328_v51, %v344_v53 }
  0xef   :  { %v362_v61 = vcombine.high %v328_v51, %v344_v53  ;;  %v269_v62 = vrot.slane %v261_v54, %v6516_v39  ;;  %v276_v63 = vrot.slane %v262_v55, %v6516_v39  ;;  %v465_v30 = vcombine.low %v6495_v26, %v6568_v16  ;;  %v6604_v54 = vpop.f32.mrf.mxu0 }
  0xf0   :  { %v353_v1 = vrot.slane %v345_v58, %v6536_v49  ;;  %v360_v2 = vrot.slane %v346_v59, %v6536_v49  ;;  %v369_v3 = vrot.slane %v361_v60, %v6536_v49  ;;  %v466_v35 = vcombine.high %v6495_v26, %v6568_v16 }
  0xf1   :  { %v376_v5 = vrot.slane %v362_v61, %v6536_v49  ;;  %v277_v6 = vcombine.low %v253_v56, %v269_v62  ;;  %v278_v7 = vcombine.high %v253_v56, %v269_v62  ;;  %v293_v8 = vcombine.low %v260_v57, %v276_v63 }
  0xf2   :  { %2396 = vrot.lane.b32.xlu0 %v6479_v21, %s6358_s30  ;;  %5314 = vrot.lane.b32.xlu1 %v6488_v24, %s6364_s6  ;;  %v585_v9 = vcombine.low %v353_v1, %v360_v2  ;;  %v6067_v10 = vcombine.high %v353_v1, %v360_v2  ;;  %v294_v11 = vcombine.high %v260_v57, %v276_v63 }
  0xf3   :  { %v601_v12 = vcombine.low %v369_v3, %v376_v5  ;;  %v6068_v13 = vcombine.high %v369_v3, %v376_v5  ;;  %v285_v14 = vrot.slane %v277_v6, %v6536_v49  ;;  %v292_v15 = vrot.slane %v278_v7, %v6536_v49 }
  0xf4   :  { %v592_v17 = vrot.slane %v585_v9, %v6516_v39  ;;  %v600_v18 = vrot.slane %v6067_v10, %v6516_v39  ;;  %v301_v19 = vrot.slane %v293_v8, %v6536_v49  ;;  %v308_v20 = vrot.slane %v294_v11, %v6536_v49 }
  0xf5   :  { %v608_v24 = vrot.slane %v601_v12, %v6516_v39  ;;  %v616_v28 = vrot.slane %v6068_v13, %v6516_v39  ;;  %v517_v41 = vcombine.low %v285_v14, %v292_v15  ;;  %v6065_v42 = vcombine.high %v285_v14, %v292_v15 }
  0xf6   :  { %3123 = vrot.lane.b32.xlu0 %v6479_v21, %s6359_s3  ;;  %1677 = vrot.lane.b32.xlu1 %v6493_v25, %s6356_s28  ;;  %v617_v33 = vcombine.low %v592_v17, %v600_v18  ;;  %v618_v34 = vcombine.high %v592_v17, %v600_v18  ;;  %v533_v46 = vcombine.low %v301_v19, %v308_v20 }
  0xf7   :  { %v633_v36 = vcombine.low %v608_v24, %v616_v28  ;;  %v634_v40 = vcombine.high %v608_v24, %v616_v28  ;;  %v6066_v47 = vcombine.high %v301_v19, %v308_v20  ;;  %v464_v52 = vrot.slane %v450_v4, %v6516_v39 }
  0xf8   :  { %v6586_v44 = vrot.slane %v617_v33, %v6536_v49  ;;  %v6589_v45 = vrot.slane %v618_v34, %v6536_v49  ;;  %v381_v53 = vcombine.low %v6486_v23, %v6514_v38  ;;  %v473_v55 = vrot.slane %v465_v30, %v6516_v39 }
  0xf9   :  { %v6592_v50 = vrot.slane %v633_v36, %v6536_v49  ;;  %v6595_v51 = vrot.slane %v634_v40, %v6536_v49  ;;  %v480_v56 = vrot.slane %v466_v35, %v6516_v39  ;;  %v382_v57 = vcombine.high %v6486_v23, %v6514_v38 }
  0xfa   :  { %9764 = vst [vmem:[#allocation7_spill] sm:$0xff] %v6586_v44  ;;  %3850 = vrot.lane.b32.xlu0 %v6479_v21, %s6360_s5  ;;  %2404 = vrot.lane.b32.xlu1 %v6493_v25, %s6358_s30  ;;  %v6615_v60 = vrot.slane %v517_v41, %v6516_v39  ;;  %v6620_v62 = vrot.slane %v6065_v42, %v6516_v39 }
  0xfb   :  { %9765 = vst [vmem:[#allocation8_spill] sm:$0xff] %v6592_v50  ;;  %v6623_v63 = vrot.slane %v533_v46, %v6516_v39  ;;  %v6626_v0 = vrot.slane %v6066_v47, %v6516_v39  ;;  %v481_v1 = vcombine.low %v457_v29, %v473_v55  ;;  %v482_v2 = vcombine.high %v457_v29, %v473_v55 }
  0xfc   :  { %v497_v3 = vcombine.low %v464_v52, %v480_v56  ;;  %v498_v4 = vcombine.high %v464_v52, %v480_v56  ;;  %v397_v5 = vcombine.low %v6500_v27, %v6604_v54  ;;  %v389_v7 = vrot.slane %v381_v53, %v6516_v39 }
  0xfd   :  { %v489_v6 = vrot.slane %v481_v1, %v6536_v49  ;;  %v496_v8 = vrot.slane %v482_v2, %v6536_v49  ;;  %v398_v11 = vcombine.high %v6500_v27, %v6604_v54  ;;  %v549_v12 = vcombine.low %v6615_v60, %v6620_v62 }
  0xfe   :  { %4577 = vrot.lane.b32.xlu0 %v6479_v21, %s6362_s1  ;;  %3131 = vrot.lane.b32.xlu1 %v6493_v25, %s6359_s3  ;;  %v505_v9 = vrot.slane %v497_v3, %v6536_v49  ;;  %v512_v10 = vrot.slane %v498_v4, %v6536_v49  ;;  %v565_v13 = vcombine.low %v6623_v63, %v6626_v0 }
  0xff   :  { %v396_v14 = vrot.slane %v382_v57, %v6516_v39  ;;  %v405_v15 = vrot.slane %v397_v5, %v6516_v39  ;;  %v721_v17 = vcombine.low %v489_v6, %v496_v8  ;;  %v6071_v18 = vcombine.high %v489_v6, %v496_v8 }
 0x100   :  { %v737_v19 = vcombine.low %v505_v9, %v512_v10  ;;  %v6072_v20 = vcombine.high %v505_v9, %v512_v10  ;;  %v412_v24 = vrot.slane %v398_v11, %v6516_v39  ;;  %v6677_v55 = vrot.slane %v549_v12, %v6536_v49 }
 0x101   :  { %v413_v28 = vcombine.low %v389_v7, %v405_v15  ;;  %v414_v29 = vcombine.high %v389_v7, %v405_v15  ;;  %v6653_v30 = vrot.slane %v721_v17, %v6516_v39  ;;  %v6656_v33 = vrot.slane %v6071_v18, %v6516_v39 }
 0x102   :  { %5304 = vrot.lane.b32.xlu0 %v6479_v21, %s6364_s6  ;;  %3858 = vrot.lane.b32.xlu1 %v6493_v25, %s6360_s5  ;;  %v6659_v34 = vrot.slane %v737_v19, %v6516_v39  ;;  %v6662_v35 = vrot.slane %v6072_v20, %v6516_v39  ;;  %v429_v40 = vcombine.low %v396_v14, %v412_v24 }
 0x103   :  { %v421_v21 = vrot.slane %v413_v28, %v6536_v49  ;;  %v428_v36 = vrot.slane %v414_v29, %v6536_v49  ;;  %v430_v41 = vcombine.high %v396_v14, %v412_v24  ;;  %v753_v42 = vcombine.low %v6653_v30, %v6656_v33  ;;  %9766 = vst [vmem:[#allocation9_spill] sm:$0xff] %v6677_v55 }
 0x104   :  { %v769_v46 = vcombine.low %v6659_v34, %v6662_v35  ;;  %v437_v47 = vrot.slane %v429_v40, %v6536_v49  ;;  %v6680_v56 = vrot.slane %v565_v13, %v6536_v49 }
 0x105   :  { %v444_v52 = vrot.slane %v430_v41, %v6536_v49  ;;  %v653_v53 = vcombine.low %v421_v21, %v428_v36  ;;  %v6683_v57 = vrot.slane %v753_v42, %v6536_v49  ;;  %v6069_v3 = vcombine.high %v421_v21, %v428_v36 }
 0x106   :  { %1675 = vrot.lane.b32.xlu0 %v6481_v22, %s6356_s28  ;;  %4585 = vrot.lane.b32.xlu1 %v6493_v25, %s6362_s1  ;;  %9767 = vst [vmem:[#allocation10_spill] sm:$0xff] %v6680_v56  ;;  %v6686_v1 = vrot.slane %v769_v46, %v6536_v49 }
 0x107   :  { %9768 = vst [vmem:[#allocation11_spill] sm:$0xff] %v6683_v57  ;;  %v6689_v2 = vrot.slane %v653_v53, %v6516_v39  ;;  %v669_v4 = vcombine.low %v437_v47, %v444_v52  ;;  %v6070_v5 = vcombine.high %v437_v47, %v444_v52  ;;  %v6698_v7 = vrot.slane %v6069_v3, %v6516_v39 }
 0x108   :  { %9769 = vst [vmem:[#allocation12_spill] sm:$0xff] %v6686_v1 }
 0x109   :  { %v6701_v8 = vrot.slane %v669_v4, %v6516_v39  ;;  %v6704_v9 = vrot.slane %v6070_v5, %v6516_v39  ;;  %v685_v12 = vcombine.low %v6689_v2, %v6698_v7 }
 0x10a   :  { %2402 = vrot.lane.b32.xlu0 %v6481_v22, %s6358_s30  ;;  %5312 = vrot.lane.b32.xlu1 %v6493_v25, %s6364_s6 }
 0x10b   :  { %v701_v13 = vcombine.low %v6701_v8, %v6704_v9  ;;  %v6719_v14 = vrot.slane %v685_v12, %v6536_v49 }
 0x10d   :  { %9770 = vst [vmem:[#allocation13_spill] sm:$0xff] %v6719_v14  ;;  %v6722_v15 = vrot.slane %v701_v13, %v6536_v49 }
 0x10e   :  { %3129 = vrot.lane.b32.xlu0 %v6481_v22, %s6359_s3  ;;  %956 = vrot.lane.b32.xlu1 %v6495_v26, %s6357_s29 }
 0x10f   :  { %9771 = vst [vmem:[#allocation14_spill] sm:$0xff] %v6722_v15 }
 0x112   :  { %3856 = vrot.lane.b32.xlu0 %v6481_v22, %s6360_s5  ;;  %1683 = vrot.lane.b32.xlu1 %v6495_v26, %s6356_s28 }
 0x116   :  { %4583 = vrot.lane.b32.xlu0 %v6481_v22, %s6362_s1  ;;  %2410 = vrot.lane.b32.xlu1 %v6495_v26, %s6358_s30 }
 0x11a   :  { %5310 = vrot.lane.b32.xlu0 %v6481_v22, %s6364_s6  ;;  %3137 = vrot.lane.b32.xlu1 %v6495_v26, %s6359_s3 }
 0x11e   :  { %946 = vrot.lane.b32.xlu0 %v6486_v23, %s6357_s29  ;;  %3864 = vrot.lane.b32.xlu1 %v6495_v26, %s6360_s5 }
 0x122   :  { %1673 = vrot.lane.b32.xlu0 %v6486_v23, %s6356_s28  ;;  %4591 = vrot.lane.b32.xlu1 %v6495_v26, %s6362_s1 }
 0x126   :  { %2400 = vrot.lane.b32.xlu0 %v6486_v23, %s6358_s30  ;;  %5318 = vrot.lane.b32.xlu1 %v6495_v26, %s6364_s6 }
 0x12a   :  { %3127 = vrot.lane.b32.xlu0 %v6486_v23, %s6359_s3  ;;  %1681 = vrot.lane.b32.xlu1 %v6500_v27, %s6356_s28 }
 0x12e   :  { %3854 = vrot.lane.b32.xlu0 %v6486_v23, %s6360_s5  ;;  %2408 = vrot.lane.b32.xlu1 %v6500_v27, %s6358_s30 }
 0x132   :  { %4581 = vrot.lane.b32.xlu0 %v6486_v23, %s6362_s1  ;;  %3135 = vrot.lane.b32.xlu1 %v6500_v27, %s6359_s3 }
 0x136   :  { %5308 = vrot.lane.b32.xlu0 %v6486_v23, %s6364_s6  ;;  %3862 = vrot.lane.b32.xlu1 %v6500_v27, %s6360_s5 }
 0x13a   :  { %950 = vrot.lane.b32.xlu0 %v6493_v25, %s6357_s29  ;;  %4589 = vrot.lane.b32.xlu1 %v6500_v27, %s6362_s1 }
 0x13e   :  { %5316 = vrot.lane.b32.xlu1 %v6500_v27, %s6364_s6  ;;  %954 = vrot.lane.b32.xlu0 %v6500_v27, %s6357_s29 }
 0x142   :  { %1687 = vrot.lane.b32.xlu0 %v6502_v31, %s6356_s28  ;;  %960 = vrot.lane.b32.xlu1 %v6502_v31, %s6357_s29 }
 0x144   :  { %v6778_v22 = vpop.permute.xlu0 %1671  ;;  %v6780_v23 = vpop.permute.xlu1 %944 }
 0x146   :  { %2414 = vrot.lane.b32.xlu0 %v6502_v31, %s6358_s30  ;;  %964 = vrot.lane.b32.xlu1 %v6509_v37, %s6357_s29 }
 0x148   :  { %v6786_v25 = vpop.permute.xlu0 %2398  ;;  %v6788_v26 = vpop.permute.xlu1 %948 }
 0x14a   :  { %3141 = vrot.lane.b32.xlu0 %v6502_v31, %s6359_s3  ;;  %1695 = vrot.lane.b32.xlu1 %v6520_v43, %s6356_s28 }
 0x14c   :  { %v6794_v27 = vpop.permute.xlu0 %3125  ;;  %v6796_v18 = vpop.permute.xlu1 %952 }
 0x14d   :  { %9772 = vst [vmem:[#allocation15_spill] sm:$0xff] %v6796_v18 }
 0x14e   :  { %3868 = vrot.lane.b32.xlu0 %v6502_v31, %s6360_s5  ;;  %2422 = vrot.lane.b32.xlu1 %v6520_v43, %s6358_s30 }
 0x150   :  { %v6802_v19 = vpop.permute.xlu0 %3852  ;;  %v6804_v20 = vpop.permute.xlu1 %1679 }
 0x152   :  { %4595 = vrot.lane.b32.xlu0 %v6502_v31, %s6362_s1  ;;  %3149 = vrot.lane.b32.xlu1 %v6520_v43, %s6359_s3 }
 0x154   :  { %v6810_v24 = vpop.permute.xlu0 %4579  ;;  %v6812_v28 = vpop.permute.xlu1 %2406 }
 0x156   :  { %5322 = vrot.lane.b32.xlu0 %v6502_v31, %s6364_s6  ;;  %3876 = vrot.lane.b32.xlu1 %v6520_v43, %s6360_s5 }
 0x158   :  { %v6818_v29 = vpop.permute.xlu0 %5306  ;;  %v6820_v21 = vpop.permute.xlu1 %3133 }
 0x15a   :  { %958 = vrot.lane.b32.xlu0 %v6507_v32, %s6357_s29  ;;  %4603 = vrot.lane.b32.xlu1 %v6520_v43, %s6362_s1 }
 0x15c   :  { %v6826_v36 = vpop.permute.xlu0 %942  ;;  %v6828_v40 = vpop.permute.xlu1 %3860 }
 0x15e   :  { %1685 = vrot.lane.b32.xlu0 %v6507_v32, %s6356_s28  ;;  %5330 = vrot.lane.b32.xlu1 %v6520_v43, %s6364_s6 }
 0x160   :  { %v6834_v31 = vpop.permute.xlu0 %1669  ;;  %v6836_v41 = vpop.permute.xlu1 %4587 }
 0x162   :  { %2412 = vrot.lane.b32.xlu0 %v6507_v32, %s6358_s30  ;;  %966 = vrot.lane.b32.xlu1 %v6534_v48, %s6357_s29 }
 0x164   :  { %v6842_v42 = vpop.permute.xlu0 %2396  ;;  %v6844_v46 = vpop.permute.xlu1 %5314 }
 0x166   :  { %3139 = vrot.lane.b32.xlu0 %v6507_v32, %s6359_s3  ;;  %1693 = vrot.lane.b32.xlu1 %v6534_v48, %s6356_s28 }
 0x168   :  { %v6850_v47 = vpop.permute.xlu0 %3123  ;;  %v6852_v52 = vpop.permute.xlu1 %1677 }
 0x16a   :  { %3866 = vrot.lane.b32.xlu0 %v6507_v32, %s6360_s5  ;;  %2420 = vrot.lane.b32.xlu1 %v6534_v48, %s6358_s30 }
 0x16c   :  { %v6858_v53 = vpop.permute.xlu0 %3850  ;;  %v6860_v3 = vpop.permute.xlu1 %2404 }
 0x16e   :  { %4593 = vrot.lane.b32.xlu0 %v6507_v32, %s6362_s1  ;;  %3147 = vrot.lane.b32.xlu1 %v6534_v48, %s6359_s3 }
 0x170   :  { %v6866_v4 = vpop.permute.xlu0 %4577  ;;  %v6868_v5 = vpop.permute.xlu1 %3131 }
 0x172   :  { %5320 = vrot.lane.b32.xlu0 %v6507_v32, %s6364_s6  ;;  %3874 = vrot.lane.b32.xlu1 %v6534_v48, %s6360_s5 }
 0x174   :  { %v6874_v12 = vpop.permute.xlu0 %5304  ;;  %v6876_v13 = vpop.permute.xlu1 %3858 }
 0x176   :  { %1691 = vrot.lane.b32.xlu0 %v6509_v37, %s6356_s28  ;;  %4601 = vrot.lane.b32.xlu1 %v6534_v48, %s6362_s1 }
 0x178   :  { %v6882_v17 = vpop.permute.xlu0 %1675  ;;  %v6884_v11 = vpop.permute.xlu1 %4585 }
 0x17a   :  { %2418 = vrot.lane.b32.xlu0 %v6509_v37, %s6358_s30  ;;  %5328 = vrot.lane.b32.xlu1 %v6534_v48, %s6364_s6 }
 0x17c   :  { %v6890_v32 = vpop.permute.xlu0 %2402  ;;  %v6892_v10 = vpop.permute.xlu1 %5312 }
 0x17e   :  { %3145 = vrot.lane.b32.xlu0 %v6509_v37, %s6359_s3  ;;  %1699 = vrot.lane.b32.xlu1 %v6568_v16, %s6356_s28 }
 0x180   :  { %v6898_v6 = vpop.permute.xlu0 %3129  ;;  %v6900_v61 = vpop.permute.xlu1 %956 }
 0x181   :  { %9773 = vst [vmem:[#allocation16_spill] sm:$0xff] %v6898_v6  ;;  %9774 = vst [vmem:[#allocation17_spill] sm:$0xff] %v6900_v61 }
 0x182   :  { %3872 = vrot.lane.b32.xlu0 %v6509_v37, %s6360_s5  ;;  %2426 = vrot.lane.b32.xlu1 %v6568_v16, %s6358_s30 }
 0x184   :  { %v6906_v48 = vpop.permute.xlu0 %3856  ;;  %v6908_v59 = vpop.permute.xlu1 %1683 }
 0x185   :  { %9775 = vst [vmem:[#allocation18_spill] sm:$0xff] %v6906_v48 }
 0x186   :  { %4599 = vrot.lane.b32.xlu0 %v6509_v37, %s6362_s1  ;;  %3153 = vrot.lane.b32.xlu1 %v6568_v16, %s6359_s3 }
 0x188   :  { %v6914_v58 = vpop.permute.xlu0 %4583  ;;  %v6916_v18 = vpop.permute.xlu1 %2410 }
 0x189   :  { %9776 = vst [vmem:[#allocation19_spill] sm:$0xff] %v6914_v58 }
 0x18a   :  { %5326 = vrot.lane.b32.xlu0 %v6509_v37, %s6364_s6  ;;  %3880 = vrot.lane.b32.xlu1 %v6568_v16, %s6360_s5 }
 0x18c   :  { %v6922_v61 = vpop.permute.xlu0 %5310  ;;  %v6924_v48 = vpop.permute.xlu1 %3137 }
 0x18d   :  { %9777 = vst [vmem:[#allocation20_spill] sm:$0xff] %v6922_v61  ;;  %9778 = vst [vmem:[#allocation21_spill] sm:$0xff] %v6924_v48 }
 0x18e   :  { %962 = vrot.lane.b32.xlu0 %v6514_v38, %s6357_s29  ;;  %4607 = vrot.lane.b32.xlu1 %v6568_v16, %s6362_s1 }
 0x190   :  { %v6930_v6 = vpop.permute.xlu0 %946  ;;  %v6932_v58 = vpop.permute.xlu1 %3864 }
 0x191   :  { %9779 = vst [vmem:[#allocation22_spill] sm:$0xff] %v6930_v6  ;;  %9780 = vst [vmem:[#allocation23_spill] sm:$0xff] %v6932_v58 }
 0x192   :  { %1689 = vrot.lane.b32.xlu0 %v6514_v38, %s6356_s28  ;;  %5334 = vrot.lane.b32.xlu1 %v6568_v16, %s6364_s6 }
 0x194   :  { %v6938_v37 = vpop.permute.xlu0 %1673  ;;  %v6940_v61 = vpop.permute.xlu1 %4591 }
 0x195   :  { %9781 = vst [vmem:[#allocation24_spill] sm:$0xff] %v6938_v37  ;;  %9782 = vst [vmem:[#allocation25_spill] sm:$0xff] %v6940_v61 }
 0x196   :  { %2416 = vrot.lane.b32.xlu0 %v6514_v38, %s6358_s30  ;;  %970 = vrot.lane.b32.xlu1 %v6604_v54, %s6357_s29 }
 0x198   :  { %v6946_v48 = vpop.permute.xlu0 %2400  ;;  %v6948_v6 = vpop.permute.xlu1 %5318 }
 0x199   :  { %9783 = vst [vmem:[#allocation26_spill] sm:$0xff] %v6946_v48  ;;  %9784 = vst [vmem:[#allocation27_spill] sm:$0xff] %v6948_v6 }
 0x19a   :  { %3143 = vrot.lane.b32.xlu0 %v6514_v38, %s6359_s3  ;;  %1697 = vrot.lane.b32.xlu1 %v6604_v54, %s6356_s28 }
 0x19c   :  { %v6954_v58 = vpop.permute.xlu0 %3127  ;;  %v6956_v37 = vpop.permute.xlu1 %1681 }
 0x19d   :  { %9785 = vst [vmem:[#allocation28_spill] sm:$0xff] %v6954_v58  ;;  %9786 = vst [vmem:[#allocation29_spill] sm:$0xff] %v6956_v37 }
 0x19e   :  { %3870 = vrot.lane.b32.xlu0 %v6514_v38, %s6360_s5  ;;  %2424 = vrot.lane.b32.xlu1 %v6604_v54, %s6358_s30 }
 0x1a0   :  { %v6962_v61 = vpop.permute.xlu0 %3854  ;;  %v6964_v48 = vpop.permute.xlu1 %2408 }
 0x1a1   :  { %9787 = vst [vmem:[#allocation30_spill] sm:$0xff] %v6962_v61  ;;  %9788 = vst [vmem:[#allocation31_spill] sm:$0xff] %v6964_v48 }
 0x1a2   :  { %4597 = vrot.lane.b32.xlu0 %v6514_v38, %s6362_s1  ;;  %3151 = vrot.lane.b32.xlu1 %v6604_v54, %s6359_s3 }
 0x1a4   :  { %v6970_v6 = vpop.permute.xlu0 %4581  ;;  %v6972_v58 = vpop.permute.xlu1 %3135 }
 0x1a5   :  { %9789 = vst [vmem:[#allocation32_spill] sm:$0xff] %v6970_v6  ;;  %9790 = vst [vmem:[#allocation33_spill] sm:$0xff] %v6972_v58 }
 0x1a6   :  { %5324 = vrot.lane.b32.xlu0 %v6514_v38, %s6364_s6  ;;  %3878 = vrot.lane.b32.xlu1 %v6604_v54, %s6360_s5  ;;  %v550_v38 = vcombine.high %v6615_v60, %v6620_v62 }
 0x1a8   :  { %v6978_v37 = vpop.permute.xlu0 %5308  ;;  %v6980_v61 = vpop.permute.xlu1 %3862 }
 0x1a9   :  { %9791 = vst [vmem:[#allocation34_spill] sm:$0xff] %v6978_v37  ;;  %9792 = vst [vmem:[#allocation35_spill] sm:$0xff] %v6980_v61 }
 0x1aa   :  { %968 = vrot.lane.b32.xlu0 %v6520_v43, %s6357_s29  ;;  %4605 = vrot.lane.b32.xlu1 %v6604_v54, %s6362_s1  ;;  %v566_v43 = vcombine.high %v6623_v63, %v6626_v0  ;;  %v754_v0 = vcombine.high %v6653_v30, %v6656_v33 }
 0x1ac   :  { %v6986_v48 = vpop.permute.xlu0 %950  ;;  %v6988_v6 = vpop.permute.xlu1 %4589  ;;  %v580_v63 = vrot.slane %v566_v43, %v6536_v49  ;;  %v786_v43 = vcombine.high %v6683_v57, %v6686_v1  ;;  %v768_v30 = vrot.slane %v754_v0, %v6536_v49 }
 0x1ad   :  { %9793 = vst [vmem:[#allocation36_spill] sm:$0xff] %v6988_v6  ;;  %v9795_v6 = vcombine.high %v6586_v44, %v6592_v50 }
 0x1ae   :  { %972 = vrot.lane.b32.xlu0 %v6568_v16, %s6357_s29  ;;  %5332 = vrot.lane.b32.xlu1 %v6604_v54, %s6364_s6  ;;  %v9796_v16 = vcombine.low %v6589_v45, %v6595_v51  ;;  %v564_v54 = vrot.slane %v550_v38, %v6536_v49  ;;  %v9797_v38 = vcombine.high %v6589_v45, %v6595_v51 }
 0x1b0   :  { %v6996_v61 = vpop.permute.xlu1 %5316  ;;  %v6998_v37 = vpop.permute.xlu0 %954 }
 0x1b1   :  { %9794 = vst [vmem:[#allocation37_spill] sm:$0xff] %v6996_v61  ;;  %v582_v61 = vcombine.high %v6677_v55, %v6680_v56  ;;  %v583_v56 = vcombine.low %v564_v54, %v580_v63 }
 0x1b2   :  { %795 = vrot.lane.b32.xlu0 %v9795_v6, %s6365_s7  ;;  %811 = vrot.lane.b32.xlu1 %v9796_v16, %s6366_s8  ;;  %v770_v6 = vcombine.high %v6659_v34, %v6662_v35  ;;  %v702_v34 = vcombine.high %v6701_v8, %v6704_v9  ;;  %v584_v35 = vcombine.high %v564_v54, %v580_v63 }
 0x1b3   :  { %v718_v63 = vcombine.high %v6719_v14, %v6722_v15 }
 0x1b4   :  { %v1688_v60 = vpop.permute.xlu0 %1687  ;;  %v961_v62 = vpop.permute.xlu1 %960  ;;  %v784_v33 = vrot.slane %v770_v6, %v6536_v49  ;;  %v716_v0 = vrot.slane %v702_v34, %v6536_v49 }
 0x1b5   :  { %v1786_v34 = vcombine.high %v6778_v22, %v1688_v60 }
 0x1b6   :  { %793 = vrot.lane.b32.xlu0 %v582_v61, %s6365_s7  ;;  %827 = vrot.lane.b32.xlu1 %v9797_v38, %s6367_s9  ;;  %v686_v61 = vcombine.high %v6689_v2, %v6698_v7  ;;  %v787_v38 = vcombine.low %v768_v30, %v784_v33  ;;  %v788_v8 = vcombine.high %v768_v30, %v784_v33 }
 0x1b7   :  { %v1785_v33 = vcombine.low %v6778_v22, %v1688_v60 }
 0x1b8   :  { %v7023_v16 = vpop.permute.xlu0 %2414  ;;  %v7025_v50 = vpop.permute.xlu1 %964  ;;  %v700_v1 = vrot.slane %v686_v61, %v6536_v49 }
 0x1b9   :  { %v1793_v22 = vrot.slane %v1785_v33, %v6516_v39 }
 0x1ba   :  { %809 = vrot.lane.b32.xlu0 %v583_v56, %s6366_s8  ;;  %799 = vrot.lane.b32.xlu1 %v786_v43, %s6365_s7  ;;  %v719_v56 = vcombine.low %v700_v1, %v716_v0  ;;  %v720_v6 = vcombine.high %v700_v1, %v716_v0  ;;  %v2512_v0 = vcombine.low %v6786_v25, %v7023_v16 }
 0x1bc   :  { %v3142_v45 = vpop.permute.xlu0 %3141  ;;  %v1696_v51 = vpop.permute.xlu1 %1695 }
 0x1bd   :  { %v1801_v43 = vcombine.low %v6804_v20, %v1696_v51  ;;  %v3239_v60 = vcombine.low %v6794_v27, %v3142_v45 }
 0x1be   :  { %825 = vrot.lane.b32.xlu0 %v584_v35, %s6367_s9  ;;  %815 = vrot.lane.b32.xlu1 %v787_v38, %s6366_s8  ;;  %v1058_v35 = vcombine.low %v6780_v23, %v961_v62  ;;  %v1059_v38 = vcombine.high %v6780_v23, %v961_v62  ;;  %v3240_v23 = vcombine.high %v6794_v27, %v3142_v45 }
 0x1bf   :  { %v1809_v1 = vrot.slane %v1801_v43, %v6516_v39  ;;  %v1194_v43 = vcombine.low %v6788_v26, %v7025_v50  ;;  %v2520_v27 = vrot.slane %v2512_v0, %v6516_v39  ;;  %v1195_v45 = vcombine.high %v6788_v26, %v7025_v50 }
 0x1c0   :  { %v7041_v2 = vpop.permute.xlu0 %3868  ;;  %v7043_v7 = vpop.permute.xlu1 %2422  ;;  %v7075_v62 = vrot.slane %v1058_v35, %v6516_v39 }
 0x1c1   :  { %v1817_v33 = vcombine.low %v1793_v22, %v1809_v1  ;;  %v1818_v14 = vcombine.high %v1793_v22, %v1809_v1  ;;  %v2528_v1 = vcombine.low %v6812_v28, %v7043_v7  ;;  %v2529_v50 = vcombine.high %v6812_v28, %v7043_v7 }
 0x1c2   :  { %831 = vrot.lane.b32.xlu1 %v788_v8, %s6367_s9  ;;  %813 = vrot.lane.b32.xlu0 %v719_v56, %s6366_s8  ;;  %v1802_v8 = vcombine.high %v6804_v20, %v1696_v51  ;;  %v1800_v20 = vrot.slane %v1786_v34, %v6516_v39  ;;  %9798 = vst [vmem:[#allocation38_spill] sm:$0xff] %v7075_v62 }
 0x1c3   :  { %v7078_v51 = vrot.slane %v1059_v38, %v6516_v39  ;;  %v7118_v7 = vrot.slane %v1194_v43, %v6516_v39 }
 0x1c4   :  { %v7047_v9 = vpop.permute.xlu0 %4595  ;;  %v3150_v54 = vpop.permute.xlu1 %3149 }
 0x1c5   :  { %v3255_v56 = vcombine.low %v6820_v21, %v3150_v54  ;;  %9799 = vst [vmem:[#allocation39_spill] sm:$0xff] %v7078_v51  ;;  %9800 = vst [vmem:[#allocation40_spill] sm:$0xff] %v7118_v7  ;;  %v4694_v62 = vcombine.high %v6810_v24, %v7047_v9 }
 0x1c6   :  { %797 = vrot.lane.b32.xlu1 %v718_v63, %s6365_s7  ;;  %829 = vrot.lane.b32.xlu0 %v720_v6, %s6367_s9  ;;  %v3256_v63 = vcombine.high %v6820_v21, %v3150_v54  ;;  %v1816_v21 = vrot.slane %v1802_v8, %v6516_v39  ;;  %v2513_v54 = vcombine.high %v6786_v25, %v7023_v16 }
 0x1c7   :  { %v3263_v34 = vrot.slane %v3255_v56, %v6516_v39  ;;  %v3247_v25 = vrot.slane %v3239_v60, %v6516_v39  ;;  %v3254_v16 = vrot.slane %v3240_v23, %v6516_v39  ;;  %v7103_v56 = vrot.slane %v1817_v33, %v6536_v49 }
 0x1c8   :  { %v7054_v61 = vpop.permute.xlu0 %5322  ;;  %v3877_v30 = vpop.permute.xlu1 %3876  ;;  %v3270_v35 = vrot.slane %v3256_v63, %v6516_v39  ;;  %v1833_v22 = vcombine.low %v1800_v20, %v1816_v21  ;;  %v1834_v57 = vcombine.high %v1800_v20, %v1816_v21  ;;  %v7106_v63 = vrot.slane %v1818_v14, %v6536_v49 }
 0x1c9   :  { %v3982_v0 = vcombine.low %v6828_v40, %v3877_v30  ;;  %v3983_v26 = vcombine.high %v6828_v40, %v3877_v30  ;;  %v3966_v60 = vcombine.low %v6802_v19, %v7041_v2  ;;  %v3967_v23 = vcombine.high %v6802_v19, %v7041_v2 }
 0x1ca   :  { %v3271_v55 = vcombine.low %v3247_v25, %v3263_v34  ;;  %v3272_v44 = vcombine.high %v3247_v25, %v3263_v34  ;;  %v3287_v20 = vcombine.low %v3254_v16, %v3270_v35  ;;  %v3288_v21 = vcombine.high %v3254_v16, %v3270_v35 }
 0x1cb   :  { %v2527_v40 = vrot.slane %v2513_v54, %v6516_v39  ;;  %v2536_v14 = vrot.slane %v2528_v1, %v6516_v39  ;;  %v3990_v30 = vrot.slane %v3982_v0, %v6516_v39  ;;  %v7123_v33 = vrot.slane %v1195_v45, %v6516_v39 }
 0x1cc   :  { %v7066_v6 = vpop.permute.xlu0 %958  ;;  %v7068_v15 = vpop.permute.xlu1 %4603  ;;  %v7126_v19 = vrot.slane %v1833_v22, %v6536_v49  ;;  %v2543_v2 = vrot.slane %v2529_v50, %v6516_v39  ;;  %v3997_v34 = vrot.slane %v3983_v26, %v6516_v39  ;;  %v7131_v35 = vrot.slane %v1834_v57, %v6536_v49 }
 0x1cd   :  { %9801 = vst [vmem:[#allocation41_spill] sm:$0xff] %v7123_v33  ;;  %v3974_v43 = vrot.slane %v3966_v60, %v6516_v39  ;;  %v3981_v25 = vrot.slane %v3967_v23, %v6516_v39  ;;  %v3279_v45 = vrot.slane %v3271_v55, %v6536_v49  ;;  %v3286_v16 = vrot.slane %v3272_v44, %v6536_v49 }
 0x1ce   :  { %9802 = vst [vmem:[#allocation42_spill] sm:$0xff] %v7126_v19  ;;  %9803 = vst [vmem:[#allocation43_spill] sm:$0xff] %v7131_v35  ;;  %v3295_v1 = vrot.slane %v3287_v20, %v6536_v49  ;;  %v3302_v0 = vrot.slane %v3288_v21, %v6536_v49  ;;  %v2544_v57 = vcombine.low %v2520_v27, %v2536_v14 }
 0x1cf   :  { %v2545_v26 = vcombine.high %v2520_v27, %v2536_v14  ;;  %v3998_v33 = vcombine.low %v3974_v43, %v3990_v30  ;;  %v3999_v54 = vcombine.high %v3974_v43, %v3990_v30  ;;  %v2560_v23 = vcombine.low %v2527_v40, %v2543_v2 }
 0x1d0   :  { %v7090_v38 = vpop.permute.xlu0 %1685  ;;  %v7092_v8 = vpop.permute.xlu1 %5330  ;;  %v4014_v7 = vcombine.low %v3981_v25, %v3997_v34  ;;  %v4015_v55 = vcombine.high %v3981_v25, %v3997_v34  ;;  %v2561_v20 = vcombine.high %v2527_v40, %v2543_v2  ;;  %v4693_v21 = vcombine.low %v6810_v24, %v7047_v9 }
 0x1d1   :  { %v3511_v58 = vcombine.low %v3279_v45, %v3286_v16  ;;  %v6103_v27 = vcombine.high %v3279_v45, %v3286_v16  ;;  %v3527_v14 = vcombine.low %v3295_v1, %v3302_v0  ;;  %v6104_v30 = vcombine.high %v3295_v1, %v3302_v0 }
 0x1d2   :  { %v7158_v34 = vrot.slane %v2544_v57, %v6536_v49  ;;  %v7161_v25 = vrot.slane %v2545_v26, %v6536_v49  ;;  %v4006_v40 = vrot.slane %v3998_v33, %v6536_v49  ;;  %v4013_v2 = vrot.slane %v3999_v54, %v6536_v49 }
 0x1d3   :  { %v7168_v9 = vrot.slane %v2560_v23, %v6536_v49  ;;  %v4022_v45 = vrot.slane %v4014_v7, %v6536_v49  ;;  %v4029_v16 = vrot.slane %v4015_v55, %v6536_v49  ;;  %v7173_v1 = vrot.slane %v2561_v20, %v6536_v49 }
 0x1d4   :  { %v7112_v51 = vpop.permute.xlu0 %2412  ;;  %v7114_v28 = vpop.permute.xlu1 %966  ;;  %9804 = vst [vmem:[#allocation44_spill] sm:$0xff] %v7158_v34  ;;  %9805 = vst [vmem:[#allocation45_spill] sm:$0xff] %v7161_v25  ;;  %v4701_v0 = vrot.slane %v4693_v21, %v6516_v39  ;;  %v7177_v57 = vrot.slane %v4694_v62, %v6516_v39  ;;  %v4709_v33 = vcombine.low %v6836_v41, %v7068_v15 }
 0x1d5   :  { %9806 = vst [vmem:[#allocation46_spill] sm:$0xff] %v7168_v9  ;;  %9807 = vst [vmem:[#allocation47_spill] sm:$0xff] %v7173_v1  ;;  %v7182_v54 = vrot.slane %v3511_v58, %v6516_v39  ;;  %v7185_v26 = vrot.slane %v6103_v27, %v6516_v39  ;;  %v7188_v7 = vrot.slane %v3527_v14, %v6516_v39 }
 0x1d6   :  { %v7191_v23 = vrot.slane %v6104_v30, %v6516_v39  ;;  %v4238_v20 = vcombine.low %v4006_v40, %v4013_v2  ;;  %v6112_v21 = vcombine.high %v4006_v40, %v4013_v2  ;;  %v4710_v58 = vcombine.high %v6836_v41, %v7068_v15 }
 0x1d7   :  { %v4254_v27 = vcombine.low %v4022_v45, %v4029_v16  ;;  %v6113_v44 = vcombine.high %v4022_v45, %v4029_v16  ;;  %v3543_v14 = vcombine.low %v7182_v54, %v7185_v26  ;;  %v4717_v15 = vrot.slane %v4709_v33, %v6516_v39 }
 0x1d8   :  { %v7141_v22 = vpop.permute.xlu0 %3139  ;;  %v7143_v50 = vpop.permute.xlu1 %1693  ;;  %v3559_v30 = vcombine.low %v7188_v7, %v7191_v23  ;;  %v5420_v41 = vcombine.low %v6818_v29, %v7054_v61  ;;  %v1006_v2 = vcombine.low %v6986_v48, %v7114_v28  ;;  %v990_v62 = vcombine.low %v6826_v36, %v7066_v6 }
 0x1d9   :  { %v7217_v45 = vrot.slane %v3543_v14, %v6536_v49  ;;  %v4724_v40 = vrot.slane %v4710_v58, %v6516_v39  ;;  %v7228_v33 = vrot.slane %v4238_v20, %v6516_v39  ;;  %v7231_v1 = vrot.slane %v6112_v21, %v6516_v39 }
 0x1da   :  { %v7220_v16 = vrot.slane %v3559_v30, %v6536_v49  ;;  %v1007_v14 = vcombine.high %v6986_v48, %v7114_v28  ;;  %v7238_v9 = vrot.slane %v4254_v27, %v6516_v39  ;;  %v7241_v25 = vrot.slane %v6113_v44, %v6516_v39 }
 0x1db   :  { %9808 = vst [vmem:[#allocation48_spill] sm:$0xff] %v7228_v33  ;;  %9809 = vst [vmem:[#allocation49_spill] sm:$0xff] %v7231_v1  ;;  %v991_v58 = vcombine.high %v6826_v36, %v7066_v6  ;;  %v4725_v20 = vcombine.low %v4701_v0, %v4717_v15  ;;  %v4726_v34 = vcombine.high %v4701_v0, %v4717_v15 }
 0x1dc   :  { %v7153_v43 = vpop.permute.xlu0 %3866  ;;  %v7155_v60 = vpop.permute.xlu1 %2420  ;;  %v3576_v30 = vcombine.high %v7217_v45, %v7220_v16  ;;  %9810 = vst [vmem:[#allocation50_spill] sm:$0xff] %v7238_v9  ;;  %9811 = vst [vmem:[#allocation51_spill] sm:$0xff] %v7241_v25  ;;  %v4270_v21 = vcombine.low %v7228_v33, %v7231_v1  ;;  %v5421_v48 = vcombine.high %v6818_v29, %v7054_v61 }
 0x1dd   :  { %v5436_v28 = vcombine.low %v6844_v46, %v7092_v8  ;;  %v1014_v27 = vrot.slane %v1006_v2, %v6516_v39  ;;  %v4286_v36 = vcombine.low %v7238_v9, %v7241_v25  ;;  %v998_v6 = vrot.slane %v990_v62, %v6516_v39 }
 0x1de   :  { %3721 = vrot.lane.b32.xlu0 %v3576_v30, %s6365_s7  ;;  %v4741_v44 = vcombine.low %v7177_v57, %v4724_v40  ;;  %v4742_v0 = vcombine.high %v7177_v57, %v4724_v40  ;;  %v5437_v15 = vcombine.high %v6844_v46, %v7092_v8  ;;  %v1717_v29 = vcombine.low %v6834_v31, %v7090_v38 }
 0x1df   :  { %v1021_v61 = vrot.slane %v1007_v14, %v6516_v39  ;;  %v7266_v2 = vrot.slane %v4270_v21, %v6536_v49  ;;  %v7269_v30 = vrot.slane %v4286_v36, %v6536_v49  ;;  %v1005_v62 = vrot.slane %v991_v58, %v6516_v39 }
 0x1e0   :  { %v7193_v55 = vpop.permute.xlu0 %4593  ;;  %v7199_v24 = vpop.permute.xlu1 %3147  ;;  %v7275_v57 = vrot.slane %v4725_v20, %v6536_v49  ;;  %v7278_v46 = vrot.slane %v4726_v34, %v6536_v49  ;;  %v1718_v8 = vcombine.high %v6834_v31, %v7090_v38  ;;  %v5444_v40 = vrot.slane %v5436_v28, %v6516_v39 }
 0x1e1   :  { %9812 = vst [vmem:[#allocation52_spill] sm:$0xff] %v7266_v2  ;;  %9813 = vst [vmem:[#allocation53_spill] sm:$0xff] %v7269_v30  ;;  %v1022_v14 = vcombine.low %v998_v6, %v1014_v27  ;;  %v1023_v21 = vcombine.high %v998_v6, %v1014_v27  ;;  %v4303_v36 = vcombine.high %v7266_v2, %v7269_v30 }
 0x1e2   :  { %9814 = vst [vmem:[#allocation54_spill] sm:$0xff] %v7275_v57  ;;  %9815 = vst [vmem:[#allocation55_spill] sm:$0xff] %v7278_v46  ;;  %v5428_v25 = vrot.slane %v5420_v41, %v6516_v39  ;;  %v5435_v58 = vrot.slane %v5421_v48, %v6516_v39  ;;  %v7288_v20 = vrot.slane %v4741_v44, %v6536_v49 }
 0x1e3   :  { %v5451_v34 = vrot.slane %v5437_v15, %v6516_v39  ;;  %v7294_v31 = vrot.slane %v4742_v0, %v6536_v49  ;;  %v1725_v38 = vrot.slane %v1717_v29, %v6516_v39  ;;  %v1038_v28 = vcombine.low %v1005_v62, %v1021_v61  ;;  %4448 = vrot.lane.b32.xlu0 %v4303_v36, %s6365_s7 }
 0x1e4   :  { %v7222_v35 = vpop.permute.xlu0 %5320  ;;  %v7247_v19 = vpop.permute.xlu1 %3874  ;;  %9816 = vst [vmem:[#allocation56_spill] sm:$0xff] %v7288_v20  ;;  %v1039_v27 = vcombine.high %v1005_v62, %v1021_v61  ;;  %v7299_v41 = vrot.slane %v1718_v8, %v6516_v39  ;;  %v1733_v48 = vcombine.low %v6852_v52, %v7143_v50  ;;  %v3544_v6 = vcombine.high %v7182_v54, %v7185_v26 }
 0x1e5   :  { %9817 = vst [vmem:[#allocation57_spill] sm:$0xff] %v7294_v31  ;;  %v3560_v44 = vcombine.high %v7188_v7, %v7191_v23  ;;  %v5452_v15 = vcombine.low %v5428_v25, %v5444_v40  ;;  %v1030_v29 = vrot.slane %v1022_v14, %v6536_v49  ;;  %v1037_v61 = vrot.slane %v1023_v21, %v6536_v49 }
 0x1e6   :  { %v5453_v8 = vcombine.high %v5428_v25, %v5444_v40  ;;  %v5468_v36 = vcombine.low %v5435_v58, %v5451_v34  ;;  %v7314_v2 = vrot.slane %v3544_v6, %v6536_v49  ;;  %v5469_v26 = vcombine.high %v5435_v58, %v5451_v34 }
 0x1e7   :  { %v7317_v54 = vrot.slane %v3560_v44, %v6536_v49  ;;  %v2444_v7 = vcombine.low %v6842_v42, %v7112_v51  ;;  %v1046_v23 = vrot.slane %v1038_v28, %v6536_v49  ;;  %v1053_v14 = vrot.slane %v1039_v27, %v6536_v49 }
 0x1e8   :  { %v7271_v9 = vpop.permute.xlu0 %1691  ;;  %v7291_v33 = vpop.permute.xlu1 %4601  ;;  %9818 = vst [vmem:[#allocation58_spill] sm:$0xff] %v7314_v2  ;;  %v2445_v21 = vcombine.high %v6842_v42, %v7112_v51  ;;  %v1734_v25 = vcombine.high %v6852_v52, %v7143_v50  ;;  %v1741_v40 = vrot.slane %v1733_v48, %v6516_v39  ;;  %v1262_v28 = vcombine.low %v1030_v29, %v1037_v61 }
 0x1e9   :  { %9819 = vst [vmem:[#allocation59_spill] sm:$0xff] %v7317_v54  ;;  %v3577_v6 = vcombine.low %v7314_v2, %v7317_v54  ;;  %v6074_v27 = vcombine.high %v1030_v29, %v1037_v61  ;;  %v7339_v52 = vrot.slane %v5452_v15, %v6536_v49  ;;  %v7342_v51 = vrot.slane %v5453_v8, %v6536_v49 }
 0x1ea   :  { %v2460_v50 = vcombine.low %v6860_v3, %v7155_v60  ;;  %v7348_v48 = vrot.slane %v5468_v36, %v6536_v49  ;;  %v7351_v34 = vrot.slane %v5469_v26, %v6536_v49  ;;  %v2452_v29 = vrot.slane %v2444_v7, %v6516_v39 }
 0x1eb   :  { %9820 = vst [vmem:[#allocation60_spill] sm:$0xff] %v7339_v52  ;;  %9821 = vst [vmem:[#allocation61_spill] sm:$0xff] %v7342_v51  ;;  %3737 = vrot.lane.b32.xlu0 %v3577_v6, %s6366_s8  ;;  %v1278_v61 = vcombine.low %v1046_v23, %v1053_v14  ;;  %v2459_v15 = vrot.slane %v2445_v21, %v6516_v39  ;;  %v6075_v8 = vcombine.high %v1046_v23, %v1053_v14 }
 0x1ec   :  { %v7311_v62 = vpop.permute.xlu0 %2418  ;;  %v7330_v44 = vpop.permute.xlu1 %5328  ;;  %9822 = vst [vmem:[#allocation62_spill] sm:$0xff] %v7348_v48  ;;  %9823 = vst [vmem:[#allocation63_spill] sm:$0xff] %v7351_v34  ;;  %v1748_v58 = vrot.slane %v1734_v25, %v6516_v39  ;;  %v1749_v0 = vcombine.low %v1725_v38, %v1741_v40  ;;  %v1750_v30 = vcombine.high %v1725_v38, %v1741_v40 }
 0x1ed   :  { %v2461_v6 = vcombine.high %v6860_v3, %v7155_v60  ;;  %v1269_v36 = vrot.slane %v1262_v28, %v6516_v39  ;;  %v1277_v26 = vrot.slane %v6074_v27, %v6516_v39  ;;  %v3171_v31 = vcombine.low %v6850_v47, %v7141_v22 }
 0x1ee   :  { %v3172_v23 = vcombine.high %v6850_v47, %v7141_v22  ;;  %v2468_v14 = vrot.slane %v2460_v50, %v6516_v39  ;;  %v3898_v38 = vcombine.low %v6858_v53, %v7153_v43  ;;  %v1285_v25 = vrot.slane %v1278_v61, %v6516_v39 }
 0x1ef   :  { %v1757_v47 = vrot.slane %v1749_v0, %v6536_v49  ;;  %v1765_v22 = vcombine.low %v7299_v41, %v1748_v58  ;;  %v1766_v28 = vcombine.high %v7299_v41, %v1748_v58  ;;  %v1764_v27 = vrot.slane %v1750_v30, %v6536_v49 }
 0x1f0   :  { %v7354_v42 = vpop.permute.xlu0 %3145  ;;  %v7369_v21 = vpop.permute.xlu1 %1699  ;;  %v2475_v50 = vrot.slane %v2461_v6, %v6516_v39  ;;  %v1293_v60 = vrot.slane %v6075_v8, %v6516_v39  ;;  %v1294_v3 = vcombine.low %v1269_v36, %v1277_v26  ;;  %v7389_v61 = vrot.slane %v3171_v31, %v6516_v39 }
 0x1f1   :  { %v7392_v40 = vrot.slane %v3172_v23, %v6516_v39  ;;  %v2476_v0 = vcombine.low %v2452_v29, %v2468_v14  ;;  %v2477_v34 = vcombine.high %v2452_v29, %v2468_v14  ;;  %v3899_v41 = vcombine.high %v6858_v53, %v7153_v43 }
 0x1f2   :  { %v7397_v30 = vrot.slane %v3898_v38, %v6516_v39  ;;  %v7400_v58 = vrot.slane %v1294_v3, %v6536_v49  ;;  %v1310_v8 = vcombine.low %v1285_v25, %v1293_v60  ;;  %v1773_v6 = vrot.slane %v1765_v22, %v6536_v49 }
 0x1f3   :  { %v1780_v31 = vrot.slane %v1766_v28, %v6536_v49  ;;  %v1295_v48 = vcombine.high %v1269_v36, %v1277_v26  ;;  %v1311_v51 = vcombine.high %v1285_v25, %v1293_v60  ;;  %v1989_v52 = vcombine.low %v1757_v47, %v1764_v27 }
 0x1f4   :  { %v7386_v7 = vpop.permute.xlu0 %3872  ;;  %9824 = vst [vmem:[#allocation64_spill] sm:$0xff] %v7400_v58  ;;  %v7404_v23 = vpop.permute.xlu1 %2426  ;;  %v2492_v29 = vcombine.low %v2459_v15, %v2475_v50  ;;  %v2493_v14 = vcombine.high %v2459_v15, %v2475_v50  ;;  %v7407_v53 = vrot.slane %v1310_v8, %v6536_v49  ;;  %v7410_v43 = vrot.slane %v2476_v0, %v6536_v49 }
 0x1f5   :  { %v7413_v3 = vrot.slane %v2477_v34, %v6536_v49  ;;  %v4625_v38 = vcombine.low %v6866_v4, %v7193_v55  ;;  %v3187_v36 = vcombine.low %v6868_v5, %v7199_v24  ;;  %v3188_v26 = vcombine.high %v6868_v5, %v7199_v24 }
 0x1f6   :  { %9825 = vst [vmem:[#allocation65_spill] sm:$0xff] %v7407_v53  ;;  %v1327_v15 = vcombine.high %v7400_v58, %v7407_v53  ;;  %v7424_v60 = vrot.slane %v1295_v48, %v6536_v49  ;;  %v7427_v25 = vrot.slane %v1311_v51, %v6536_v49  ;;  %v6083_v22 = vcombine.high %v1757_v47, %v1764_v27  ;;  %v9905_v53 = vld [vmem:[#allocation39_spill] sm:$0xff] }
 0x1f7   :  { %v2005_v28 = vcombine.low %v1773_v6, %v1780_v31  ;;  %v6084_v50 = vcombine.high %v1773_v6, %v1780_v31  ;;  %v3914_v0 = vcombine.low %v6876_v13, %v7247_v19  ;;  %v7434_v8 = vrot.slane %v2492_v29, %v6536_v49 }
 0x1f8   :  { %9826 = vst [vmem:[#allocation66_spill] sm:$0xff] %v7424_v60  ;;  %9827 = vst [vmem:[#allocation67_spill] sm:$0xff] %v7427_v25  ;;  %v7429_v34 = vpop.permute.xlu0 %4599  ;;  %v7437_v5 = vrot.slane %v2493_v14, %v6536_v49  ;;  %v4626_v24 = vcombine.high %v6866_v4, %v7193_v55  ;;  %v3915_v51 = vcombine.high %v6876_v13, %v7247_v19  ;;  %1538 = vrot.lane.b32.xlu0 %v1327_v15, %s6365_s7  ;;  %v7450_v31 = vpop.permute.xlu1 %3153 }
 0x1f9   :  { %v3913_v48 = vrot.slane %v3899_v41, %v6516_v39  ;;  %v3195_v6 = vrot.slane %v3187_v36, %v6516_v39  ;;  %v7453_v29 = vrot.slane %v4625_v38, %v6516_v39  ;;  %v3202_v4 = vrot.slane %v3188_v26, %v6516_v39 }
 0x1fa   :  { %v1328_v13 = vcombine.low %v7424_v60, %v7427_v25  ;;  %v1996_v19 = vrot.slane %v1989_v52, %v6516_v39  ;;  %v3922_v55 = vrot.slane %v3914_v0, %v6516_v39  ;;  %v2004_v41 = vrot.slane %v6083_v22, %v6516_v39 }
 0x1fb   :  { %v2012_v14 = vrot.slane %v2005_v28, %v6516_v39  ;;  %v2020_v36 = vrot.slane %v6084_v50, %v6516_v39  ;;  %v7468_v26 = vrot.slane %v4626_v24, %v6516_v39  ;;  %v3929_v27 = vrot.slane %v3915_v51, %v6516_v39 }
 0x1fc   :  { %1554 = vrot.lane.b32.xlu0 %v1328_v13, %s6366_s8  ;;  %v7472_v52 = vpop.permute.xlu0 %5326  ;;  %v3203_v22 = vcombine.low %v7389_v61, %v3195_v6  ;;  %v3204_v28 = vcombine.high %v7389_v61, %v3195_v6  ;;  %v2021_v50 = vcombine.low %v1996_v19, %v2004_v41  ;;  %v3219_v15 = vcombine.low %v7392_v40, %v3202_v4  ;;  %v7490_v6 = vpop.permute.xlu1 %3880 }
 0x1fd   :  { %v2037_v0 = vcombine.low %v2012_v14, %v2020_v36  ;;  %v3220_v47 = vcombine.high %v7392_v40, %v3202_v4  ;;  %v5352_v24 = vcombine.low %v6874_v12, %v7222_v35  ;;  %v5353_v51 = vcombine.high %v6874_v12, %v7222_v35 }
 0x1fe   :  { %v3930_v13 = vcombine.low %v7397_v30, %v3922_v55  ;;  %v3931_v38 = vcombine.high %v7397_v30, %v3922_v55  ;;  %v7485_v20 = vrot.slane %v2021_v50, %v6536_v49  ;;  %v3946_v46 = vcombine.low %v3913_v48, %v3929_v27 }
 0x1ff   :  { %v7488_v61 = vrot.slane %v2037_v0, %v6536_v49  ;;  %v3947_v40 = vcombine.high %v3913_v48, %v3929_v27  ;;  %v4641_v4 = vcombine.low %v6884_v11, %v7291_v33  ;;  %v2022_v57 = vcombine.high %v1996_v19, %v2004_v41 }
 0x200   :  { %9828 = vst [vmem:[#allocation68_spill] sm:$0xff] %v7485_v20  ;;  %v7495_v12 = vrot.slane %v3203_v22, %v6536_v49  ;;  %v7498_v35 = vrot.slane %v3204_v28, %v6536_v49  ;;  %v2038_v55 = vcombine.high %v2012_v14, %v2020_v36  ;;  %v7503_v50 = vrot.slane %v3219_v15, %v6536_v49  ;;  %v7514_v19 = vpop.permute.xlu0 %962 }
 0x201   :  { %9829 = vst [vmem:[#allocation69_spill] sm:$0xff] %v7488_v61  ;;  %v2054_v30 = vcombine.high %v7485_v20, %v7488_v61  ;;  %v7506_v0 = vrot.slane %v3220_v47, %v6536_v49  ;;  %v7509_v48 = vrot.slane %v5352_v24, %v6516_v39  ;;  %v7512_v27 = vrot.slane %v2022_v57, %v6536_v49 }
 0x202   :  { %v7517_v41 = vrot.slane %v3930_v13, %v6536_v49  ;;  %v7520_v22 = vrot.slane %v3931_v38, %v6536_v49  ;;  %v4642_v14 = vcombine.high %v6884_v11, %v7291_v33  ;;  %v7526_v47 = vrot.slane %v2038_v55, %v6536_v49 }
 0x203   :  { %9830 = vst [vmem:[#allocation70_spill] sm:$0xff] %v7512_v27  ;;  %2265 = vrot.lane.b32.xlu0 %v2054_v30, %s6365_s7  ;;  %v7529_v36 = vrot.slane %v5353_v51, %v6516_v39  ;;  %v7532_v57 = vrot.slane %v3946_v46, %v6536_v49  ;;  %v7535_v15 = vrot.slane %v3947_v40, %v6536_v49  ;;  %v7546_v51 = vpop.permute.xlu1 %4607 }
 0x204   :  { %9831 = vst [vmem:[#allocation71_spill] sm:$0xff] %v7526_v47  ;;  %v4649_v38 = vrot.slane %v4641_v4, %v6516_v39  ;;  %v5368_v33 = vcombine.low %v6892_v10, %v7330_v44  ;;  %v2055_v24 = vcombine.low %v7512_v27, %v7526_v47  ;;  %v1921_v40 = vcombine.low %v6882_v17, %v7271_v9  ;;  %v7572_v30 = vpop.permute.xlu0 %1689 }
 0x205   :  { %v1922_v4 = vcombine.high %v6882_v17, %v7271_v9  ;;  %v4656_v55 = vrot.slane %v4642_v14, %v6516_v39  ;;  %v5369_v11 = vcombine.high %v6892_v10, %v7330_v44  ;;  %v9832_v13 = vcombine.low %v7410_v43, %v7413_v3 }
 0x206   :  { %v4657_v9 = vcombine.low %v7453_v29, %v4649_v38  ;;  %v4658_v14 = vcombine.high %v7453_v29, %v4649_v38  ;;  %v5376_v44 = vrot.slane %v5368_v33, %v6516_v39  ;;  %v9834_v17 = vcombine.low %v7434_v8, %v7437_v5 }
 0x207   :  { %2281 = vrot.lane.b32.xlu0 %v2055_v24, %s6366_s8  ;;  %v2723_v46 = vrot.slane %v9832_v13, %v6516_v39  ;;  %v9833_v24 = vcombine.high %v7410_v43, %v7413_v3  ;;  %v7586_v27 = vrot.slane %v1921_v40, %v6516_v39  ;;  %v7589_v29 = vrot.slane %v1922_v4, %v6516_v39  ;;  %v7600_v40 = vpop.permute.xlu1 %5334 }
 0x208   :  { %v2739_v28 = vrot.slane %v9834_v17, %v6516_v39  ;;  %v2648_v38 = vcombine.low %v6890_v32, %v7311_v62  ;;  %v9835_v33 = vcombine.high %v7434_v8, %v7437_v5  ;;  %v4673_v3 = vcombine.low %v7468_v26, %v4656_v55 }
 0x209   :  { %v2731_v13 = vrot.slane %v9833_v24, %v6516_v39  ;;  %v4674_v24 = vcombine.high %v7468_v26, %v4656_v55  ;;  %v5383_v17 = vrot.slane %v5369_v11, %v6516_v39  ;;  %v7603_v4 = vrot.slane %v4657_v9, %v6536_v49 }
 0x20a   :  { %v2747_v43 = vrot.slane %v9835_v33, %v6516_v39  ;;  %v7606_v47 = vrot.slane %v4658_v14, %v6536_v49  ;;  %v2649_v60 = vcombine.high %v6890_v32, %v7311_v62  ;;  %v5384_v5 = vcombine.low %v7509_v48, %v5376_v44  ;;  %v7622_v32 = vpop.permute.xlu0 %2416 }
 0x20b   :  { %v2748_v10 = vcombine.low %v2723_v46, %v2731_v13  ;;  %9836 = vst [vmem:[#allocation72_spill] sm:$0xff] %v7603_v4  ;;  %v5385_v33 = vcombine.high %v7509_v48, %v5376_v44  ;;  %v1937_v26 = vcombine.low %v6908_v59, %v7369_v21  ;;  %v1938_v55 = vcombine.high %v6908_v59, %v7369_v21  ;;  %v9865_v4 = vld [vmem:[#allocation23_spill] sm:$0xff] }
 0x20c   :  { %9837 = vst [vmem:[#allocation73_spill] sm:$0xff] %v7606_v47  ;;  %v2764_v8 = vcombine.low %v2739_v28, %v2747_v43  ;;  %v2749_v14 = vcombine.high %v2723_v46, %v2731_v13  ;;  %v2765_v25 = vcombine.high %v2739_v28, %v2747_v43  ;;  %v7625_v62 = vrot.slane %v4673_v3, %v6536_v49 }
 0x20d   :  { %v7615_v11 = vrot.slane %v2748_v10, %v6536_v49  ;;  %v7628_v48 = vrot.slane %v4674_v24, %v6536_v49  ;;  %v5400_v44 = vcombine.low %v7529_v36, %v5383_v17  ;;  %v9842_v10 = vld [vmem:[#allocation16_spill] sm:$0xff]  ;;  %v5401_v59 = vcombine.high %v7529_v36, %v5383_v17  ;;  %v7652_v24 = vpop.permute.xlu1 %970 }
 0x20e   :  { %v7620_v9 = vrot.slane %v2764_v8, %v6536_v49  ;;  %9840 = vst [vmem:[#allocation76_spill] sm:$0xff] %v7625_v62  ;;  %v3375_v2 = vcombine.low %v9842_v10, %v7354_v42  ;;  %v7637_v28 = vrot.slane %v2749_v14, %v6536_v49  ;;  %v7640_v46 = vrot.slane %v2765_v25, %v6536_v49  ;;  %v7682_v17 = vpop.permute.xlu0 %3143 }
 0x20f   :  { %9838 = vst [vmem:[#allocation74_spill] sm:$0xff] %v7615_v11  ;;  %9841 = vst [vmem:[#allocation77_spill] sm:$0xff] %v7628_v48  ;;  %v7643_v13 = vrot.slane %v2648_v38, %v6516_v39  ;;  %v7646_v43 = vrot.slane %v5384_v5, %v6536_v49  ;;  %v7649_v3 = vrot.slane %v5385_v33, %v6536_v49 }
 0x210   :  { %9839 = vst [vmem:[#allocation75_spill] sm:$0xff] %v7620_v9  ;;  %v2781_v21 = vcombine.high %v7615_v11, %v7620_v9  ;;  %9843 = vst [vmem:[#allocation16_spill] sm:$0xff] %v7637_v28  ;;  %v1945_v36 = vrot.slane %v1937_v26, %v6516_v39  ;;  %v7657_v8 = vrot.slane %v2649_v60, %v6516_v39 }
 0x211   :  { %9844 = vst [vmem:[#allocation78_spill] sm:$0xff] %v7640_v46  ;;  %9845 = vst [vmem:[#allocation79_spill] sm:$0xff] %v7646_v43  ;;  %v1952_v25 = vrot.slane %v1938_v55, %v6516_v39  ;;  %v2664_v38 = vcombine.low %v6916_v18, %v7404_v23  ;;  %v3376_v60 = vcombine.high %v9842_v10, %v7354_v42 }
 0x212   :  { %9846 = vst [vmem:[#allocation80_spill] sm:$0xff] %v7649_v3  ;;  %2992 = vrot.lane.b32.xlu0 %v2781_v21, %s6365_s7  ;;  %v7672_v14 = vrot.slane %v5400_v44, %v6536_v49  ;;  %v7675_v55 = vrot.slane %v5401_v59, %v6536_v49  ;;  %v7678_v21 = vrot.slane %v3375_v2, %v6516_v39 }
 0x213   :  { %v2782_v5 = vcombine.low %v7637_v28, %v7640_v46  ;;  %v1953_v44 = vcombine.low %v7586_v27, %v1945_v36  ;;  %v9849_v10 = vcombine.low %v7495_v12, %v7498_v35  ;;  %v1954_v2 = vcombine.high %v7586_v27, %v1945_v36 }
 0x214   :  { %9847 = vst [vmem:[#allocation81_spill] sm:$0xff] %v7672_v14  ;;  %9848 = vst [vmem:[#allocation82_spill] sm:$0xff] %v7675_v55  ;;  %v1969_v33 = vcombine.low %v7589_v29, %v1952_v25  ;;  %v2665_v48 = vcombine.high %v6916_v18, %v7404_v23  ;;  %v2672_v26 = vrot.slane %v2664_v38, %v6516_v39  ;;  %v7722_v38 = vpop.permute.xlu1 %1697  ;;  %v9858_v14 = vld [vmem:[#allocation21_spill] sm:$0xff] }
 0x215   :  { %v7693_v59 = vrot.slane %v9849_v10, %v6516_v39  ;;  %v7702_v42 = vrot.slane %v3376_v60, %v6516_v39  ;;  %v9850_v3 = vcombine.high %v7495_v12, %v7498_v35  ;;  %v9851_v27 = vcombine.low %v7503_v50, %v7506_v0  ;;  %v7748_v12 = vpop.permute.xlu0 %3870 }
 0x216   :  { %3008 = vrot.lane.b32.xlu0 %v2782_v5, %s6366_s8  ;;  %v9852_v18 = vcombine.high %v7503_v50, %v7506_v0  ;;  %v1970_v35 = vcombine.high %v7589_v29, %v1952_v25  ;;  %v7741_v5 = vrot.slane %v1954_v2, %v6536_v49  ;;  %v7744_v29 = vrot.slane %v1969_v33, %v6536_v49 }
 0x217   :  { %v7708_v10 = vrot.slane %v9850_v3, %v6516_v39  ;;  %v7714_v36 = vrot.slane %v9851_v27, %v6516_v39  ;;  %v9853_v3 = vld [vmem:[#allocation18_spill] sm:$0xff]  ;;  %v7732_v27 = vrot.slane %v1953_v44, %v6536_v49  ;;  %v2679_v25 = vrot.slane %v2665_v48, %v6516_v39 }
 0x218   :  { %v7720_v23 = vrot.slane %v9852_v18, %v6516_v39  ;;  %v4102_v60 = vcombine.low %v9853_v3, %v7386_v7  ;;  %v4103_v50 = vcombine.high %v9853_v3, %v7386_v7  ;;  %v2680_v44 = vcombine.low %v7643_v13, %v2672_v26 }
 0x219   :  { %v3475_v0 = vcombine.low %v7693_v59, %v7708_v10  ;;  %v2681_v7 = vcombine.high %v7643_v13, %v2672_v26  ;;  %v9856_v2 = vcombine.low %v7517_v41, %v7520_v22  ;;  %v7764_v48 = vrot.slane %v1970_v35, %v6536_v49 }
 0x21a   :  { %v3491_v18 = vcombine.low %v7714_v36, %v7720_v23  ;;  %v3391_v43 = vcombine.low %v9858_v14, %v7450_v31  ;;  %v9859_v13 = vcombine.high %v7517_v41, %v7520_v22  ;;  %v3392_v35 = vcombine.high %v9858_v14, %v7450_v31 }
 0x21b   :  { %v7752_v3 = vrot.slane %v3475_v0, %v6536_v49  ;;  %v7761_v33 = vrot.slane %v9856_v2, %v6516_v39  ;;  %v9861_v0 = vcombine.low %v7532_v57, %v7535_v15  ;;  %v7781_v2 = vrot.slane %v4102_v60, %v6516_v39 }
 0x21c   :  { %v7755_v55 = vrot.slane %v3491_v18, %v6536_v49  ;;  %v7772_v26 = vrot.slane %v9859_v13, %v6516_v39  ;;  %v9863_v41 = vcombine.high %v7532_v57, %v7535_v15  ;;  %v7793_v13 = vpop.permute.xlu1 %2424  ;;  %v7799_v60 = vrot.slane %v2680_v44, %v6536_v49 }
 0x21d   :  { %9854 = vst [vmem:[#allocation18_spill] sm:$0xff] %v7752_v3  ;;  %9857 = vst [vmem:[#allocation84_spill] sm:$0xff] %v7761_v33  ;;  %v7778_v18 = vrot.slane %v9861_v0, %v6516_v39  ;;  %v7796_v0 = vrot.slane %v4103_v50, %v6516_v39  ;;  %v2696_v47 = vcombine.low %v7657_v8, %v2679_v25 }
 0x21e   :  { %9855 = vst [vmem:[#allocation83_spill] sm:$0xff] %v7755_v55  ;;  %9860 = vst [vmem:[#allocation21_spill] sm:$0xff] %v7772_v26  ;;  %v3508_v62 = vcombine.high %v7752_v3, %v7755_v55  ;;  %v7791_v22 = vrot.slane %v9863_v41, %v6516_v39  ;;  %v2697_v31 = vcombine.high %v7657_v8, %v2679_v25  ;;  %v7820_v41 = vpop.permute.xlu0 %4597 }
 0x21f   :  { %9862 = vst [vmem:[#allocation85_spill] sm:$0xff] %v7778_v18  ;;  %v7804_v14 = vrot.slane %v2681_v7, %v6536_v49  ;;  %v4118_v57 = vcombine.low %v9865_v4, %v7490_v6  ;;  %v4202_v15 = vcombine.low %v7761_v33, %v7772_v26  ;;  %v3399_v7 = vrot.slane %v3391_v43, %v6516_v39  ;;  %v9868_v43 = vld [vmem:[#allocation19_spill] sm:$0xff]  ;;  %v9878_v33 = vld [vmem:[#allocation24_spill] sm:$0xff] }
 0x220   :  { %9864 = vst [vmem:[#allocation86_spill] sm:$0xff] %v7791_v22  ;;  %3719 = vrot.lane.b32.xlu0 %v3508_v62, %s6365_s7  ;;  %v4218_v50 = vcombine.low %v7778_v18, %v7791_v22  ;;  %v3406_v3 = vrot.slane %v3392_v35, %v6516_v39  ;;  %v7832_v8 = vrot.slane %v2696_v47, %v6536_v49  ;;  %v7848_v46 = vpop.permute.xlu1 %3151 }
 0x221   :  { %v7826_v55 = vrot.slane %v4202_v15, %v6536_v49  ;;  %v7835_v25 = vrot.slane %v2697_v31, %v6536_v49  ;;  %v4829_v28 = vcombine.low %v9868_v43, %v7429_v34  ;;  %v4119_v62 = vcombine.high %v9865_v4, %v7490_v6 }
 0x222   :  { %v7829_v44 = vrot.slane %v4218_v50, %v6536_v49  ;;  %v4126_v15 = vrot.slane %v4118_v57, %v6516_v39  ;;  %v3476_v47 = vcombine.high %v7693_v59, %v7708_v10  ;;  %v3407_v18 = vcombine.low %v7678_v21, %v3399_v7  ;;  %v9869_v59 = vld [vmem:[#allocation25_spill] sm:$0xff] }
 0x223   :  { %9866 = vst [vmem:[#allocation23_spill] sm:$0xff] %v7826_v55  ;;  %v3408_v6 = vcombine.high %v7678_v21, %v3399_v7  ;;  %v3492_v4 = vcombine.high %v7714_v36, %v7720_v23  ;;  %v4830_v57 = vcombine.high %v9868_v43, %v7429_v34  ;;  %v3423_v35 = vcombine.low %v7702_v42, %v3406_v3  ;;  %v7868_v23 = vpop.permute.xlu0 %5324  ;;  %v9870_v34 = vld [vmem:[#allocation20_spill] sm:$0xff] }
 0x224   :  { %9867 = vst [vmem:[#allocation87_spill] sm:$0xff] %v7829_v44  ;;  %v4235_v50 = vcombine.high %v7826_v55, %v7829_v44  ;;  %v3424_v55 = vcombine.high %v7702_v42, %v3406_v3  ;;  %v4845_v10 = vcombine.low %v9869_v59, %v7546_v51  ;;  %v4133_v21 = vrot.slane %v4119_v62, %v6516_v39 }
 0x225   :  { %v3490_v7 = vrot.slane %v3476_v47, %v6536_v49  ;;  %v3506_v36 = vrot.slane %v3492_v4, %v6536_v49  ;;  %v5556_v43 = vcombine.low %v9870_v34, %v7472_v52  ;;  %v4134_v42 = vcombine.low %v7781_v2, %v4126_v15 }
 0x226   :  { %4446 = vrot.lane.b32.xlu0 %v4235_v50, %s6365_s7  ;;  %v4135_v3 = vcombine.high %v7781_v2, %v4126_v15  ;;  %v4846_v50 = vcombine.high %v9869_v59, %v7546_v51  ;;  %v7877_v31 = vrot.slane %v3407_v18, %v6536_v49  ;;  %v7880_v62 = vrot.slane %v3408_v6, %v6536_v49  ;;  %v7893_v18 = vpop.permute.xlu1 %3878 }
 0x227   :  { %v5557_v47 = vcombine.high %v9870_v34, %v7472_v52  ;;  %v3509_v4 = vcombine.low %v3490_v7, %v3506_v36  ;;  %v7887_v22 = vrot.slane %v3423_v35, %v6536_v49  ;;  %v7890_v2 = vrot.slane %v3424_v55, %v6536_v49 }
 0x228   :  { %v4853_v51 = vrot.slane %v4845_v10, %v6516_v39  ;;  %v4837_v15 = vrot.slane %v4829_v28, %v6516_v39  ;;  %v4844_v6 = vrot.slane %v4830_v57, %v6516_v39  ;;  %v4150_v52 = vcombine.low %v7796_v0, %v4133_v21 }
 0x229   :  { %v4151_v59 = vcombine.high %v7796_v0, %v4133_v21  ;;  %v7901_v35 = vrot.slane %v5556_v43, %v6516_v39  ;;  %v7904_v55 = vrot.slane %v4134_v42, %v6536_v49  ;;  %v7907_v10 = vrot.slane %v4135_v3, %v6536_v49  ;;  %v7917_v43 = vpop.permute.xlu0 %968 }
 0x22a   :  { %3735 = vrot.lane.b32.xlu0 %v3509_v4, %s6366_s8  ;;  %v4860_v34 = vrot.slane %v4846_v50, %v6516_v39  ;;  %v7915_v0 = vrot.slane %v5557_v47, %v6516_v39  ;;  %v3510_v21 = vcombine.high %v3490_v7, %v3506_v36  ;;  %v4861_v4 = vcombine.low %v4837_v15, %v4853_v51  ;;  %v9876_v47 = vld [vmem:[#allocation22_spill] sm:$0xff]  ;;  %v9877_v7 = vld [vmem:[#allocation27_spill] sm:$0xff]  ;;  %v7938_v3 = vpop.permute.xlu1 %4605 }
 0x22b   :  { %9871 = vst [vmem:[#allocation19_spill] sm:$0xff] %v7904_v55  ;;  %9872 = vst [vmem:[#allocation25_spill] sm:$0xff] %v7907_v10  ;;  %v4862_v50 = vcombine.high %v4837_v15, %v4853_v51  ;;  %v7924_v44 = vrot.slane %v4150_v52, %v6536_v49  ;;  %v7927_v28 = vrot.slane %v4151_v59, %v6536_v49 }
 0x22c   :  { %9873 = vst [vmem:[#allocation20_spill] sm:$0xff] %v7915_v0  ;;  %v1126_v57 = vcombine.low %v9876_v47, %v7514_v19  ;;  %v5572_v36 = vcombine.low %v9877_v7, %v7600_v40  ;;  %v4877_v15 = vcombine.low %v4844_v6, %v4860_v34  ;;  %v4878_v52 = vcombine.high %v4844_v6, %v4860_v34 }
 0x22d   :  { %9874 = vst [vmem:[#allocation88_spill] sm:$0xff] %v7924_v44  ;;  %9875 = vst [vmem:[#allocation89_spill] sm:$0xff] %v7927_v28  ;;  %v1127_v59 = vcombine.high %v9876_v47, %v7514_v19  ;;  %v1853_v26 = vcombine.low %v9878_v33, %v7572_v30  ;;  %v1142_v11 = vcombine.low %v6998_v37, %v7652_v24 }
 0x22e   :  { %3751 = vrot.lane.b32.xlu0 %v3510_v21, %s6367_s9  ;;  %v1143_v21 = vcombine.high %v6998_v37, %v7652_v24  ;;  %v7949_v42 = vrot.slane %v4861_v4, %v6536_v49  ;;  %v7952_v51 = vrot.slane %v4862_v50, %v6536_v49  ;;  %v1854_v6 = vcombine.high %v9878_v33, %v7572_v30  ;;  %v9881_v37 = vld [vmem:[#allocation29_spill] sm:$0xff]  ;;  %v7964_v4 = vpop.permute.xlu0 %972 }
 0x22f   :  { %v5573_v19 = vcombine.high %v9877_v7, %v7600_v40  ;;  %v1134_v47 = vrot.slane %v1126_v57, %v6516_v39  ;;  %v5580_v10 = vrot.slane %v5572_v36, %v6516_v39  ;;  %v1869_v24 = vcombine.low %v9881_v37, %v7722_v38 }
 0x230   :  { %9879 = vst [vmem:[#allocation22_spill] sm:$0xff] %v7949_v42  ;;  %9880 = vst [vmem:[#allocation27_spill] sm:$0xff] %v7952_v51  ;;  %v7969_v30 = vrot.slane %v4877_v15, %v6536_v49  ;;  %v7972_v40 = vrot.slane %v4878_v52, %v6536_v49  ;;  %v1870_v33 = vcombine.high %v9881_v37, %v7722_v38  ;;  %v9885_v52 = vld [vmem:[#allocation26_spill] sm:$0xff]  ;;  %v7988_v38 = vpop.permute.xlu1 %5332 }
 0x231   :  { %v1141_v57 = vrot.slane %v1127_v59, %v6516_v39  ;;  %v1861_v7 = vrot.slane %v1853_v26, %v6516_v39  ;;  %v1150_v36 = vrot.slane %v1142_v11, %v6516_v39  ;;  %v1157_v34 = vrot.slane %v1143_v21, %v6516_v39  ;;  %9886 = vst [vmem:[#allocation26_spill] sm:$0xff] %v7988_v38 }
 0x232   :  { %9882 = vst [vmem:[#allocation24_spill] sm:$0xff] %v7969_v30  ;;  %9883 = vst [vmem:[#allocation29_spill] sm:$0xff] %v7972_v40  ;;  %v1868_v15 = vrot.slane %v1854_v6, %v6516_v39  ;;  %v7984_v28 = vrot.slane %v5573_v19, %v6516_v39  ;;  %v2580_v44 = vcombine.low %v9885_v52, %v7622_v32  ;;  %v8002_v42 = vpop.permute.xlu0 %795  ;;  %v9887_v19 = vld [vmem:[#allocation28_spill] sm:$0xff] }
 0x233   :  { %v5588_v11 = vcombine.low %v7901_v35, %v5580_v10  ;;  %v2581_v59 = vcombine.high %v9885_v52, %v7622_v32  ;;  %v1877_v21 = vrot.slane %v1869_v24, %v6516_v39  ;;  %v5589_v37 = vcombine.high %v7901_v35, %v5580_v10 }
 0x234   :  { %9884 = vst [vmem:[#allocation90_spill] sm:$0xff] %v7984_v28  ;;  %v1884_v50 = vrot.slane %v1870_v33, %v6516_v39  ;;  %v1158_v55 = vcombine.low %v1134_v47, %v1150_v36  ;;  %v1159_v9 = vcombine.high %v1134_v47, %v1150_v36  ;;  %v1174_v26 = vcombine.low %v1141_v57, %v1157_v34  ;;  %v8024_v6 = vpop.permute.xlu1 %811 }
 0x235   :  { %v1175_v51 = vcombine.high %v1141_v57, %v1157_v34  ;;  %v5604_v32 = vcombine.low %v7915_v0, %v7984_v28  ;;  %v8009_v52 = vrot.slane %v2580_v44, %v6516_v39  ;;  %v3307_v35 = vcombine.low %v9887_v19, %v7682_v17 }
 0x236   :  { %v8014_v10 = vrot.slane %v5588_v11, %v6536_v49  ;;  %v8017_v47 = vrot.slane %v2581_v59, %v6516_v39  ;;  %v1885_v34 = vcombine.low %v1861_v7, %v1877_v21  ;;  %v1886_v33 = vcombine.high %v1861_v7, %v1877_v21 }
 0x237   :  { %v8020_v57 = vrot.slane %v5589_v37, %v6536_v49  ;;  %v3308_v36 = vcombine.high %v9887_v19, %v7682_v17  ;;  %v1901_v24 = vcombine.low %v1868_v15, %v1884_v50  ;;  %v1902_v44 = vcombine.high %v1868_v15, %v1884_v50  ;;  %v9891_v50 = vld [vmem:[#allocation30_spill] sm:$0xff]  ;;  %v9894_v37 = vld [vmem:[#allocation15_spill] sm:$0xff] }
 0x238   :  { %9888 = vst [vmem:[#allocation28_spill] sm:$0xff] %v8014_v10  ;;  %v8027_v28 = vrot.slane %v1158_v55, %v6536_v49  ;;  %v8030_v11 = vrot.slane %v1159_v9, %v6536_v49  ;;  %v8033_v59 = vrot.slane %v1174_v26, %v6536_v49  ;;  %v8036_v7 = vrot.slane %v1175_v51, %v6536_v49  ;;  %v9893_v51 = vld [vmem:[#allocation31_spill] sm:$0xff]  ;;  %v8089_v0 = vpop.permute.xlu1 %827 }
 0x239   :  { %9889 = vst [vmem:[#allocation91_spill] sm:$0xff] %v8020_v57  ;;  %v8039_v21 = vrot.slane %v5604_v32, %v6536_v49  ;;  %v8042_v17 = vrot.slane %v3307_v35, %v6516_v39  ;;  %v4034_v15 = vcombine.low %v9891_v50, %v7748_v12  ;;  %v4035_v55 = vcombine.high %v9891_v50, %v7748_v12  ;;  %v8058_v35 = vpop.permute.xlu0 %793 }
 0x23a   :  { %v8049_v9 = vrot.slane %v1885_v34, %v6536_v49  ;;  %v8052_v26 = vrot.slane %v1886_v33, %v6536_v49  ;;  %v2596_v19 = vcombine.low %v9893_v51, %v7793_v13  ;;  %v1074_v32 = vcombine.low %v9894_v37, %v7917_v43 }
 0x23b   :  { %9890 = vst [vmem:[#allocation92_spill] sm:$0xff] %v8039_v21  ;;  %v8061_v21 = vrot.slane %v3308_v36, %v6516_v39  ;;  %v8064_v10 = vrot.slane %v1901_v24, %v6536_v49  ;;  %v8067_v12 = vrot.slane %v1902_v44, %v6536_v49  ;;  %v2597_v34 = vcombine.high %v9893_v51, %v7793_v13  ;;  %v9898_v51 = vld [vmem:[#allocation32_spill] sm:$0xff] }
 0x23c   :  { %9892 = vst [vmem:[#allocation30_spill] sm:$0xff] %v8052_v26  ;;  %v1075_v36 = vcombine.high %v9894_v37, %v7917_v43  ;;  %v8082_v44 = vrot.slane %v4034_v15, %v6516_v39  ;;  %v8085_v13 = vrot.slane %v4035_v55, %v6516_v39  ;;  %v4761_v33 = vcombine.low %v9898_v51, %v7820_v41  ;;  %v9899_v37 = vld [vmem:[#allocation17_spill] sm:$0xff]  ;;  %v800_v1 = vpop.permute.xlu1 %799 }
 0x23d   :  { %9895 = vst [vmem:[#allocation31_spill] sm:$0xff] %v8064_v10  ;;  %9896 = vst [vmem:[#allocation15_spill] sm:$0xff] %v8067_v12  ;;  %v2604_v50 = vrot.slane %v2596_v19, %v6516_v39  ;;  %v1082_v43 = vrot.slane %v1074_v32, %v6516_v39  ;;  %v1210_v24 = vcombine.low %v9899_v37, %v7964_v4  ;;  %v9900_v32 = vld [vmem:[#allocation33_spill] sm:$0xff]  ;;  %v8111_v15 = vpop.permute.xlu0 %809 }
 0x23e   :  { %9897 = vst [vmem:[#allocation93_spill] sm:$0xff] %v8085_v13  ;;  %v2611_v40 = vrot.slane %v2597_v34, %v6516_v39  ;;  %v1211_v30 = vcombine.high %v9899_v37, %v7964_v4  ;;  %v4762_v19 = vcombine.high %v9898_v51, %v7820_v41  ;;  %v3323_v54 = vcombine.low %v9900_v32, %v7848_v46  ;;  %v9902_v4 = vld [vmem:[#allocation34_spill] sm:$0xff] }
 0x23f   :  { %v1089_v38 = vrot.slane %v1075_v36, %v6516_v39  ;;  %v8114_v55 = vrot.slane %v4761_v33, %v6516_v39  ;;  %v3324_v34 = vcombine.high %v9900_v32, %v7848_v46  ;;  %v5488_v37 = vcombine.low %v9902_v4, %v7868_v23  ;;  %v9903_v51 = vld [vmem:[#allocation38_spill] sm:$0xff] }
 0x240   :  { %v2612_v41 = vcombine.low %v8009_v52, %v2604_v50  ;;  %v1090_v20 = vcombine.low %v9903_v51, %v1082_v43  ;;  %v1091_v36 = vcombine.high %v9903_v51, %v1082_v43  ;;  %v1218_v61 = vrot.slane %v1210_v24, %v6516_v39  ;;  %v9906_v51 = vld [vmem:[#allocation40_spill] sm:$0xff] }
 0x241   :  { %9901 = vst [vmem:[#allocation32_spill] sm:$0xff] %v8114_v55  ;;  %v2613_v33 = vcombine.high %v8009_v52, %v2604_v50  ;;  %v2628_v55 = vcombine.low %v8017_v47, %v2611_v40  ;;  %v2629_v46 = vcombine.high %v8017_v47, %v2611_v40  ;;  %v1225_v32 = vrot.slane %v1211_v30, %v6516_v39  ;;  %v9907_v50 = vld [vmem:[#allocation41_spill] sm:$0xff] }
 0x242   :  { %v8131_v58 = vrot.slane %v4762_v19, %v6516_v39  ;;  %v3331_v57 = vrot.slane %v3323_v54, %v6516_v39  ;;  %v1106_v12 = vcombine.low %v9905_v53, %v1089_v38  ;;  %v1107_v43 = vcombine.high %v9905_v53, %v1089_v38 }
 0x243   :  { %v1226_v24 = vcombine.low %v9906_v51, %v1218_v61  ;;  %v1227_v52 = vcombine.high %v9906_v51, %v1218_v61  ;;  %v1242_v10 = vcombine.low %v9907_v50, %v1225_v32  ;;  %v1243_v40 = vcombine.high %v9907_v50, %v1225_v32  ;;  %v816_v50 = vpop.permute.xlu1 %815 }
 0x244   :  { %9904 = vst [vmem:[#allocation17_spill] sm:$0xff] %v8131_v58  ;;  %v8141_v30 = vrot.slane %v3324_v34, %v6516_v39  ;;  %v8144_v47 = vrot.slane %v5488_v37, %v6516_v39  ;;  %v1098_v54 = vrot.slane %v1090_v20, %v6536_v49  ;;  %v1105_v19 = vrot.slane %v1091_v36, %v6536_v49  ;;  %v8148_v58 = vpop.permute.xlu0 %825 }
 0x245   :  { %v1234_v53 = vrot.slane %v1226_v24, %v6536_v49  ;;  %v1241_v61 = vrot.slane %v1227_v52, %v6536_v49  ;;  %v1250_v38 = vrot.slane %v1242_v10, %v6536_v49  ;;  %v1257_v32 = vrot.slane %v1243_v40, %v6536_v49 }
 0x246   :  { %9908 = vst [vmem:[#allocation33_spill] sm:$0xff] %v8144_v47  ;;  %v8155_v34 = vrot.slane %v2612_v41, %v6536_v49  ;;  %v8158_v37 = vrot.slane %v2613_v33, %v6536_v49  ;;  %v8161_v20 = vrot.slane %v2628_v55, %v6536_v49  ;;  %v8164_v36 = vrot.slane %v2629_v46, %v6536_v49 }
 0x247   :  { %v3339_v51 = vcombine.low %v8042_v17, %v3331_v57  ;;  %v3340_v24 = vcombine.high %v8042_v17, %v3331_v57  ;;  %v1114_v10 = vrot.slane %v1106_v12, %v6536_v49  ;;  %v1121_v52 = vrot.slane %v1107_v43, %v6536_v49  ;;  %v9913_v57 = vld [vmem:[#allocation7_spill] sm:$0xff] }
 0x248   :  { %9909 = vst [vmem:[#allocation34_spill] sm:$0xff] %v8155_v34  ;;  %9910 = vst [vmem:[#allocation38_spill] sm:$0xff] %v8158_v37  ;;  %v1466_v41 = vcombine.low %v1234_v53, %v1241_v61  ;;  %v6080_v40 = vcombine.high %v1234_v53, %v1241_v61  ;;  %v1482_v47 = vcombine.low %v1250_v38, %v1257_v32  ;;  %v8180_v43 = vpop.permute.xlu0 %813  ;;  %v9914_v53 = vld [vmem:[#allocation8_spill] sm:$0xff] }
 0x249   :  { %9911 = vst [vmem:[#allocation39_spill] sm:$0xff] %v8161_v20  ;;  %9912 = vst [vmem:[#allocation40_spill] sm:$0xff] %v8164_v36  ;;  %v6081_v33 = vcombine.high %v1250_v38, %v1257_v32  ;;  %v3355_v55 = vcombine.low %v8061_v21, %v8141_v30  ;;  %v1330_v13 = vcombine.low %v1098_v54, %v1105_v19  ;;  %v9918_v20 = vld [vmem:[#allocation9_spill] sm:$0xff] }
 0x24a   :  { %v6076_v26 = vcombine.high %v1098_v54, %v1105_v19  ;;  %v8185_v61 = vrot.slane %v3339_v51, %v6536_v49  ;;  %v1346_v38 = vcombine.low %v1114_v10, %v1121_v52  ;;  %v6077_v54 = vcombine.high %v1114_v10, %v1121_v52 }
 0x24b   :  { %v8188_v19 = vrot.slane %v1466_v41, %v6516_v39  ;;  %v8191_v32 = vrot.slane %v6080_v40, %v6516_v39  ;;  %v8194_v17 = vrot.slane %v1482_v47, %v6516_v39  ;;  %v8197_v12 = vrot.slane %v6081_v33, %v6516_v39  ;;  %v832_v41 = vpop.permute.xlu1 %831  ;;  %v9917_v33 = vld [vmem:[#allocation35_spill] sm:$0xff] }
 0x24c   :  { %v9915_v46 = vcombine.low %v9913_v57, %v9914_v53  ;;  %v1337_v10 = vrot.slane %v1330_v13, %v6516_v39  ;;  %v1345_v52 = vrot.slane %v6076_v26, %v6516_v39  ;;  %v8207_v40 = vrot.slane %v3340_v24, %v6536_v49  ;;  %v9919_v57 = vld [vmem:[#allocation10_spill] sm:$0xff]  ;;  %v9922_v13 = vld [vmem:[#allocation12_spill] sm:$0xff] }
 0x24d   :  { %v8210_v47 = vrot.slane %v3355_v55, %v6536_v49  ;;  %v9920_v53 = vcombine.low %v9918_v20, %v9919_v57  ;;  %v1353_v24 = vrot.slane %v1346_v38, %v6516_v39  ;;  %v1361_v34 = vrot.slane %v6077_v54, %v6516_v39  ;;  %v830_v57 = vpop.permute.xlu0 %829 }
 0x24e   :  { %v839_v51 = vsel %vm837_vm1, %v9915_v46, %v8002_v42  ;;  %v9921_v46 = vld [vmem:[#allocation11_spill] sm:$0xff]  ;;  %v1362_v55 = vcombine.low %v1337_v10, %v1345_v52  ;;  %v1498_v20 = vcombine.low %v8188_v19, %v8191_v32 }
 0x24f   :  { %9916 = vst [vmem:[#allocation41_spill] sm:$0xff] %v8210_v47  ;;  %v838_v42 = vsel %vm837_vm1, %v9920_v53, %v8058_v35  ;;  %v9923_v37 = vcombine.low %v9921_v46, %v9922_v13  ;;  %v844_v47 = vsel %vm842_vm2, %v839_v51, %v8024_v6  ;;  %v1514_v35 = vcombine.low %v8194_v17, %v8197_v12 }
 0x250   :  { %v8233_v53 = vrot.slane %v1362_v55, %v6536_v49  ;;  %v1379_v38 = vcombine.high %v1353_v24, %v1361_v34  ;;  %v8236_v54 = vrot.slane %v1498_v20, %v6536_v49  ;;  %v9729_v13 = vmov 0.0  }
 0x251   :  { %v841_v26 = vsel %vm837_vm1, %v9923_v37, %v800_v1  ;;  %v1378_v1 = vcombine.low %v1353_v24, %v1361_v34  ;;  %v1363_v37 = vcombine.high %v1337_v10, %v1345_v52  ;;  %v8239_v6 = vrot.slane %v1514_v35, %v6536_v49  ;;  %6229 = vmatprep.subr.mxu1 %v9729_v13  ;;  %v798_v34 = vpop.permute.xlu1 %797  ;;  %v8268_v35 = vpop.permute.xlu0 %3721 }
 0x252   :  { %v846_v36 = vsel %vm842_vm2, %v841_v26, %v816_v50  ;;  %9924 = vst [vmem:[#allocation7_spill] sm:$0xff] %v8233_v53  ;;  %9925 = vst [vmem:[#allocation8_spill] sm:$0xff] %v8236_v54  ;;  %v1393_v46 = vrot.slane %v1379_v38, %v6536_v49  ;;  %v9928_v26 = vcombine.low %v7732_v27, %v7741_v5  ;;  %6273 = vmatprep.subr.mxu0 %v9729_v13 }
 0x253   :  { %9926 = vst [vmem:[#allocation35_spill] sm:$0xff] %v8239_v6  ;;  %v8242_v50 = vrot.slane %v1378_v1, %v6536_v49  ;;  %v1377_v51 = vrot.slane %v1363_v37, %v6536_v49  ;;  %v851_v10 = vsel %vm847_vm3, %v846_v36, %v832_v41  ;;  %v1531_v52 = vcombine.high %v8236_v54, %v8239_v6 }
 0x254   :  { %6230 = vmatpush3.msra.mxu1 %v851_v10  ;;  %v8254_v24 = vrot.slane %v9928_v26, %v6516_v39  ;;  %v9929_v55 = vcombine.high %v7732_v27, %v7741_v5  ;;  %v9930_v36 = vcombine.low %v7744_v29, %v7764_v48  ;;  %v843_v1 = vsel %vm842_vm2, %v838_v42, %v8111_v15  ;;  %v9932_v26 = vld [vmem:[#allocation13_spill] sm:$0xff] }
 0x255   :  { %9927 = vst [vmem:[#allocation9_spill] sm:$0xff] %v8242_v50  ;;  %v1395_v37 = vcombine.high %v8233_v53, %v8242_v50  ;;  %v1396_v38 = vcombine.low %v1377_v51, %v1393_v46  ;;  %v9931_v5 = vcombine.high %v7744_v29, %v7764_v48  ;;  %6231 = vmatprep.subr.mxu1 %v9729_v13  ;;  %v8350_v13 = vpop.permute.xlu0 %4448 }
 0x256   :  { %v8260_v20 = vrot.slane %v9929_v55, %v6516_v39  ;;  %v8266_v41 = vrot.slane %v9930_v36, %v6516_v39  ;;  %1544 = vrot.lane.b32.xlu0 %v1531_v52, %s6365_s7  ;;  %v9933_v55 = vld [vmem:[#allocation14_spill] sm:$0xff]  ;;  %v9935_v36 = vcombine.low %v7799_v60, %v7804_v14  ;;  %v9936_v29 = vcombine.high %v7799_v60, %v7804_v14 }
 0x257   :  { %v8278_v27 = vrot.slane %v9931_v5, %v6516_v39  ;;  %v9934_v15 = vcombine.low %v9932_v26, %v9933_v55  ;;  %1540 = vrot.lane.b32.xlu1 %v1395_v37, %s6365_s7  ;;  %v9938_v26 = vcombine.high %v7832_v8, %v7835_v25  ;;  %v9939_v60 = vcombine.low %v7103_v56, %v7106_v63 }
 0x258   :  { %v2225_v10 = vcombine.low %v8254_v24, %v8260_v20  ;;  %v8292_v54 = vrot.slane %v9935_v36, %v6516_v39  ;;  %v8298_v48 = vrot.slane %v9936_v29, %v6516_v39  ;;  %v9941_v36 = vcombine.high %v7103_v56, %v7106_v63  ;;  %9948 = vst [vmem:[#allocation13_spill] sm:$0xff] %v8350_v13 }
 0x259   :  { %v840_v42 = vsel %vm837_vm1, %v9934_v15, %v798_v34  ;;  %v2241_v52 = vcombine.low %v8266_v41, %v8278_v27  ;;  %v9937_v34 = vcombine.low %v7832_v8, %v7835_v25  ;;  %v8313_v55 = vrot.slane %v9938_v26, %v6516_v39  ;;  %v9942_v8 = vld [vmem:[#allocation42_spill] sm:$0xff]  ;;  %v9943_v25 = vld [vmem:[#allocation43_spill] sm:$0xff] }
 0x25a   :  { %v2064_v14 = vrot.slane %v9939_v60, %v6516_v39  ;;  %v8320_v37 = vrot.slane %v2225_v10, %v6536_v49  ;;  %v2952_v15 = vcombine.low %v8292_v54, %v8298_v48  ;;  %v2072_v29 = vrot.slane %v9941_v36, %v6516_v39 }
 0x25b   :  { %v8307_v5 = vrot.slane %v9937_v34, %v6516_v39  ;;  %v9944_v34 = vcombine.low %v9942_v8, %v9943_v25  ;;  %v8334_v60 = vrot.slane %v2241_v52, %v6536_v49  ;;  %v9946_v6 = vcombine.high %v9942_v8, %v9943_v25  ;;  %1556 = vrot.lane.b32.xlu1 %v1396_v38, %s6366_s8 }
 0x25c   :  { %9940 = vst [vmem:[#allocation10_spill] sm:$0xff] %v8320_v37  ;;  %v845_v56 = vsel %vm842_vm2, %v840_v42, %v8180_v43  ;;  %v8345_v63 = vrot.slane %v2952_v15, %v6536_v49  ;;  %v2089_v36 = vcombine.low %v2064_v14, %v2072_v29  ;;  %v849_v52 = vsel %vm847_vm3, %v844_v47, %v8089_v0 }
 0x25d   :  { %v2080_v26 = vrot.slane %v9944_v34, %v6516_v39  ;;  %9945 = vst [vmem:[#allocation11_spill] sm:$0xff] %v8334_v60  ;;  %v2968_v10 = vcombine.low %v8307_v5, %v8313_v55  ;;  %v2088_v53 = vrot.slane %v9946_v6, %v6516_v39  ;;  %v850_v34 = vsel %vm847_vm3, %v845_v56, %v830_v57 }
 0x25e   :  { %9947 = vst [vmem:[#allocation12_spill] sm:$0xff] %v8345_v63  ;;  %v2258_v8 = vcombine.high %v8320_v37, %v8334_v60  ;;  %6232 = vmatpush3.msra.mxu1 %v850_v34  ;;  %v8359_v42 = vrot.slane %v2089_v36, %v6536_v49  ;;  %v9951_v15 = vmov 0.0   ;;  %v9952_v0 = vcombine.low %v7877_v31, %v7880_v62 }
 0x25f   :  { %v8356_v6 = vrot.slane %v2968_v10, %v6536_v49  ;;  %v2105_v43 = vcombine.low %v2080_v26, %v2088_v53  ;;  %6233 = vmatprep.subr.mxu1 %v9951_v15  ;;  %v9953_v57 = vcombine.high %v7877_v31, %v7880_v62  ;;  %v9954_v25 = vcombine.low %v7887_v22, %v7890_v2 }
 0x260   :  { %9950 = vst [vmem:[#allocation42_spill] sm:$0xff] %v8359_v42  ;;  %v3654_v47 = vrot.slane %v9952_v0, %v6516_v39  ;;  %2271 = vrot.lane.b32.xlu0 %v2258_v8, %s6365_s7  ;;  %v1397_v56 = vcombine.high %v1377_v51, %v1393_v46  ;;  %6234 = vmatpush3.msra.mxu1 %v849_v52 }
 0x261   :  { %9949 = vst [vmem:[#allocation14_spill] sm:$0xff] %v8356_v6  ;;  %v3662_v38 = vrot.slane %v9953_v57, %v6516_v39  ;;  %v3670_v10 = vrot.slane %v9954_v25, %v6516_v39  ;;  %v8376_v36 = vrot.slane %v2105_v43, %v6536_v49  ;;  %v9956_v34 = vcombine.high %v7887_v22, %v7890_v2 }
 0x262   :  { %v2090_v31 = vcombine.high %v2064_v14, %v2072_v29  ;;  %v2106_v62 = vcombine.high %v2080_v26, %v2088_v53  ;;  %6235 = vmatprep.subr.mxu1 %v9951_v15  ;;  %v848_v57 = vsel %vm847_vm3, %v843_v1, %v8148_v58  ;;  %1572 = vrot.lane.b32.xlu1 %v1397_v56, %s6367_s9  ;;  %v3738_v29 = vpop.permute.xlu0 %3737 }
 0x263   :  { %9955 = vst [vmem:[#allocation43_spill] sm:$0xff] %v8376_v36  ;;  %v3678_v0 = vrot.slane %v9956_v34, %v6516_v39  ;;  %v3679_v37 = vcombine.low %v3654_v47, %v3662_v38  ;;  %v2985_v51 = vcombine.high %v8345_v63, %v8356_v6  ;;  %6236 = vmatpush3.msra.mxu1 %v848_v57  ;;  %v9993_v6 = vld [vmem:[#allocation50_spill] sm:$0xff] }
 0x264   :  { %v3680_v52 = vcombine.high %v3654_v47, %v3662_v38  ;;  %v2122_v22 = vcombine.high %v8359_v42, %v8376_v36  ;;  %v2104_v53 = vrot.slane %v2090_v31, %v6536_v49  ;;  %6240 = vmatprep.subr.mxu1 %v9951_v15  ;;  %v2120_v1 = vrot.slane %v2106_v62, %v6536_v49  ;;  %v9967_v31 = vld [vmem:[#allocation45_spill] sm:$0xff] }
 0x265   :  { %v3695_v46 = vcombine.low %v3670_v10, %v3678_v0  ;;  %v8391_v2 = vrot.slane %v3679_v37, %v6536_v49  ;;  %v3696_v14 = vcombine.high %v3670_v10, %v3678_v0  ;;  %2998 = vrot.lane.b32.xlu0 %v2985_v51, %s6365_s7  ;;  %v9959_v26 = vcombine.low %v8027_v28, %v8030_v11  ;;  %v9966_v0 = vld [vmem:[#allocation44_spill] sm:$0xff] }
 0x266   :  { %v9960_v37 = vcombine.high %v8027_v28, %v8030_v11  ;;  %v9961_v47 = vcombine.high %v8061_v21, %v8141_v30  ;;  %v8415_v25 = vrot.slane %v3680_v52, %v6536_v49  ;;  %v9964_v56 = vcombine.low %v8033_v59, %v8036_v7  ;;  %2267 = vrot.lane.b32.xlu1 %v2122_v22, %s6365_s7  ;;  %v9970_v22 = vld [vmem:[#allocation46_spill] sm:$0xff] }
 0x267   :  { %9957 = vst [vmem:[#allocation94_spill] sm:$0xff] %v8391_v2  ;;  %v8397_v58 = vrot.slane %v3695_v46, %v6536_v49  ;;  %v1405_v8 = vrot.slane %v9959_v26, %v6516_v39  ;;  %v8418_v10 = vrot.slane %v3696_v14, %v6536_v49  ;;  %v9965_v11 = vcombine.high %v8033_v59, %v8036_v7  ;;  %v9971_v14 = vld [vmem:[#allocation47_spill] sm:$0xff] }
 0x268   :  { %v1413_v43 = vrot.slane %v9960_v37, %v6516_v39  ;;  %v8412_v38 = vrot.slane %v9961_v47, %v6536_v49  ;;  %9962 = vst [vmem:[#allocation96_spill] sm:$0xff] %v8415_v25  ;;  %v1421_v34 = vrot.slane %v9964_v56, %v6516_v39  ;;  %v9968_v62 = vcombine.low %v9966_v0, %v9967_v31 }
 0x269   :  { %9958 = vst [vmem:[#allocation95_spill] sm:$0xff] %v8397_v58  ;;  %9963 = vst [vmem:[#allocation97_spill] sm:$0xff] %v8418_v10  ;;  %v3712_v28 = vcombine.high %v8391_v2, %v8397_v58  ;;  %v1429_v21 = vrot.slane %v9965_v11, %v6516_v39  ;;  %v4051_v51 = vcombine.high %v9917_v33, %v7893_v18  ;;  %6237 = vmatprep.mubr.msk.f32.mxu1 %vm6369_vm4, %v9951_v15 }
 0x26a   :  { %v1430_v30 = vcombine.low %v1405_v8, %v1413_v43  ;;  %v2791_v57 = vrot.slane %v9968_v62, %v6516_v39  ;;  %v9969_v46 = vcombine.high %v9966_v0, %v9967_v31  ;;  %v9972_v26 = vcombine.low %v9970_v22, %v9971_v14  ;;  %v1539_v47 = vpop.permute.xlu0 %1538  ;;  %6281 = vmatprep.mubr.msk.f32.mxu0 %vm6369_vm4, %v9951_v15 }
 0x26b   :  { %v9973_v7 = vcombine.high %v9970_v22, %v9971_v14  ;;  %v9974_v56 = vcombine.high %v9902_v4, %v7868_v23  ;;  %v9975_v0 = vcombine.low %v9917_v33, %v7893_v18  ;;  %3725 = vrot.lane.b32.xlu0 %v3712_v28, %s6365_s7  ;;  %v2123_v62 = vcombine.low %v2104_v53, %v2120_v1 }
 0x26c   :  { %v2799_v52 = vrot.slane %v9969_v46, %v6516_v39  ;;  %v2807_v59 = vrot.slane %v9972_v26, %v6516_v39  ;;  %v1446_v46 = vcombine.low %v1421_v34, %v1429_v21  ;;  %v3575_v22 = vcombine.low %v7217_v45, %v7220_v16 }
 0x26d   :  { %v2815_v37 = vrot.slane %v9973_v7, %v6516_v39  ;;  %v8453_v11 = vrot.slane %v9974_v56, %v6516_v39  ;;  %v4058_v31 = vrot.slane %v9975_v0, %v6516_v39  ;;  %v1431_v14 = vcombine.high %v1405_v8, %v1413_v43  ;;  %2283 = vrot.lane.b32.xlu1 %v2123_v62, %s6366_s8  ;;  %v9983_v62 = vld [vmem:[#allocation93_spill] sm:$0xff] }
 0x26e   :  { %v2816_v26 = vcombine.low %v2791_v57, %v2799_v52  ;;  %v3713_v23 = vcombine.low %v8415_v25, %v8418_v10  ;;  %v8466_v4 = vrot.slane %v1430_v30, %v6536_v49  ;;  %v8469_v18 = vrot.slane %v1446_v46, %v6536_v49 }
 0x26f   :  { %v2832_v63 = vcombine.low %v2807_v59, %v2815_v37  ;;  %v1447_v33 = vcombine.high %v1421_v34, %v1429_v21  ;;  %v4065_v28 = vrot.slane %v4051_v51, %v6516_v39  ;;  %v2124_v7 = vcombine.high %v2104_v53, %v2120_v1  ;;  %v1555_v34 = vpop.permute.xlu0 %1554  ;;  %v9979_v53 = vld [vmem:[#allocation36_spill] sm:$0xff] }
 0x270   :  { %9976 = vst [vmem:[#allocation44_spill] sm:$0xff] %v8466_v4  ;;  %9977 = vst [vmem:[#allocation45_spill] sm:$0xff] %v8469_v18  ;;  %v3764_v56 = vsel %vm837_vm1, %v3575_v22, %v8268_v35  ;;  %v2817_v45 = vcombine.high %v2791_v57, %v2799_v52  ;;  %3741 = vrot.lane.b32.xlu0 %v3713_v23, %s6366_s8  ;;  %v8476_v16 = vrot.slane %v2816_v26, %v6536_v49  ;;  %v9984_v26 = vld [vmem:[#allocation31_spill] sm:$0xff] }
 0x271   :  { %v8479_v8 = vrot.slane %v2832_v63, %v6536_v49  ;;  %v2833_v43 = vcombine.high %v2807_v59, %v2815_v37  ;;  %v8482_v30 = vsel %vm842_vm2, %v3764_v56, %v3738_v29  ;;  %v4066_v21 = vcombine.low %v8082_v44, %v4058_v31  ;;  %2299 = vrot.lane.b32.xlu1 %v2124_v7, %s6367_s9  ;;  %v9980_v29 = vld [vmem:[#allocation30_spill] sm:$0xff]  ;;  %v9985_v22 = vld [vmem:[#allocation15_spill] sm:$0xff] }
 0x272   :  { %9978 = vst [vmem:[#allocation46_spill] sm:$0xff] %v8482_v30  ;;  %v4777_v1 = vcombine.low %v9979_v53, %v7938_v3  ;;  %v4778_v35 = vcombine.high %v9979_v53, %v7938_v3  ;;  %v1445_v57 = vrot.slane %v1431_v14, %v6536_v49  ;;  %v1463_v63 = vcombine.high %v8466_v4, %v8469_v18 }
 0x273   :  { %v1461_v51 = vrot.slane %v1447_v33, %v6536_v49  ;;  %v9981_v52 = vcombine.low %v8049_v9, %v9980_v29  ;;  %v9982_v37 = vcombine.high %v8049_v9, %v9980_v29  ;;  %v4067_v3 = vcombine.high %v8082_v44, %v4058_v31 }
 0x274   :  { %v4082_v46 = vcombine.low %v9983_v62, %v4065_v28  ;;  %v9986_v14 = vcombine.low %v9984_v26, %v9985_v22  ;;  %v9987_v33 = vcombine.high %v9984_v26, %v9985_v22  ;;  %1542 = vrot.lane.b32.xlu0 %v1463_v63, %s6365_s7  ;;  %v2849_v9 = vcombine.high %v8476_v16, %v8479_v8  ;;  %v9989_v26 = vld [vmem:[#allocation64_spill] sm:$0xff] }
 0x275   :  { %v2132_v59 = vrot.slane %v9981_v52, %v6516_v39  ;;  %v2140_v0 = vrot.slane %v9982_v37, %v6516_v39  ;;  %v2831_v44 = vrot.slane %v2817_v45, %v6536_v49  ;;  %v2847_v31 = vrot.slane %v2833_v43, %v6536_v49  ;;  %v9988_v37 = vld [vmem:[#allocation65_spill] sm:$0xff]  ;;  %v2266_v56 = vpop.permute.xlu0 %2265 }
 0x276   :  { %v2148_v23 = vrot.slane %v9986_v14, %v6516_v39  ;;  %v2156_v7 = vrot.slane %v9987_v33, %v6516_v39  ;;  %v4083_v29 = vcombine.high %v9983_v62, %v4065_v28  ;;  %v4785_v52 = vrot.slane %v4777_v1, %v6516_v39  ;;  %2994 = vrot.lane.b32.xlu1 %v2849_v9, %s6365_s7  ;;  %v9990_v62 = vld [vmem:[#allocation49_spill] sm:$0xff] }
 0x277   :  { %v1326_v22 = vcombine.low %v9989_v26, %v9988_v37  ;;  %v8526_v14 = vrot.slane %v4066_v21, %v6536_v49  ;;  %v1464_v63 = vcombine.low %v1445_v57, %v1461_v51  ;;  %v2157_v33 = vcombine.low %v2132_v59, %v2140_v0  ;;  %v9991_v37 = vld [vmem:[#allocation48_spill] sm:$0xff]  ;;  %v9992_v26 = vld [vmem:[#allocation51_spill] sm:$0xff] }
 0x278   :  { %v2173_v45 = vcombine.low %v2148_v23, %v2156_v7  ;;  %v8530_v43 = vrot.slane %v4067_v3, %v6536_v49  ;;  %v8533_v53 = vrot.slane %v4082_v46, %v6536_v49  ;;  %v4792_v28 = vrot.slane %v4778_v35, %v6516_v39  ;;  %v9995_v46 = vld [vmem:[#allocation32_spill] sm:$0xff] }
 0x279   :  { %v1582_v1 = vsel %vm837_vm1, %v1326_v22, %v1539_v47  ;;  %1558 = vrot.lane.b32.xlu0 %v1464_v63, %s6366_s8  ;;  %v2850_v21 = vcombine.low %v2831_v44, %v2847_v31  ;;  %v4271_v9 = vcombine.high %v9991_v37, %v9990_v62  ;;  %v4287_v60 = vcombine.high %v9993_v6, %v9992_v26  ;;  %v9996_v6 = vld [vmem:[#allocation69_spill] sm:$0xff]  ;;  %v9997_v62 = vld [vmem:[#allocation68_spill] sm:$0xff] }
 0x27a   :  { %v8543_v30 = vsel %vm842_vm2, %v1582_v1, %v1555_v34  ;;  %v8546_v3 = vrot.slane %v4083_v29, %v6536_v49  ;;  %v4793_v13 = vcombine.low %v9995_v46, %v4785_v52  ;;  %v2158_v35 = vcombine.high %v2132_v59, %v2140_v0  ;;  %v2282_v1 = vpop.permute.xlu0 %2281  ;;  %v9998_v37 = vld [vmem:[#allocation17_spill] sm:$0xff]  ;;  %v9999_v0 = vld [vmem:[#allocation26_spill] sm:$0xff] }
 0x27b   :  { %9994 = vst [vmem:[#allocation47_spill] sm:$0xff] %v8543_v30  ;;  %v2174_v42 = vcombine.high %v2148_v23, %v2156_v7  ;;  %3010 = vrot.lane.b32.xlu1 %v2850_v21, %s6366_s8  ;;  %v1465_v47 = vcombine.high %v1445_v57, %v1461_v51  ;;  %v8551_v22 = vrot.slane %v2157_v33, %v6536_v49  ;;  %v10000_v23 = vld [vmem:[#allocation37_spill] sm:$0xff]  ;;  %v10013_v30 = vld [vmem:[#allocation58_spill] sm:$0xff] }
 0x27c   :  { %v8554_v63 = vrot.slane %v2173_v45, %v6536_v49  ;;  %v2053_v34 = vcombine.low %v9997_v62, %v9996_v6  ;;  %v4794_v29 = vcombine.high %v9995_v46, %v4785_v52  ;;  %v4809_v26 = vcombine.low %v9998_v37, %v4792_v28  ;;  %v10002_v46 = vld [vmem:[#allocation38_spill] sm:$0xff] }
 0x27d   :  { %v4810_v59 = vcombine.high %v9998_v37, %v4792_v28  ;;  %v5504_v7 = vcombine.low %v10000_v23, %v9999_v0  ;;  %1574 = vrot.lane.b32.xlu0 %v1465_v47, %s6367_s9  ;;  %v2851_v57 = vcombine.high %v2831_v44, %v2847_v31  ;;  %v8565_v51 = vrot.slane %v4271_v9, %v6536_v49  ;;  %v10001_v28 = vld [vmem:[#allocation34_spill] sm:$0xff]  ;;  %v10007_v31 = vld [vmem:[#allocation40_spill] sm:$0xff]  ;;  %v10010_v37 = vld [vmem:[#allocation41_spill] sm:$0xff] }
 0x27e   :  { %v8568_v33 = vrot.slane %v4287_v60, %v6536_v49  ;;  %v2309_v45 = vsel %vm837_vm1, %v2053_v34, %v2266_v56  ;;  %v2172_v52 = vrot.slane %v2158_v35, %v6536_v49  ;;  %v2188_v21 = vrot.slane %v2174_v42, %v6536_v49  ;;  %v10006_v42 = vld [vmem:[#allocation39_spill] sm:$0xff] }
 0x27f   :  { %v10003_v6 = vcombine.low %v10001_v28, %v10002_v46  ;;  %v8578_v47 = vsel %vm842_vm2, %v2309_v45, %v2282_v1  ;;  %3026 = vrot.lane.b32.xlu1 %v2851_v57, %s6367_s9  ;;  %v2190_v60 = vcombine.high %v8551_v22, %v8554_v63  ;;  %v10005_v56 = vcombine.high %v10001_v28, %v10002_v46 }
 0x280   :  { %10004 = vst [vmem:[#allocation36_spill] sm:$0xff] %v8578_v47  ;;  %v10008_v9 = vcombine.low %v10006_v42, %v10007_v31  ;;  %v10009_v34 = vcombine.high %v10006_v42, %v10007_v31  ;;  %v3595_v57 = vcombine.low %v10010_v37, %v8412_v38  ;;  %v6106_v45 = vcombine.high %v10010_v37, %v8412_v38 }
 0x281   :  { %v2859_v62 = vrot.slane %v10003_v6, %v6516_v39  ;;  %v2867_v44 = vrot.slane %v10005_v56, %v6516_v39  ;;  %v8600_v6 = vrot.slane %v4793_v13, %v6536_v49  ;;  %v8603_v28 = vrot.slane %v4794_v29, %v6536_v49  ;;  %2269 = vrot.lane.b32.xlu0 %v2190_v60, %s6365_s7 }
 0x282   :  { %v2875_v35 = vrot.slane %v10008_v9, %v6516_v39  ;;  %v2883_v1 = vrot.slane %v10009_v34, %v6516_v39  ;;  %v5505_v56 = vcombine.high %v10000_v23, %v9999_v0  ;;  %v5512_v42 = vrot.slane %v5504_v7, %v6516_v39 }
 0x283   :  { %v4304_v31 = vcombine.low %v8565_v51, %v8568_v33  ;;  %v6114_v13 = vcombine.high %v8526_v14, %v8530_v43  ;;  %v4322_v38 = vcombine.low %v8533_v53, %v8546_v3  ;;  %v6115_v29 = vcombine.high %v8533_v53, %v8546_v3  ;;  %v10011_v3 = vld [vmem:[#allocation33_spill] sm:$0xff] }
 0x284   :  { %v8620_v9 = vrot.slane %v4809_v26, %v6536_v49  ;;  %v8623_v0 = vrot.slane %v4810_v59, %v6536_v49  ;;  %v2191_v23 = vcombine.low %v2172_v52, %v2188_v21  ;;  %v2884_v7 = vcombine.low %v2859_v62, %v2867_v44  ;;  %v10012_v59 = vld [vmem:[#allocation59_spill] sm:$0xff] }
 0x285   :  { %4464 = vrot.lane.b32.xlu1 %v4304_v31, %s6366_s8  ;;  %v2900_v60 = vcombine.low %v2875_v35, %v2883_v1  ;;  %v2885_v46 = vcombine.high %v2859_v62, %v2867_v44  ;;  %v2901_v47 = vcombine.high %v2875_v35, %v2883_v1  ;;  %v5519_v53 = vrot.slane %v5505_v56, %v6516_v39  ;;  %v2993_v62 = vpop.permute.xlu0 %2992  ;;  %v10014_v1 = vld [vmem:[#allocation75_spill] sm:$0xff] }
 0x286   :  { %v5520_v26 = vcombine.low %v10011_v3, %v5512_v42  ;;  %2285 = vrot.lane.b32.xlu0 %v2191_v23, %s6366_s8  ;;  %v3578_v31 = vcombine.high %v10013_v30, %v10012_v59  ;;  %v1499_v36 = vcombine.high %v8188_v19, %v8191_v32  ;;  %v5521_v50 = vcombine.high %v10011_v3, %v5512_v42  ;;  %v10015_v19 = vld [vmem:[#allocation74_spill] sm:$0xff] }
 0x287   :  { %v2192_v34 = vcombine.high %v2172_v52, %v2188_v21  ;;  %v4305_v37 = vcombine.high %v8565_v51, %v8568_v33  ;;  %v1515_v44 = vcombine.high %v8194_v17, %v8197_v12  ;;  %v8644_v35 = vrot.slane %v2884_v7, %v6536_v49  ;;  %v10020_v59 = vld [vmem:[#allocation66_spill] sm:$0xff] }
 0x288   :  { %v8647_v30 = vrot.slane %v2900_v60, %v6536_v49  ;;  %v2780_v32 = vcombine.low %v10015_v19, %v10014_v1  ;;  %v8652_v52 = vrot.slane %v1499_v36, %v6536_v49  ;;  %v2899_v51 = vrot.slane %v2885_v46, %v6536_v49 }
 0x289   :  { %3753 = vrot.lane.b32.xlu1 %v3578_v31, %s6367_s9  ;;  %v2915_v33 = vrot.slane %v2901_v47, %v6536_v49  ;;  %v10016_v17 = vcombine.low %v8185_v61, %v8207_v40  ;;  %v8663_v21 = vrot.slane %v1515_v44, %v6536_v49  ;;  %v10017_v36 = vcombine.high %v8185_v61, %v8207_v40  ;;  %v3009_v7 = vpop.permute.xlu0 %3008 }
 0x28a   :  { %2301 = vrot.lane.b32.xlu0 %v2192_v34, %s6367_s9  ;;  %v8673_v46 = vrot.slane %v3595_v57, %v6516_v39  ;;  %v8676_v47 = vrot.slane %v6106_v45, %v6516_v39  ;;  %v2226_v42 = vcombine.high %v8254_v24, %v8260_v20  ;;  %v3036_v23 = vsel %vm837_vm1, %v2780_v32, %v2993_v62 }
 0x28b   :  { %v8660_v12 = vrot.slane %v10016_v17, %v6516_v39  ;;  %v8670_v56 = vrot.slane %v10017_v36, %v6516_v39  ;;  %v2242_v40 = vcombine.high %v8266_v41, %v8278_v27  ;;  %v5049_v57 = vcombine.low %v8620_v9, %v8623_v0 }
 0x28c   :  { %v6124_v45 = vcombine.high %v8620_v9, %v8623_v0  ;;  %v2917_v24 = vcombine.high %v8644_v35, %v8647_v30  ;;  %v8695_v20 = vsel %vm842_vm2, %v3036_v23, %v3009_v7  ;;  %v5536_v34 = vcombine.low %v8453_v11, %v5519_v53  ;;  %v10027_v7 = vld [vmem:[#allocation70_spill] sm:$0xff] }
 0x28d   :  { %4480 = vrot.lane.b32.xlu1 %v4305_v37, %s6367_s9  ;;  %10018 = vst [vmem:[#allocation30_spill] sm:$0xff] %v8695_v20  ;;  %v5537_v3 = vcombine.high %v8453_v11, %v5519_v53  ;;  %v8700_v41 = vrot.slane %v2226_v42, %v6536_v49  ;;  %v8703_v27 = vrot.slane %v2242_v40, %v6536_v49  ;;  %v10019_v37 = vld [vmem:[#allocation67_spill] sm:$0xff]  ;;  %v10028_v40 = vld [vmem:[#allocation21_spill] sm:$0xff] }
 0x28e   :  { %v5528_v9 = vrot.slane %v5520_v26, %v6536_v49  ;;  %v5535_v0 = vrot.slane %v5521_v50, %v6536_v49  ;;  %2996 = vrot.lane.b32.xlu0 %v2917_v24, %s6365_s7  ;;  %v1329_v31 = vcombine.high %v10020_v59, %v10019_v37  ;;  %v2918_v62 = vcombine.low %v2899_v51, %v2915_v33  ;;  %v10029_v24 = vld [vmem:[#allocation84_spill] sm:$0xff]  ;;  %v10030_v37 = vld [vmem:[#allocation86_spill] sm:$0xff]  ;;  %v10031_v59 = vld [vmem:[#allocation85_spill] sm:$0xff] }
 0x28f   :  { %v3611_v44 = vcombine.low %v8660_v12, %v8670_v56  ;;  %v3627_v11 = vcombine.low %v8673_v46, %v8676_v47  ;;  %v10021_v50 = vcombine.low %v8526_v14, %v8530_v43  ;;  %v8726_v19 = vrot.slane %v6114_v13, %v6516_v39  ;;  %v10026_v13 = vld [vmem:[#allocation71_spill] sm:$0xff]  ;;  %v10066_v20 = vld [vmem:[#allocation57_spill] sm:$0xff] }
 0x290   :  { %v8729_v32 = vrot.slane %v4322_v38, %v6516_v39  ;;  %v8732_v17 = vrot.slane %v6115_v29, %v6516_v39  ;;  %v5544_v36 = vrot.slane %v5536_v34, %v6536_v49  ;;  %v5551_v42 = vrot.slane %v5537_v3, %v6536_v49  ;;  %v10061_v53 = vld [vmem:[#allocation55_spill] sm:$0xff] }
 0x291   :  { %1570 = vrot.lane.b32.xlu1 %v1329_v31, %s6367_s9  ;;  %v8723_v1 = vrot.slane %v10021_v50, %v6516_v39  ;;  %10023 = vst [vmem:[#allocation31_spill] sm:$0xff] %v8726_v19  ;;  %v2953_v23 = vcombine.high %v8292_v54, %v8298_v48  ;;  %v2969_v14 = vcombine.high %v8307_v5, %v8313_v55 }
 0x292   :  { %10024 = vst [vmem:[#allocation15_spill] sm:$0xff] %v8729_v32  ;;  %10025 = vst [vmem:[#allocation65_spill] sm:$0xff] %v8732_v17  ;;  %v5760_v43 = vcombine.low %v5528_v9, %v5535_v0  ;;  %3012 = vrot.lane.b32.xlu0 %v2918_v62, %s6366_s8  ;;  %v2056_v38 = vcombine.high %v10027_v7, %v10026_v13  ;;  %v4203_v29 = vcombine.high %v10029_v24, %v10028_v40  ;;  %v10033_v62 = vld [vmem:[#allocation16_spill] sm:$0xff]  ;;  %v10034_v7 = vld [vmem:[#allocation22_spill] sm:$0xff] }
 0x293   :  { %10022 = vst [vmem:[#allocation93_spill] sm:$0xff] %v8723_v1  ;;  %v4219_v34 = vcombine.high %v10031_v59, %v10030_v37  ;;  %v6132_v31 = vcombine.high %v5528_v9, %v5535_v0  ;;  %v2919_v3 = vcombine.high %v2899_v51, %v2915_v33  ;;  %v8748_v50 = vrot.slane %v2953_v23, %v6536_v49  ;;  %v3720_v33 = vpop.permute.xlu0 %3719  ;;  %v10032_v0 = vld [vmem:[#allocation78_spill] sm:$0xff] }
 0x294   :  { %v8751_v54 = vrot.slane %v2969_v14, %v6536_v49  ;;  %v8755_v48 = vrot.slane %v3611_v44, %v6536_v49  ;;  %v8758_v5 = vrot.slane %v3627_v11, %v6536_v49  ;;  %v4338_v55 = vcombine.low %v8723_v1, %v8726_v19  ;;  %v10039_v44 = vld [vmem:[#allocation29_spill] sm:$0xff] }
 0x295   :  { %2297 = vrot.lane.b32.xlu1 %v2056_v38, %s6367_s9  ;;  %v4354_v51 = vcombine.low %v8729_v32, %v8732_v17  ;;  %v5776_v9 = vcombine.low %v5544_v36, %v5551_v42  ;;  %v2783_v23 = vcombine.high %v10033_v62, %v10032_v0  ;;  %v4217_v11 = vrot.slane %v4203_v29, %v6536_v49  ;;  %v10035_v38 = vld [vmem:[#allocation27_spill] sm:$0xff] }
 0x296   :  { %3028 = vrot.lane.b32.xlu0 %v2919_v3, %s6367_s9  ;;  %v4233_v13 = vrot.slane %v4219_v34, %v6536_v49  ;;  %v10036_v40 = vcombine.low %v10034_v7, %v10035_v38  ;;  %v10037_v37 = vcombine.high %v10034_v7, %v10035_v38  ;;  %v6133_v0 = vcombine.high %v5544_v36, %v5551_v42  ;;  %v10038_v3 = vld [vmem:[#allocation24_spill] sm:$0xff] }
 0x297   :  { %v3612_v62 = vcombine.high %v8660_v12, %v8670_v56  ;;  %v10040_v29 = vcombine.low %v10038_v3, %v10039_v44  ;;  %v10041_v34 = vcombine.high %v10038_v3, %v10039_v44  ;;  %v3644_v7 = vcombine.high %v8755_v48, %v8758_v5 }
 0x298   :  { %v5108_v24 = vrot.slane %v10036_v40, %v6516_v39  ;;  %v5116_v59 = vrot.slane %v10037_v37, %v6516_v39  ;;  %v8795_v36 = vrot.slane %v4338_v55, %v6536_v49  ;;  %v8798_v12 = vrot.slane %v4354_v51, %v6536_v49  ;;  %v8824_v40 = vpop.permute.xlu0 %4446 }
 0x299   :  { %v5124_v14 = vrot.slane %v10040_v29, %v6516_v39  ;;  %v5132_v26 = vrot.slane %v10041_v34, %v6516_v39  ;;  %3024 = vrot.lane.b32.xlu1 %v2783_v23, %s6367_s9  ;;  %v3628_v56 = vcombine.high %v8673_v46, %v8676_v47  ;;  %v10042_v42 = vcombine.low %v8600_v6, %v8603_v28 }
 0x29a   :  { %v10043_v23 = vcombine.high %v8600_v6, %v8603_v28  ;;  %v8815_v55 = vrot.slane %v5049_v57, %v6516_v39  ;;  %v8818_v51 = vrot.slane %v6124_v45, %v6516_v39  ;;  %v8821_v46 = vrot.slane %v5760_v43, %v6516_v39  ;;  %3723 = vrot.lane.b32.xlu0 %v3644_v7, %s6365_s7 }
 0x29b   :  { %v8806_v44 = vrot.slane %v10042_v42, %v6516_v39  ;;  %v4236_v47 = vcombine.low %v4217_v11, %v4233_v13  ;;  %10045 = vst [vmem:[#allocation49_spill] sm:$0xff] %v8824_v40  ;;  %v5133_v37 = vcombine.low %v5108_v24, %v5116_v59  ;;  %v5134_v3 = vcombine.high %v5108_v24, %v5116_v59 }
 0x29c   :  { %v8812_v38 = vrot.slane %v10043_v23, %v6516_v39  ;;  %10044 = vst [vmem:[#allocation64_spill] sm:$0xff] %v8821_v46  ;;  %v8827_v6 = vrot.slane %v6132_v31, %v6516_v39  ;;  %v8830_v28 = vrot.slane %v5776_v9, %v6516_v39  ;;  %v5149_v57 = vcombine.low %v5124_v14, %v5132_v26  ;;  %v10051_v31 = vld [vmem:[#allocation20_spill] sm:$0xff]  ;;  %v10052_v9 = vld [vmem:[#allocation90_spill] sm:$0xff] }
 0x29d   :  { %v5150_v29 = vcombine.high %v5124_v14, %v5132_v26  ;;  %v8833_v45 = vrot.slane %v6133_v0, %v6516_v39  ;;  %4462 = vrot.lane.b32.xlu1 %v4236_v47, %s6366_s8  ;;  %v4371_v43 = vcombine.high %v8795_v36, %v8798_v12  ;;  %v8839_v34 = vrot.slane %v3612_v62, %v6536_v49  ;;  %v10054_v26 = vld [vmem:[#allocation83_spill] sm:$0xff]  ;;  %v10055_v14 = vld [vmem:[#allocation18_spill] sm:$0xff] }
 0x29e   :  { %10046 = vst [vmem:[#allocation48_spill] sm:$0xff] %v8827_v6  ;;  %10047 = vst [vmem:[#allocation51_spill] sm:$0xff] %v8830_v28  ;;  %v8842_v24 = vrot.slane %v3628_v56, %v6536_v49  ;;  %v10053_v59 = vcombine.high %v10051_v31, %v10052_v9  ;;  %v3507_v0 = vcombine.low %v10055_v14, %v10054_v26  ;;  %v3736_v26 = vpop.permute.xlu0 %3735  ;;  %v10060_v31 = vld [vmem:[#allocation54_spill] sm:$0xff] }
 0x29f   :  { %10048 = vst [vmem:[#allocation50_spill] sm:$0xff] %v8833_v45  ;;  %10049 = vst [vmem:[#allocation32_spill] sm:$0xff] %v8839_v34  ;;  %v5065_v42 = vcombine.low %v8806_v44, %v8812_v38  ;;  %v5081_v23 = vcombine.low %v8815_v55, %v8818_v51  ;;  %4450 = vrot.lane.b32.xlu0 %v4371_v43, %s6365_s7  ;;  %v4237_v62 = vcombine.high %v4217_v11, %v4233_v13  ;;  %v10058_v13 = vld [vmem:[#allocation91_spill] sm:$0xff] }
 0x2a0   :  { %10050 = vst [vmem:[#allocation69_spill] sm:$0xff] %v8842_v24  ;;  %v8848_v7 = vrot.slane %v10053_v59, %v6536_v49  ;;  %v8858_v56 = vrot.slane %v5133_v37, %v6536_v49  ;;  %v8861_v47 = vrot.slane %v5134_v3, %v6536_v49  ;;  %v3763_v9 = vsel %vm837_vm1, %v3507_v0, %v3720_v33  ;;  %v10059_v37 = vld [vmem:[#allocation28_spill] sm:$0xff] }
 0x2a1   :  { %v8867_v59 = vrot.slane %v5149_v57, %v6536_v49  ;;  %v8870_v14 = vrot.slane %v5150_v29, %v6536_v49  ;;  %v5792_v11 = vcombine.low %v8821_v46, %v8827_v6  ;;  %v5828_v43 = vcombine.low %v10059_v37, %v10058_v13  ;;  %4478 = vrot.lane.b32.xlu1 %v4237_v62, %s6367_s9  ;;  %v10074_v46 = vld [vmem:[#allocation25_spill] sm:$0xff] }
 0x2a2   :  { %10056 = vst [vmem:[#allocation68_spill] sm:$0xff] %v8861_v47  ;;  %v3645_v3 = vcombine.low %v8839_v34, %v8842_v24  ;;  %v3767_v33 = vsel %vm842_vm2, %v3763_v9, %v3736_v26  ;;  %v5808_v57 = vcombine.low %v8830_v28, %v8833_v45  ;;  %v8883_v0 = vrot.slane %v5065_v42, %v6536_v49  ;;  %v10064_v42 = vld [vmem:[#allocation92_spill] sm:$0xff]  ;;  %v10086_v24 = vld [vmem:[#allocation63_spill] sm:$0xff] }
 0x2a3   :  { %10057 = vst [vmem:[#allocation17_spill] sm:$0xff] %v8870_v14  ;;  %v8886_v29 = vrot.slane %v5081_v23, %v6536_v49  ;;  %v10062_v61 = vcombine.low %v10060_v31, %v10061_v53  ;;  %v10063_v62 = vcombine.high %v10060_v31, %v10061_v53  ;;  %v6134_v26 = vcombine.high %v10059_v37, %v10058_v13  ;;  %v10065_v23 = vld [vmem:[#allocation56_spill] sm:$0xff] }
 0x2a4   :  { %v5844_v40 = vcombine.low %v10064_v42, %v8848_v7  ;;  %3739 = vrot.lane.b32.xlu0 %v3645_v3, %s6366_s8  ;;  %v10067_v28 = vcombine.low %v10065_v23, %v10066_v20  ;;  %v10069_v53 = vcombine.high %v10065_v23, %v10066_v20  ;;  %v6135_v13 = vcombine.high %v10064_v42, %v8848_v7 }
 0x2a5   :  { %v8892_v60 = vrot.slane %v10062_v61, %v6516_v39  ;;  %v8898_v9 = vrot.slane %v10063_v62, %v6516_v39  ;;  %v5166_v37 = vcombine.high %v8858_v56, %v8867_v59  ;;  %v5167_v3 = vcombine.low %v8861_v47, %v8870_v14  ;;  %v3752_v62 = vpop.permute.xlu0 %3751 }
 0x2a6   :  { %v8909_v61 = vrot.slane %v10067_v28, %v6516_v39  ;;  %v8915_v31 = vrot.slane %v10069_v53, %v6516_v39  ;;  %v8924_v45 = vrot.slane %v5792_v11, %v6536_v49  ;;  %v10071_v28 = vcombine.low %v8652_v52, %v8663_v21 }
 0x2a7   :  { %v8931_v20 = vsel %vm847_vm3, %v3767_v33, %v3752_v62  ;;  %v8934_v7 = vrot.slane %v5808_v57, %v6536_v49  ;;  %v5066_v42 = vcombine.high %v8806_v44, %v8812_v38  ;;  %v5082_v23 = vcombine.high %v8815_v55, %v8818_v51  ;;  %v10077_v55 = vld [vmem:[#allocation88_spill] sm:$0xff]  ;;  %v10078_v51 = vld [vmem:[#allocation89_spill] sm:$0xff] }
 0x2a8   :  { %10068 = vst [vmem:[#allocation26_spill] sm:$0xff] %v8909_v61  ;;  %10070 = vst [vmem:[#allocation37_spill] sm:$0xff] %v8915_v31  ;;  %1560 = vrot.lane.b32.xlu1 %v10071_v28, %s6366_s8  ;;  %v5098_v11 = vcombine.high %v8883_v0, %v8886_v29  ;;  %v4997_v53 = vcombine.low %v8892_v60, %v8898_v9  ;;  %v10073_v28 = vld [vmem:[#allocation19_spill] sm:$0xff]  ;;  %5179 = vrot.lane.b32.xlu0 %v5166_v37, %s6365_s7 }
 0x2a9   :  { %10072 = vst [vmem:[#allocation34_spill] sm:$0xff] %v8931_v20  ;;  %v10075_v33 = vcombine.low %v10073_v28, %v10074_v46  ;;  %v10076_v57 = vcombine.high %v10073_v28, %v10074_v46  ;;  %v5013_v38 = vcombine.low %v8909_v61, %v8915_v31  ;;  %v10079_v20 = vcombine.low %v10077_v55, %v10078_v51  ;;  %v10081_v46 = vld [vmem:[#allocation60_spill] sm:$0xff]  ;;  %v10082_v28 = vld [vmem:[#allocation61_spill] sm:$0xff] }
 0x2aa   :  { %v10084_v14 = vcombine.high %v10081_v46, %v10082_v28  ;;  %v9093_v2 = vrot.slane %v5082_v23, %v6536_v49  ;;  %v9102_v18 = vrot.slane %v4997_v53, %v6536_v49 }
 0x2ab   :  { %v8948_v62 = vrot.slane %v10075_v33, %v6516_v39  ;;  %v8954_v44 = vrot.slane %v10076_v57, %v6516_v39  ;;  %v8963_v6 = vrot.slane %v10079_v20, %v6516_v39  ;;  %v10080_v33 = vcombine.high %v10077_v55, %v10078_v51  ;;  %v10085_v20 = vld [vmem:[#allocation62_spill] sm:$0xff] }
 0x2ac   :  { %v10083_v57 = vcombine.low %v10081_v46, %v10082_v28  ;;  %v8981_v34 = vrot.slane %v10084_v14, %v6516_v39  ;;  %v10087_v10 = vcombine.low %v10085_v20, %v10086_v24  ;;  %v10088_v55 = vcombine.high %v10085_v20, %v10086_v24  ;;  %v10094_v24 = vld [vmem:[#allocation76_spill] sm:$0xff]  ;;  %v10095_v28 = vld [vmem:[#allocation77_spill] sm:$0xff]  ;;  %5195 = vrot.lane.b32.xlu0 %v5167_v3, %s6366_s8 }
 0x2ad   :  { %v8969_v47 = vrot.slane %v10080_v33, %v6516_v39  ;;  %v10089_v33 = vld [vmem:[#allocation72_spill] sm:$0xff]  ;;  %v10092_v14 = vcombine.high %v8652_v52, %v8663_v21  ;;  %v10096_v20 = vcombine.low %v10094_v24, %v10095_v28  ;;  %v10098_v52 = vld [vmem:[#allocation79_spill] sm:$0xff]  ;;  %v9105_v4 = vrot.slane %v5013_v38, %v6536_v49 }
 0x2ae   :  { %v8975_v37 = vrot.slane %v10083_v57, %v6516_v39  ;;  %v8987_v25 = vrot.slane %v10087_v10, %v6516_v39  ;;  %v8993_v51 = vrot.slane %v10088_v55, %v6516_v39  ;;  %v10090_v57 = vld [vmem:[#allocation73_spill] sm:$0xff]  ;;  %v10099_v21 = vld [vmem:[#allocation80_spill] sm:$0xff] }
 0x2af   :  { %v10091_v32 = vcombine.low %v10089_v33, %v10090_v57  ;;  %1576 = vrot.lane.b32.xlu1 %v10092_v14, %s6367_s9  ;;  %v10093_v10 = vcombine.high %v10089_v33, %v10090_v57  ;;  %v9015_v55 = vrot.slane %v10096_v20, %v6516_v39  ;;  %v10100_v14 = vcombine.low %v10098_v52, %v10099_v21  ;;  %v10103_v20 = vld [vmem:[#allocation82_spill] sm:$0xff] }
 0x2b0   :  { %v10101_v33 = vcombine.high %v10098_v52, %v10099_v21  ;;  %v9052_v52 = vrot.slane %v6134_v26, %v6516_v39  ;;  %v9055_v21 = vrot.slane %v5844_v40, %v6516_v39  ;;  %v5724_v3 = vcombine.low %v8975_v37, %v8981_v34  ;;  %5177 = vrot.lane.b32.xlu0 %v5098_v11, %s6365_s7 }
 0x2b1   :  { %v8999_v17 = vrot.slane %v10091_v32, %v6516_v39  ;;  %v9009_v46 = vrot.slane %v10093_v10, %v6516_v39  ;;  %v10097_v32 = vcombine.high %v10094_v24, %v10095_v28  ;;  %v9027_v19 = vrot.slane %v10100_v14, %v6516_v39  ;;  %v10102_v10 = vld [vmem:[#allocation81_spill] sm:$0xff] }
 0x2b2   :  { %v9033_v57 = vrot.slane %v10101_v33, %v6516_v39  ;;  %v10104_v61 = vcombine.low %v10102_v10, %v10103_v20  ;;  %v10106_v24 = vcombine.high %v10102_v10, %v10103_v20  ;;  %v4406_v33 = vcombine.low %v8948_v62, %v8954_v44 }
 0x2b3   :  { %v9021_v1 = vrot.slane %v10097_v32, %v6516_v39  ;;  %v9048_v32 = vrot.slane %v5828_v43, %v6516_v39  ;;  %v4422_v43 = vcombine.low %v8963_v6, %v8969_v47  ;;  %v5740_v26 = vcombine.low %v8987_v25, %v8993_v51 }
 0x2b4   :  { %v9039_v31 = vrot.slane %v10104_v61, %v6516_v39  ;;  %v9045_v28 = vrot.slane %v10106_v24, %v6516_v39  ;;  %v9058_v61 = vrot.slane %v6135_v13, %v6516_v39  ;;  %v10108_v39 = vcombine.low %v8700_v41, %v8703_v27 }
 0x2b5   :  { %v4929_v40 = vcombine.low %v8999_v17, %v9009_v46  ;;  %v4945_v13 = vcombine.low %v9015_v55, %v9021_v1  ;;  %v5825_v24 = vcombine.high %v8924_v45, %v8934_v7  ;;  %v9085_v14 = vrot.slane %v5066_v42, %v6536_v49 }
 0x2b6   :  { %10105 = vst [vmem:[#allocation38_spill] sm:$0xff] %v9039_v31  ;;  %10107 = vst [vmem:[#allocation39_spill] sm:$0xff] %v9045_v28  ;;  %2287 = vrot.lane.b32.xlu1 %v10108_v39, %s6366_s8  ;;  %v5656_v39 = vcombine.low %v9027_v19, %v9033_v57  ;;  %v5672_v58 = vcombine.low %v9039_v31, %v9045_v28  ;;  %v5860_v10 = vcombine.low %v9048_v32, %v9052_v52 }
 0x2b7   :  { %v5876_v20 = vcombine.low %v9055_v21, %v9058_v61  ;;  %v9108_v11 = vrot.slane %v4406_v33, %v6536_v49  ;;  %v9111_v23 = vrot.slane %v4422_v43, %v6536_v49  ;;  %v10109_v31 = vcombine.high %v8700_v41, %v8703_v27  ;;  %5904 = vrot.lane.b32.xlu0 %v5825_v24, %s6365_s7 }
 0x2b8   :  { %v9118_v28 = vrot.slane %v5724_v3, %v6536_v49  ;;  %v9121_v53 = vrot.slane %v5740_v26, %v6536_v49  ;;  %v9124_v38 = vrot.slane %v4929_v40, %v6536_v49  ;;  %v9127_v33 = vrot.slane %v4945_v13, %v6536_v49  ;;  %v43_v40 = vld [vmem:[%s9575_s2] sm:$0xff] }
 0x2b9   :  { %v9130_v43 = vrot.slane %v5656_v39, %v6536_v49  ;;  %v9133_v42 = vrot.slane %v5672_v58, %v6536_v49  ;;  %v9144_v3 = vrot.slane %v5876_v20, %v6536_v49  ;;  %v5099_v13 = vcombine.low %v9085_v14, %v9093_v2  ;;  %6238 = vmatmul.mubr.msk.f32.vlgmr.msra.gmra.mxu1 %vm51_vm0, %v43_v40  ;;  %v10116_v40 = vld [vmem:[#allocation37_spill] sm:$0xff] }
 0x2ba   :  { %2303 = vrot.lane.b32.xlu1 %v10109_v31, %s6367_s9  ;;  %10110 = vst [vmem:[#allocation40_spill] sm:$0xff] %v9118_v28  ;;  %10111 = vst [vmem:[#allocation41_spill] sm:$0xff] %v9121_v53  ;;  %v9141_v31 = vrot.slane %v5860_v10, %v6536_v49  ;;  %v10114_v20 = vcombine.low %v8748_v50, %v8751_v54  ;;  %v4407_v10 = vcombine.high %v8948_v62, %v8954_v44 }
 0x2bb   :  { %10112 = vst [vmem:[#allocation33_spill] sm:$0xff] %v9130_v43  ;;  %10113 = vst [vmem:[#allocation59_spill] sm:$0xff] %v9133_v42  ;;  %5193 = vrot.lane.b32.xlu0 %v5099_v13, %s6366_s8  ;;  %v4423_v24 = vcombine.high %v8963_v6, %v8969_v47  ;;  %6248 = vmatprep.mubr.msk.f32.mxu1 %vm6369_vm4, %v9951_v15  ;;  %v10115_v44 = vcombine.high %v8748_v50, %v8751_v54  ;;  %v10117_v13 = vld [vmem:[#allocation26_spill] sm:$0xff] }
 0x2bc   :  { %v5030_v6 = vcombine.high %v9102_v18, %v9105_v4  ;;  %v4998_v47 = vcombine.high %v8892_v60, %v8898_v9  ;;  %v5014_v39 = vcombine.high %v10117_v13, %v10116_v40  ;;  %v4421_v26 = vrot.slane %v4407_v10, %v6536_v49  ;;  %v10121_v40 = vld [vmem:[#allocation15_spill] sm:$0xff]  ;;  %v10122_v13 = vld [vmem:[#allocation96_spill] sm:$0xff] }
 0x2bd   :  { %v4437_v62 = vrot.slane %v4423_v24, %v6536_v49  ;;  %v5757_v50 = vcombine.high %v9118_v28, %v9121_v53  ;;  %v10118_v24 = vld [vmem:[#allocation31_spill] sm:$0xff] }
 0x2be   :  { %3014 = vrot.lane.b32.xlu1 %v10114_v20, %s6366_s8  ;;  %v4439_v20 = vcombine.high %v9108_v11, %v9111_v23  ;;  %v9206_v54 = vrot.slane %v4998_v47, %v6536_v49  ;;  %v9209_v60 = vrot.slane %v5014_v39, %v6536_v49  ;;  %v10123_v39 = vld [vmem:[#allocation97_spill] sm:$0xff] }
 0x2bf   :  { %5175 = vrot.lane.b32.xlu0 %v5030_v6, %s6365_s7  ;;  %v4440_v9 = vcombine.low %v4421_v26, %v4437_v62  ;;  %v10120_v6 = vld [vmem:[#allocation65_spill] sm:$0xff]  ;;  %v10124_v27 = vcombine.high %v10122_v13, %v10123_v39 }
 0x2c0   :  { %v5031_v10 = vcombine.low %v9206_v54, %v9209_v60  ;;  %v4355_v47 = vcombine.high %v10121_v40, %v10120_v6 }
 0x2c2   :  { %3030 = vrot.lane.b32.xlu1 %v10115_v44, %s6367_s9  ;;  %v4369_v6 = vrot.slane %v4355_v47, %v6536_v49 }
 0x2c3   :  { %5902 = vrot.lane.b32.xlu0 %v5757_v50, %s6365_s7  ;;  %v4962_v50 = vcombine.high %v9124_v38, %v9127_v33 }
 0x2c6   :  { %4452 = vrot.lane.b32.xlu1 %v4439_v20, %s6365_s7  ;;  %v10119_v20 = vld [vmem:[#allocation93_spill] sm:$0xff] }
 0x2c7   :  { %5191 = vrot.lane.b32.xlu0 %v5031_v10, %s6366_s8  ;;  %v4339_v44 = vcombine.high %v10119_v20, %v10118_v24  ;;  %v4946_v10 = vcombine.high %v9015_v55, %v9021_v1  ;;  %v4441_v24 = vcombine.high %v4421_v26, %v4437_v62  ;;  %v10126_v55 = vld [vmem:[#allocation32_spill] sm:$0xff] }
 0x2c8   :  { %v9245_v39 = vpop.permute.xlu0 %1544 }
 0x2c9   :  { %v4353_v20 = vrot.slane %v4339_v44, %v6536_v49  ;;  %v4960_v13 = vrot.slane %v4946_v10, %v6536_v49  ;;  %v1541_v44 = vpop.permute.xlu1 %1540  ;;  %v10127_v10 = vld [vmem:[#allocation9_spill] sm:$0xff] }
 0x2ca   :  { %4468 = vrot.lane.b32.xlu1 %v4440_v9, %s6366_s8  ;;  %v4930_v9 = vcombine.high %v8999_v17, %v9009_v46  ;;  %v10125_v46 = vld [vmem:[#allocation69_spill] sm:$0xff] }
 0x2cb   :  { %5173 = vrot.lane.b32.xlu0 %v4962_v50, %s6365_s7  ;;  %v4372_v17 = vcombine.low %v4353_v20, %v4369_v6  ;;  %v3646_v26 = vcombine.high %v10126_v55, %v10125_v46  ;;  %v4373_v47 = vcombine.high %v4353_v20, %v4369_v6  ;;  %v5861_v50 = vcombine.high %v9048_v32, %v9052_v52 }
 0x2cc   :  { %v4944_v40 = vrot.slane %v4930_v9, %v6536_v49  ;;  %v5877_v9 = vcombine.high %v9055_v21, %v9058_v61 }
 0x2cd   :  { %v5875_v20 = vrot.slane %v5861_v50, %v6536_v49  ;;  %v10132_v50 = vld [vmem:[#allocation64_spill] sm:$0xff] }
 0x2ce   :  { %3757 = vrot.lane.b32.xlu1 %v10124_v27, %s6367_s9  ;;  %v5689_v27 = vcombine.high %v9130_v43, %v9133_v42  ;;  %v4963_v1 = vcombine.low %v4944_v40, %v4960_v13  ;;  %v4964_v62 = vcombine.high %v4944_v40, %v4960_v13  ;;  %v1557_v40 = vpop.permute.xlu1 %1556  ;;  %v5893_v13 = vcombine.high %v9141_v31, %v9144_v3 }
 0x2cf   :  { %v5891_v6 = vrot.slane %v5877_v9, %v6536_v49 }
 0x2d0   :  { %5900 = vrot.lane.b32.xlu0 %v5689_v27, %s6365_s7 }
 0x2d1   :  { %v5894_v61 = vcombine.low %v5875_v20, %v5891_v6  ;;  %v5895_v58 = vcombine.high %v5875_v20, %v5891_v6  ;;  %v5100_v20 = vcombine.high %v9085_v14, %v9093_v2  ;;  %v5725_v6 = vcombine.high %v8975_v37, %v8981_v34 }
 0x2d2   :  { %4484 = vrot.lane.b32.xlu1 %v4441_v24, %s6367_s9  ;;  %v10128_v24 = vld [vmem:[#allocation7_spill] sm:$0xff]  ;;  %v9261_v52 = vpop.permute.xlu0 %2271 }
 0x2d3   :  { %v1394_v27 = vcombine.low %v10128_v24, %v10127_v10  ;;  %v10133_v10 = vld [vmem:[#allocation50_spill] sm:$0xff]  ;;  %v10134_v24 = vld [vmem:[#allocation51_spill] sm:$0xff]  ;;  %v5739_v2 = vrot.slane %v5725_v6, %v6536_v49 }
 0x2d4   :  { %5189 = vrot.lane.b32.xlu0 %v4963_v1, %s6366_s8  ;;  %v1573_v21 = vpop.permute.xlu1 %1572 }
 0x2d6   :  { %4466 = vrot.lane.b32.xlu1 %v4372_v17, %s6366_s8  ;;  %v1583_v17 = vsel %vm837_vm1, %v1394_v27, %v1541_v44  ;;  %v5809_v27 = vcombine.high %v10134_v24, %v10133_v10 }
 0x2d7   :  { %v1587_v32 = vsel %vm842_vm2, %v1583_v17, %v1557_v40  ;;  %v9267_v46 = vpop.permute.xlu0 %2998  ;;  %v10135_v17 = vld [vmem:[#allocation43_spill] sm:$0xff]  ;;  %v10136_v40 = vld [vmem:[#allocation42_spill] sm:$0xff] }
 0x2d8   :  { %5205 = vrot.lane.b32.xlu0 %v4964_v62, %s6367_s9  ;;  %v9264_v1 = vsel %vm847_vm3, %v1587_v32, %v1573_v21  ;;  %v2268_v55 = vpop.permute.xlu1 %2267  ;;  %v10130_v62 = vld [vmem:[#allocation68_spill] sm:$0xff] }
 0x2da   :  { %3755 = vrot.lane.b32.xlu1 %v3646_v26, %s6367_s9  ;;  %v10129_v26 = vld [vmem:[#allocation17_spill] sm:$0xff] }
 0x2db   :  { %v5168_v44 = vcombine.high %v10130_v62, %v10129_v26  ;;  %v5823_v26 = vrot.slane %v5809_v27, %v6536_v49 }
 0x2dd   :  { %v9278_v32 = vpop.permute.xlu0 %3725 }
 0x2de   :  { %4482 = vrot.lane.b32.xlu1 %v4373_v47, %s6367_s9  ;;  %v10131_v47 = vld [vmem:[#allocation48_spill] sm:$0xff] }
 0x2df   :  { %v5793_v9 = vcombine.high %v10132_v50, %v10131_v47 }
 0x2e1   :  { %v5807_v41 = vrot.slane %v5793_v9, %v6536_v49  ;;  %v10137_v9 = vcombine.low %v8476_v16, %v8479_v8  ;;  %v10138_v16 = vld [vmem:[#allocation53_spill] sm:$0xff]  ;;  %v10139_v8 = vld [vmem:[#allocation52_spill] sm:$0xff] }
 0x2e2   :  { %5906 = vrot.lane.b32.xlu1 %v5893_v13, %s6365_s7  ;;  %v2121_v13 = vcombine.low %v10136_v40, %v10135_v17  ;;  %v9285_v47 = vpop.permute.xlu0 %3741 }
 0x2e3   :  { %v5826_v10 = vcombine.low %v5807_v41, %v5823_v26 }
 0x2e4   :  { %v2310_v21 = vsel %vm837_vm1, %v2121_v13, %v2268_v55  ;;  %v5827_v13 = vcombine.high %v5807_v41, %v5823_v26  ;;  %v5032_v26 = vcombine.high %v9206_v54, %v9209_v60 }
 0x2e6   :  { %5922 = vrot.lane.b32.xlu1 %v5894_v61, %s6366_s8  ;;  %v2284_v61 = vpop.permute.xlu1 %2283  ;;  %v1543_v55 = vpop.permute.xlu0 %1542 }
 0x2e7   :  { %v2314_v62 = vsel %vm842_vm2, %v2310_v21, %v2284_v61  ;;  %v10140_v61 = vld [vmem:[#allocation13_spill] sm:$0xff] }
 0x2ea   :  { %5211 = vrot.lane.b32.xlu1 %v5168_v44, %s6367_s9  ;;  %v2300_v50 = vpop.permute.xlu1 %2299 }
 0x2eb   :  { %v9288_v44 = vsel %vm847_vm3, %v2314_v62, %v2300_v50  ;;  %v1559_v17 = vpop.permute.xlu0 %1558  ;;  %v5657_v50 = vcombine.high %v9027_v19, %v9033_v57 }
 0x2ee   :  { %5938 = vrot.lane.b32.xlu1 %v5895_v58, %s6367_s9  ;;  %v2995_v24 = vpop.permute.xlu1 %2994  ;;  %v5741_v58 = vcombine.high %v8987_v25, %v8993_v51  ;;  %v4302_v51 = vcombine.low %v10139_v8, %v10138_v16  ;;  %v10143_v8 = vld [vmem:[#allocation46_spill] sm:$0xff] }
 0x2ef   :  { %v9301_v27 = vsel %vm837_vm1, %v10137_v9, %v2995_v24  ;;  %v1575_v34 = vpop.permute.xlu0 %1574  ;;  %v10142_v24 = vld [vmem:[#allocation38_spill] sm:$0xff] }
 0x2f0   :  { %v5755_v14 = vrot.slane %v5741_v58, %v6536_v49  ;;  %v4491_v62 = vsel %vm837_vm1, %v4302_v51, %v10140_v61 }
 0x2f2   :  { %5920 = vrot.lane.b32.xlu1 %v5826_v10, %s6366_s8  ;;  %v9304_v40 = vpop.permute.xlu1 %3010  ;;  %v5758_v37 = vcombine.low %v5739_v2, %v5755_v14  ;;  %v10141_v10 = vld [vmem:[#allocation39_spill] sm:$0xff] }
 0x2f3   :  { %v2270_v21 = vpop.permute.xlu0 %2269 }
 0x2f6   :  { %5209 = vrot.lane.b32.xlu1 %v5100_v20, %s6367_s9  ;;  %v9309_v25 = vpop.permute.xlu1 %3026  ;;  %v5673_v20 = vcombine.high %v10142_v24, %v10141_v10 }
 0x2f8   :  { %v2286_v58 = vpop.permute.xlu0 %2285  ;;  %v5687_v16 = vrot.slane %v5673_v20, %v6536_v49 }
 0x2fa   :  { %5936 = vrot.lane.b32.xlu1 %v5827_v13, %s6367_s9  ;;  %v4465_v41 = vpop.permute.xlu1 %4464  ;;  %v5759_v13 = vcombine.high %v5739_v2, %v5755_v14 }
 0x2fb   :  { %v4495_v6 = vsel %vm842_vm2, %v4491_v62, %v4465_v41 }
 0x2fc   :  { %v2302_v19 = vpop.permute.xlu0 %2301 }
 0x2fe   :  { %5918 = vrot.lane.b32.xlu1 %v5758_v37, %s6366_s8  ;;  %v3754_v9 = vpop.permute.xlu1 %3753  ;;  %v5671_v37 = vrot.slane %v5657_v50, %v6536_v49 }
 0x2ff   :  { %v9328_v54 = vsel %vm847_vm3, %v10143_v8, %v3754_v9  ;;  %v10145_v9 = vld [vmem:[#allocation8_spill] sm:$0xff] }
 0x300   :  { %v5690_v60 = vcombine.low %v5671_v37, %v5687_v16  ;;  %v5691_v2 = vcombine.high %v5671_v37, %v5687_v16  ;;  %v2997_v14 = vpop.permute.xlu0 %2996 }
 0x302   :  { %5207 = vrot.lane.b32.xlu1 %v5032_v26, %s6367_s9  ;;  %v4481_v57 = vpop.permute.xlu1 %4480 }
 0x303   :  { %v9332_v51 = vsel %vm847_vm3, %v4495_v6, %v4481_v57  ;;  %v10144_v6 = vld [vmem:[#allocation35_spill] sm:$0xff]  ;;  %v10146_v57 = vld [vmem:[#allocation44_spill] sm:$0xff] }
 0x304   :  { %v3013_v62 = vpop.permute.xlu0 %3012 }
 0x306   :  { %5934 = vrot.lane.b32.xlu1 %v5759_v13, %s6367_s9  ;;  %v1571_v61 = vpop.permute.xlu1 %1570  ;;  %v1530_v13 = vcombine.low %v10145_v9, %v10144_v6  ;;  %v10150_v9 = vld [vmem:[#allocation10_spill] sm:$0xff] }
 0x308   :  { %v3029_v50 = vpop.permute.xlu0 %3028  ;;  %v1585_v37 = vsel %vm837_vm1, %v1530_v13, %v9245_v39 }
 0x30a   :  { %5916 = vrot.lane.b32.xlu1 %v5690_v60, %s6366_s8  ;;  %v2298_v49 = vpop.permute.xlu1 %2297  ;;  %v10147_v60 = vld [vmem:[#allocation45_spill] sm:$0xff] }
 0x30c   :  { %v9342_v24 = vpop.permute.xlu0 %3723 }
 0x30e   :  { %5932 = vrot.lane.b32.xlu1 %v5691_v2, %s6367_s9  ;;  %v9336_v41 = vpop.permute.xlu1 %3024  ;;  %v10148_v2 = vcombine.low %v10146_v57, %v10147_v60 }
 0x310   :  { %v1584_v42 = vsel %vm837_vm1, %v10148_v2, %v1543_v55  ;;  %v10151_v55 = vld [vmem:[#allocation47_spill] sm:$0xff]  ;;  %v10155_v2 = vld [vmem:[#allocation36_spill] sm:$0xff] }
 0x311   :  { %v1588_v53 = vsel %vm842_vm2, %v1584_v42, %v1559_v17  ;;  %v9355_v28 = vpop.permute.xlu0 %4450  ;;  %v44_v42 = vld [vmem:[%s9575_s2 + $0x8] sm:$0xff] }
 0x312   :  { %v9338_v26 = vpop.permute.xlu1 %4462  ;;  %v1592_v6 = vsel %vm847_vm3, %v1588_v53, %v1575_v34  ;;  %v1590_v53 = vsel %vm847_vm3, %v10151_v55, %v1571_v61  ;;  %v10159_v55 = vld [vmem:[#allocation95_spill] sm:$0xff] }
 0x316   :  { %v9340_v10 = vpop.permute.xlu1 %4478  ;;  %v9371_v17 = vpop.permute.xlu0 %3739 }
 0x31a   :  { %v1561_v20 = vpop.permute.xlu1 %1560  ;;  %v9389_v60 = vpop.permute.xlu0 %5179 }
 0x31b   :  { %v1589_v16 = vsel %vm842_vm2, %v1585_v37, %v1561_v20  ;;  %v10149_v20 = vld [vmem:[#allocation11_spill] sm:$0xff] }
 0x31c   :  { %v2257_v13 = vcombine.low %v10150_v9, %v10149_v20  ;;  %v10156_v9 = vcombine.low %v8644_v35, %v8647_v30  ;;  %v3041_v35 = vsel %vm842_vm2, %v9301_v27, %v9304_v40 }
 0x31e   :  { %v9416_v30 = vpop.permute.xlu0 %5195 }
 0x321   :  { %v1577_v8 = vpop.permute.xlu1 %1576 }
 0x322   :  { %v1593_v43 = vsel %vm847_vm3, %v1589_v16, %v1577_v8  ;;  %v9430_v40 = vpop.permute.xlu0 %5177 }
 0x323   :  { %6241 = vmatpush3.msra.mxu1 %v1593_v43  ;;  %v2312_v43 = vsel %vm837_vm1, %v2257_v13, %v9261_v52 }
 0x324   :  { %6242 = vmatprep.subr.mxu1 %v9951_v15 }
 0x325   :  { %6243 = vmatpush3.msra.mxu1 %v1592_v6  ;;  %v2317_v6 = vsel %vm847_vm3, %v10155_v2, %v2298_v49 }
 0x326   :  { %6244 = vmatprep.subr.mxu1 %v9951_v15 }
 0x327   :  { %6245 = vmatpush3.msra.mxu1 %v9264_v1  ;;  %v10152_v1 = vcombine.low %v8551_v22, %v8554_v63  ;;  %v10153_v22 = vld [vmem:[#allocation14_spill] sm:$0xff]  ;;  %v10154_v63 = vld [vmem:[#allocation12_spill] sm:$0xff] }
 0x328   :  { %v2288_v39 = vpop.permute.xlu1 %2287  ;;  %6246 = vmatprep.subr.mxu1 %v9951_v15 }
 0x329   :  { %v2316_v34 = vsel %vm842_vm2, %v2312_v43, %v2288_v39  ;;  %6247 = vmatpush3.msra.mxu1 %v1590_v53  ;;  %v2311_v16 = vsel %vm837_vm1, %v10152_v1, %v2270_v21  ;;  %v2984_v21 = vcombine.low %v10154_v63, %v10153_v22 }
 0x32a   :  { %6251 = vmatprep.subr.mxu1 %v9951_v15  ;;  %6249 = vmatmul.mubr.msk.f32.vlgmr.msra.gmra.mxu1 %vm51_vm0, %v44_v42  ;;  %v2315_v52 = vsel %vm842_vm2, %v2311_v16, %v2286_v58  ;;  %v45_v58 = vld [vmem:[%s9575_s2 + $0x10] sm:$0xff]  ;;  %v3045_v42 = vsel %vm847_vm3, %v3041_v35, %v9309_v25  ;;  %v10158_v25 = vld [vmem:[#allocation94_spill] sm:$0xff]  ;;  %v10161_v16 = vcombine.low %v9108_v11, %v9111_v23 }
 0x32b   :  { %6259 = vmatprep.mubr.msk.f32.mxu1 %vm6369_vm4, %v9951_v15  ;;  %v2319_v61 = vsel %vm847_vm3, %v2315_v52, %v2302_v19  ;;  %v3039_v19 = vsel %vm837_vm1, %v2984_v21, %v9267_v46  ;;  %v10160_v53 = vcombine.low %v10158_v25, %v10159_v55  ;;  %v9447_v52 = vpop.permute.xlu0 %5904  ;;  %v10162_v11 = vcombine.low %v8755_v48, %v8758_v5 }
 0x32c   :  { %v2304_v37 = vpop.permute.xlu1 %2303  ;;  %v10170_v25 = vcombine.low %v8883_v0, %v8886_v29 }
 0x32d   :  { %v2320_v8 = vsel %vm847_vm3, %v2316_v34, %v2304_v37  ;;  %v3766_v34 = vsel %vm837_vm1, %v10160_v53, %v9278_v32  ;;  %v3765_v23 = vsel %vm837_vm1, %v10162_v11, %v9342_v24  ;;  %v10164_v24 = vld [vmem:[#allocation87_spill] sm:$0xff]  ;;  %v10175_v11 = vld [vmem:[#allocation41_spill] sm:$0xff] }
 0x32e   :  { %6252 = vmatpush3.msra.mxu1 %v2320_v8  ;;  %v3769_v63 = vsel %vm842_vm2, %v3765_v23, %v9371_v17  ;;  %v10165_v17 = vld [vmem:[#allocation23_spill] sm:$0xff] }
 0x32f   :  { %6253 = vmatprep.subr.mxu1 %v9951_v15  ;;  %v5194_v22 = vpop.permute.xlu0 %5193 }
 0x330   :  { %v3015_v57 = vpop.permute.xlu1 %3014  ;;  %6254 = vmatpush3.msra.mxu1 %v2319_v61 }
 0x331   :  { %6255 = vmatprep.subr.mxu1 %v9951_v15  ;;  %v3043_v39 = vsel %vm842_vm2, %v3039_v19, %v3015_v57  ;;  %v10163_v19 = vcombine.low %v8795_v36, %v8798_v12  ;;  %v47_v36 = vld [vmem:[%s9575_s2 + $0x20] sm:$0xff]  ;;  %v10166_v12 = vld [vmem:[#allocation34_spill] sm:$0xff] }
 0x332   :  { %6256 = vmatpush3.msra.mxu1 %v9288_v44  ;;  %v3038_v44 = vsel %vm837_vm1, %v10156_v9, %v2997_v14 }
 0x333   :  { %6257 = vmatprep.subr.mxu1 %v9951_v15  ;;  %v3042_v46 = vsel %vm842_vm2, %v3038_v44, %v3013_v62  ;;  %v46_v62 = vld [vmem:[%s9575_s2 + $0x18] sm:$0xff]  ;;  %v4492_v2 = vsel %vm837_vm1, %v10163_v19, %v9355_v28  ;;  %v10167_v28 = vld [vmem:[#allocation49_spill] sm:$0xff] }
 0x334   :  { %v3031_v20 = vpop.permute.xlu1 %3030  ;;  %6258 = vmatpush3.msra.mxu1 %v2317_v6  ;;  %v3046_v49 = vsel %vm847_vm3, %v3042_v46, %v3029_v50  ;;  %v10157_v50 = vld [vmem:[#allocation30_spill] sm:$0xff]  ;;  %v5176_v6 = vpop.permute.xlu0 %5175 }
 0x335   :  { %v3047_v13 = vsel %vm847_vm3, %v3043_v39, %v3031_v20  ;;  %6262 = vmatprep.subr.mxu1 %v9951_v15  ;;  %6260 = vmatmul.mubr.msk.f32.vlgmr.msra.gmra.mxu1 %vm51_vm0, %v45_v58  ;;  %v3044_v43 = vsel %vm847_vm3, %v10157_v50, %v9336_v41  ;;  %v3770_v41 = vsel %vm842_vm2, %v3766_v34, %v9285_v47 }
 0x336   :  { %6263 = vmatpush3.msra.mxu1 %v3047_v13  ;;  %6270 = vmatprep.mubr.msk.f32.mxu1 %vm6369_vm4, %v9951_v15  ;;  %v4234_v39 = vcombine.low %v10165_v17, %v10164_v24  ;;  %v48_v13 = vld [vmem:[%s9575_s2 + $0x28] sm:$0xff]  ;;  %v10169_v50 = vcombine.low %v9141_v31, %v9144_v3  ;;  %v5219_v31 = vsel %vm837_vm1, %v10170_v25, %v9430_v40 }
 0x337   :  { %6264 = vmatprep.subr.mxu1 %v9951_v15  ;;  %v5223_v3 = vsel %vm842_vm2, %v5219_v31, %v5194_v22 }
 0x338   :  { %v4453_v14 = vpop.permute.xlu1 %4452  ;;  %6265 = vmatpush3.msra.mxu1 %v3046_v49  ;;  %v4490_v9 = vsel %vm837_vm1, %v4234_v39, %v10167_v28  ;;  %v5903_v49 = vpop.permute.xlu0 %5902 }
 0x339   :  { %6266 = vmatprep.subr.mxu1 %v9951_v15  ;;  %v4493_v8 = vsel %vm837_vm1, %v10161_v16, %v4453_v14 }
 0x33a   :  { %6267 = vmatpush3.msra.mxu1 %v3045_v42 }
 0x33b   :  { %6268 = vmatprep.subr.mxu1 %v9951_v15 }
 0x33c   :  { %v4469_v27 = vpop.permute.xlu1 %4468  ;;  %6269 = vmatpush3.msra.mxu1 %v3044_v43  ;;  %v5192_v14 = vpop.permute.xlu0 %5191 }
 0x33d   :  { %6284 = vmatprep.subr.mxu1 %v9951_v15  ;;  %6271 = vmatmul.mubr.msk.f32.vlgmr.msra.gmra.mxu1 %vm51_vm0, %v46_v62  ;;  %v4497_v61 = vsel %vm842_vm2, %v4493_v8, %v4469_v27  ;;  %v10172_v8 = vcombine.low %v9102_v18, %v9105_v4  ;;  %v49_v4 = vld [vmem:[%s9575_s2 + $0x30] sm:$0xff]  ;;  %v10174_v18 = vld [vmem:[#allocation40_spill] sm:$0xff] }
 0x33e   :  { %6292 = vmatprep.mubr.msk.f32.mxu1 %vm6369_vm4, %v9951_v15  ;;  %v10176_v23 = vcombine.low %v10174_v18, %v10175_v11 }
 0x340   :  { %v3758_v37 = vpop.permute.xlu1 %3757 }
 0x341   :  { %v3774_v1 = vsel %vm847_vm3, %v3770_v41, %v3758_v37  ;;  %v10171_v41 = vcombine.low %v8924_v45, %v8934_v7 }
 0x342   :  { %6274 = vmatpush3.msra.mxu0 %v3774_v1 }
 0x343   :  { %6275 = vmatprep.subr.mxu0 %v9951_v15  ;;  %v5946_v37 = vsel %vm837_vm1, %v10171_v41, %v9447_v52 }
 0x344   :  { %v4485_v57 = vpop.permute.xlu1 %4484 }
 0x345   :  { %v4501_v32 = vsel %vm847_vm3, %v4497_v61, %v4485_v57  ;;  %v5218_v61 = vsel %vm837_vm1, %v10172_v8, %v5176_v6  ;;  %v10173_v57 = vcombine.low %v9124_v38, %v9127_v33  ;;  %v10178_v6 = vld [vmem:[#allocation59_spill] sm:$0xff] }
 0x346   :  { %6285 = vmatpush3.msra.mxu1 %v4501_v32  ;;  %v5222_v45 = vsel %vm842_vm2, %v5218_v61, %v5192_v14 }
 0x347   :  { %6286 = vmatprep.subr.mxu1 %v9951_v15 }
 0x348   :  { %v4467_v47 = vpop.permute.xlu1 %4466 }
 0x349   :  { %v4496_v48 = vsel %vm842_vm2, %v4492_v2, %v4467_v47  ;;  %v10177_v2 = vld [vmem:[#allocation33_spill] sm:$0xff] }
 0x34c   :  { %v3756_v21 = vpop.permute.xlu1 %3755 }
 0x34d   :  { %v3773_v58 = vsel %vm847_vm3, %v3769_v63, %v3756_v21  ;;  %v5945_v63 = vsel %vm837_vm1, %v10176_v23, %v5903_v49 }
 0x34e   :  { %6276 = vmatpush3.msra.mxu0 %v3773_v58 }
 0x34f   :  { %6277 = vmatprep.subr.mxu0 %v9951_v15 }
 0x350   :  { %6278 = vmatpush3.msra.mxu0 %v9328_v54  ;;  %v4483_v5 = vpop.permute.xlu1 %4482  ;;  %v4494_v54 = vsel %vm842_vm2, %v4490_v9, %v9338_v26  ;;  %v10168_v26 = vcombine.low %v8858_v56, %v8867_v59 }
 0x351   :  { %v4500_v20 = vsel %vm847_vm3, %v4496_v48, %v4483_v5  ;;  %6279 = vmatprep.subr.mxu0 %v9951_v15  ;;  %v4498_v46 = vsel %vm847_vm3, %v4494_v54, %v9340_v10  ;;  %v10179_v48 = vcombine.low %v10177_v2, %v10178_v6 }
 0x352   :  { %6280 = vmatpush3.msra.mxu0 %v10166_v12  ;;  %6287 = vmatpush3.msra.mxu1 %v4500_v20  ;;  %v5220_v10 = vsel %vm837_vm1, %v10168_v26, %v9389_v60  ;;  %v5174_v60 = vpop.permute.xlu0 %5173  ;;  %v50_v20 = vld [vmem:[%s9575_s2 + $0x38] sm:$0xff] }
 0x353   :  { %6288 = vmatprep.subr.mxu1 %v9951_v15  ;;  %6295 = vmatprep.subr.mxu0 %v9951_v15  ;;  %v5224_v35 = vsel %vm842_vm2, %v5220_v10, %v9416_v30  ;;  %v5217_v32 = vsel %vm837_vm1, %v10173_v57, %v5174_v60 }
 0x354   :  { %v5907_v44 = vpop.permute.xlu1 %5906  ;;  %6289 = vmatpush3.msra.mxu1 %v9332_v51  ;;  %6282 = vmatmul.mubr.msk.f32.vlgmr.msra.gmra.mxu0 %vm51_vm0, %v47_v36 }
 0x355   :  { %6290 = vmatprep.subr.mxu1 %v9951_v15  ;;  %6303 = vmatprep.mubr.msk.f32.mxu0 %vm6369_vm4, %v9951_v15  ;;  %v5947_v43 = vsel %vm837_vm1, %v10169_v50, %v5907_v44 }
 0x356   :  { %6291 = vmatpush3.msra.mxu1 %v4498_v46  ;;  %v5901_v55 = vpop.permute.xlu0 %5900 }
 0x357   :  { %6306 = vmatprep.subr.mxu1 %v9951_v15  ;;  %6293 = vmatmul.mubr.msk.f32.vlgmr.msra.gmra.mxu1 %vm51_vm0, %v48_v13  ;;  %v5944_v5 = vsel %vm837_vm1, %v10179_v48, %v5901_v55 }
 0x358   :  { %v5923_v51 = vpop.permute.xlu1 %5922  ;;  %6314 = vmatprep.mubr.msk.f32.mxu1 %vm6369_vm4, %v9951_v15 }
 0x359   :  { %v5951_v27 = vsel %vm842_vm2, %v5947_v43, %v5923_v51 }
 0x35a   :  { %v5190_v40 = vpop.permute.xlu0 %5189 }
 0x35b   :  { %v5221_v22 = vsel %vm842_vm2, %v5217_v32, %v5190_v40 }
 0x35c   :  { %v5212_v42 = vpop.permute.xlu1 %5211 }
 0x35d   :  { %v5228_v62 = vsel %vm847_vm3, %v5224_v35, %v5212_v42 }
 0x35e   :  { %6296 = vmatpush3.msra.mxu0 %v5228_v62  ;;  %v5206_v7 = vpop.permute.xlu0 %5205 }
 0x35f   :  { %6297 = vmatprep.subr.mxu0 %v9951_v15  ;;  %v5225_v21 = vsel %vm847_vm3, %v5221_v22, %v5206_v7 }
 0x360   :  { %v5939_v56 = vpop.permute.xlu1 %5938 }
 0x361   :  { %v5955_v59 = vsel %vm847_vm3, %v5951_v27, %v5939_v56 }
 0x362   :  { %6307 = vmatpush3.msra.mxu1 %v5955_v59 }
 0x363   :  { %6308 = vmatprep.subr.mxu1 %v9951_v15 }
 0x364   :  { %v5921_v30 = vpop.permute.xlu1 %5920 }
 0x365   :  { %v5950_v1 = vsel %vm842_vm2, %v5946_v37, %v5921_v30 }
 0x368   :  { %v5210_v53 = vpop.permute.xlu1 %5209 }
 0x369   :  { %v5227_v34 = vsel %vm847_vm3, %v5223_v3, %v5210_v53 }
 0x36a   :  { %6298 = vmatpush3.msra.mxu0 %v5227_v34 }
 0x36b   :  { %6299 = vmatprep.subr.mxu0 %v9951_v15 }
 0x36c   :  { %v5937_v0 = vpop.permute.xlu1 %5936 }
 0x36d   :  { %v5954_v29 = vsel %vm847_vm3, %v5950_v1, %v5937_v0 }
 0x36e   :  { %6309 = vmatpush3.msra.mxu1 %v5954_v29 }
 0x36f   :  { %6310 = vmatprep.subr.mxu1 %v9951_v15 }
 0x370   :  { %v5919_v16 = vpop.permute.xlu1 %5918 }
 0x371   :  { %v5949_v38 = vsel %vm842_vm2, %v5945_v63, %v5919_v16 }
 0x374   :  { %v5208_v52 = vpop.permute.xlu1 %5207 }
 0x375   :  { %v5226_v47 = vsel %vm847_vm3, %v5222_v45, %v5208_v52 }
 0x376   :  { %6300 = vmatpush3.msra.mxu0 %v5226_v47 }
 0x377   :  { %6301 = vmatprep.subr.mxu0 %v9951_v15 }
 0x378   :  { %6302 = vmatpush3.msra.mxu0 %v5225_v21  ;;  %v5935_v33 = vpop.permute.xlu1 %5934 }
 0x379   :  { %v5953_v58 = vsel %vm847_vm3, %v5949_v38, %v5935_v33  ;;  %6304 = vmatmul.mubr.msk.f32.vlgmr.msra.gmra.mxu0 %vm51_vm0, %v49_v4  ;;  %v921_v24 = vpop.f32.mrf.mxu1 }
 0x37a   :  { %6311 = vmatpush3.msra.mxu1 %v5953_v58  ;;  %925 = vst.msk [vmem:[#allocation4] sm:$0xff] %vm51_vm0, %v921_v24 }
 0x37b   :  { %6312 = vmatprep.subr.mxu1 %v9951_v15  ;;  %v6239_v12 = vpop.f32.mrf.mxu1 }
 0x37c   :  { %v5917_v19 = vpop.permute.xlu1 %5916 }
 0x37d   :  { %v5948_v17 = vsel %vm842_vm2, %v5944_v5, %v5917_v19 }
 0x380   :  { %v5933_v39 = vpop.permute.xlu1 %5932 }
 0x381   :  { %v5952_v36 = vsel %vm847_vm3, %v5948_v17, %v5933_v39 }
 0x382   :  { %6313 = vmatpush3.msra.mxu1 %v5952_v36 }
 0x383   :  { %6315 = vmatmul.mubr.msk.f32.vlgmr.msra.gmra.mxu1 %vm51_vm0, %v50_v20 }
 0x3ea   :  { %v1663_v15 = vpop.f32.mrf.mxu1 }
 0x3eb   :  { %1668 = vst.msk [vmem:[#allocation4 + $0x8] sm:$0xff] %vm51_vm0, %v1663_v15 }
 0x3ec   :  { %v6250_v28 = vpop.f32.mrf.mxu1 }
 0x3f5   :  { %v2390_v9 = vpop.f32.mrf.mxu1 }
 0x3f6   :  { %2395 = vst.msk [vmem:[#allocation4 + $0x10] sm:$0xff] %vm51_vm0, %v2390_v9 }
 0x3f7   :  { %v6261_v54 = vpop.f32.mrf.mxu1 }
 0x3fd   :  { %v3117_v44 = vpop.f32.mrf.mxu1 }
 0x3fe   :  { %3122 = vst.msk [vmem:[#allocation4 + $0x18] sm:$0xff] %vm51_vm0, %v3117_v44 }
 0x3ff   :  { %v6272_v13 = vpop.f32.mrf.mxu1 }
 0x414   :  { %v3844_v46 = vpop.f32.mrf.mxu0 }
 0x415   :  { %3849 = vst.msk [vmem:[#allocation4 + $0x20] sm:$0xff] %vm51_vm0, %v3844_v46 }
 0x416   :  { %v6283_v49 = vpop.f32.mrf.mxu0 }
 0x417   :  { %v4571_v51 = vpop.f32.mrf.mxu1 }
 0x418   :  { %4576 = vst.msk [vmem:[#allocation4 + $0x28] sm:$0xff] %vm51_vm0, %v4571_v51 }
 0x419   :  { %v6294_v26 = vpop.f32.mrf.mxu1 }
 0x439   :  { %v5298_v10 = vpop.f32.mrf.mxu0 }
 0x43a   :  { %5303 = vst.msk [vmem:[#allocation4 + $0x30] sm:$0xff] %vm51_vm0, %v5298_v10 }
 0x43b   :  { %v6305_v35 = vpop.f32.mrf.mxu0 }
 0x443   :  { %v6025_v14 = vpop.f32.mrf.mxu1 }
 0x444   :  { %6030 = vst.msk [vmem:[#allocation4 + $0x38] sm:$0xff] %vm51_vm0, %v6025_v14 }
 0x445   :  { %v6316_v42 = vpop.f32.mrf.mxu1 }
 0x446 PF:  { %s6370_s2 = smov [#allocation4]  }
 0x447   :  { %s6036_s25 = sshll.u32 %s6370_s2, 4  ;;  %s6037_s25 = int_to_ptr.vmem [resolvable:$true] %s6036_s25 }
 0x448   :  { %s6334_s26 = scalar_lea.vmem %s6037_s25, 1024  ;;  %p6339_p2 = scmp.lt.s32.totalorder %s6037_s25, %s6037_s25 }
 0x449   :  { %p6335_p1 = scmp.ne.s32.totalorder %s6037_s25, %s6334_s26  ;;  %p6340_p3 = scmp.lt.s32.totalorder %s6334_s26, %s6334_s26 }
 0x44b   :  { %p6341_p4 = por %p6340_p3, %p6339_p2 }
 0x44d   :  { %p6342_p5 = pnand %p6341_p4, %p6335_p1 }
 0x44f   :  { %6345 = shalt.err (!%p6342_p5)
}
 0x450   :  { %s6371_s27 = smov 128   ;;  %s6372_s28 = smov 8  }
 0x451   :  { %6042 = dma.vmem_to_hbm [thread:$0]  %s6037_s25, 1024, %s9577_s4, [#allocation5], %s6371_s27, %s6371_s27, %s6372_s28  }
 0x452   :  { %6354 = dma.done.wait [#allocation5], 1024  }
 0x453   :  { %6355 = vsyncadd [#allocation5], 4294966272 }
 0x454   :  { %6046 = vsyncpa [#allocation5], 1 }

</bundles_post_ra>
